<compile_context>
chip_gen: v7x
topology: tpu7x:2x2x1
jax: 0.10.0
libtpu: 0.0.40
codegen_flags: <defaults>
</compile_context>

<pallas_src>
import functools
import math

import jax
import jax.numpy as jnp
from jax.experimental import pallas as pl
from jax.experimental.pallas import tpu as pltpu

# ----------------------------- model dimensions ----------------------------- #
CATE_SHAPE = 78
CATE_SIZE = 5
SEQ_NUME_SIZE = 48          # = seq float (47) + seq label (1)
FLAT_NUME_SIZE = 44
CAT_HIDDEN = 5
SEQ_HIDDEN = 64
EXTRA_FLAT_DIM = 274
STATIC_SIZE = 24
MHA_HIDDEN = 32
N_HEAD = 4

SEQ_IN = CATE_SIZE * CAT_HIDDEN + SEQ_NUME_SIZE          # 73
STATIC_INPUT = STATIC_SIZE + CATE_SIZE * CAT_HIDDEN      # 49
PROJECT = N_HEAD * MHA_HIDDEN                            # 128
GRU_IN = PROJECT + SEQ_IN                                # 201
FLAT_IN = CATE_SIZE * CAT_HIDDEN + FLAT_NUME_SIZE + EXTRA_FLAT_DIM + 2 * SEQ_HIDDEN  # 471
KEY_SIZE = PROJECT // N_HEAD                             # 32
SQRT_K = math.sqrt(KEY_SIZE)

_VMEM = pl.BlockSpec(memory_space=pltpu.MemorySpace.VMEM)
_CPARAMS = pltpu.CompilerParams(vmem_limit_bytes=32 * 1024 * 1024)


# --------------------------------- kernels ---------------------------------- #
def _attn_project_kernel(q_in_ref, k_in_ref, v_in_ref, wq_ref, wk_ref, wv_ref,
                         q_out_ref, k_out_ref, v_out_ref):
    # Fused q/k/v projections: 3 matmuls, one launch (all weights VMEM resident).
    q_out_ref[...] = jnp.dot(q_in_ref[...], wq_ref[...],
                             preferred_element_type=jnp.float32)
    k_out_ref[...] = jnp.dot(k_in_ref[...], wk_ref[...],
                             preferred_element_type=jnp.float32)
    v_out_ref[...] = jnp.dot(v_in_ref[...], wv_ref[...],
                             preferred_element_type=jnp.float32)


def _attn_core_ln_kernel(q_ref, k_ref, v_ref, g_ref, beta_ref, o_ref, *,
                         n_head, head_dim, sqrt_k):
    # q/v: (B, L, n_head*head_dim) lane-dense, head h in lanes [h*hd, (h+1)*hd)
    # k:   (B, n_head*head_dim)
    # Output: LayerNorm(per-head softmax(q.k / sqrt_k) * v), lane-dense (B, L, 128).
    q = q_ref[...]
    k = k_ref[...]
    v = v_ref[...]
    qk = q * k[:, None, :]                                           # (B, L, 128)
    parts = []
    for h in range(n_head):
        lo = h * head_dim
        s = jnp.sum(qk[:, :, lo:lo + head_dim], axis=-1) / sqrt_k    # (B, L)
        s = s - jnp.max(s, axis=-1, keepdims=True)                   # stable softmax over L
        e = jnp.exp(s)
        p = e / jnp.sum(e, axis=-1, keepdims=True)
        parts.append(p[:, :, None] * v[:, :, lo:lo + head_dim])      # (B, L, head_dim)
    skip = jnp.concatenate(parts, axis=-1)                           # (B, L, 128)
    mu = jnp.mean(skip, axis=-1, keepdims=True)
    xc = skip - mu
    var = jnp.mean(xc * xc, axis=-1, keepdims=True)
    o_ref[...] = xc * jax.lax.rsqrt(var + 1e-5) * g_ref[...] + beta_ref[...]


def _gru_kernel(x_ref, wih_ref, whh_ref, bih_ref, bhh_ref, hn_ref, *,
                seq_len, batch):
    # x_ref: (seq_len*batch, GRU_IN), time-major (row = t*batch + b), batch % 8 == 0.
    # Input-side matmul hoisted out of the recurrence: one MXU call for all steps.
    gi = jnp.dot(x_ref[...], wih_ref[...],
                 preferred_element_type=jnp.float32) + bih_ref[...]  # (L*B, 3H)
    whh = whh_ref[...]
    bhh = bhh_ref[...]
    hid = whh.shape[0]
    h = jnp.zeros((batch, hid), jnp.float32)                         # h_0 = 0 (PyTorch default)
    for t in range(seq_len):                                         # fully unrolled recurrence
        gi_t = gi[t * batch:(t + 1) * batch, :]                      # 8-row aligned static slice
        gh = jnp.dot(h, whh, preferred_element_type=jnp.float32) + bhh
        r = jax.nn.sigmoid(gi_t[:, :hid] + gh[:, :hid])
        z = jax.nn.sigmoid(gi_t[:, hid:2 * hid] + gh[:, hid:2 * hid])
        n = jnp.tanh(gi_t[:, 2 * hid:] + r * gh[:, 2 * hid:])
        h = (1.0 - z) * n + z * h
    hn_ref[...] = h                                                  # single writeback of h_n


def _fc_tower_kernel(x_ref, w0, b0, w1, b1, w2, b2, w3, b3, w4, b4, w5, b5,
                     wo, bo, o_ref):
    # Whole FC tower in one launch: 6 x (Linear + folded-BN + Tanh) + final Linear.
    x = x_ref[...]
    for w, b in ((w0, b0), (w1, b1), (w2, b2), (w3, b3), (w4, b4), (w5, b5)):
        x = jnp.tanh(jnp.dot(x, w[...], preferred_element_type=jnp.float32) + b[...])
    # TODO(synk): nn.Dropout(p=0.5) is identity in eval mode; training-mode dropout not implemented.
    o_ref[...] = jnp.dot(x, wo[...], preferred_element_type=jnp.float32) + bo[...]


# -------------------------------- wrappers ----------------------------------- #
def _attn_project(p, q2d, key_in, v2d):
    bl = q2d.shape[0]
    b = key_in.shape[0]
    return pl.pallas_call(
        _attn_project_kernel,
        out_shape=(jax.ShapeDtypeStruct((bl, PROJECT), jnp.float32),
                   jax.ShapeDtypeStruct((b, PROJECT), jnp.float32),
                   jax.ShapeDtypeStruct((bl, PROJECT), jnp.float32)),
        in_specs=[_VMEM] * 6,
        out_specs=(_VMEM, _VMEM, _VMEM),
        compiler_params=_CPARAMS,
    )(q2d, key_in, v2d, p["wq"], p["wk"], p["wv"])


def _attn_core_ln(q_ld, k_proj, v_ld, g, beta):
    b, l, proj = q_ld.shape
    return pl.pallas_call(
        functools.partial(_attn_core_ln_kernel, n_head=N_HEAD,
                          head_dim=KEY_SIZE, sqrt_k=SQRT_K),
        out_shape=jax.ShapeDtypeStruct((b, l, proj), jnp.float32),
        in_specs=[_VMEM] * 5,
        out_specs=_VMEM,
        compiler_params=_CPARAMS,
    )(q_ld, k_proj, v_ld, g.reshape(1, -1), beta.reshape(1, -1))


def _head_split_lane_dense(x2d, b, l):
    # Bit-exact replication of torch's  X.transpose(2,1).reshape(b*nh, l, 32)  head
    # split (which interleaves the seq/feature axes), re-laid-out so that head h
    # occupies the contiguous lane group [32h, 32h+32) of a (b, l, 128) tensor.
    x = x2d.reshape(b, l, PROJECT)
    x = jnp.transpose(x, (0, 2, 1)).reshape(b, N_HEAD, l, KEY_SIZE)
    return jnp.transpose(x, (0, 2, 1, 3)).reshape(b, l, PROJECT)


def multi_head_select_attention(p, query_input, key_input, value_input):
    b, l, _ = query_input.shape
    q_proj, k_proj, v_proj = _attn_project(
        p, query_input.reshape(b * l, -1), key_input, value_input.reshape(b * l, -1))
    q_ld = _head_split_lane_dense(q_proj, b, l)
    v_ld = _head_split_lane_dense(v_proj, b, l)
    # key: torch's reshape(b*nh, 32, 1) already puts head h at lanes [32h, 32h+32)
    # of k_proj, so k_proj is used directly.
    return _attn_core_ln(q_ld, k_proj, v_ld, p["ln_g"], p["ln_b"])


def gru_last_hidden(p, x):
    # x: (B, L, GRU_IN) -> h_n: (B, SEQ_HIDDEN).  Batch is padded to a sublane
    # multiple so per-step slices of the hoisted gi are 8-row aligned (padding is
    # free: the MXU/vregs pad M to 8 sublanes anyway); padded rows are discarded.
    b, l, f = x.shape
    bp = max(8, ((b + 7) // 8) * 8)
    xt = jnp.transpose(x, (1, 0, 2))                                 # (L, B, F) time-major
    if bp != b:
        xt = jnp.pad(xt, ((0, 0), (0, bp - b), (0, 0)))
    x2d = xt.reshape(l * bp, f)
    hn = pl.pallas_call(
        functools.partial(_gru_kernel, seq_len=l, batch=bp),
        out_shape=jax.ShapeDtypeStruct((bp, SEQ_HIDDEN), jnp.float32),
        in_specs=[_VMEM] * 5,
        out_specs=_VMEM,
        compiler_params=_CPARAMS,
    )(x2d, p["wih"], p["whh"], p["bih"].reshape(1, -1), p["bhh"].reshape(1, -1))
    return hn[:b]


def fc_tower(x, fc_folded, fc_out):
    args = [x]
    for p in fc_folded:
        args.extend((p["w"], p["b"].reshape(1, -1)))
    args.extend((fc_out["w"], fc_out["b"].reshape(1, -1)))
    return pl.pallas_call(
        _fc_tower_kernel,
        out_shape=jax.ShapeDtypeStruct((x.shape[0], 1), jnp.float32),
        in_specs=[_VMEM] * len(args),
        out_specs=_VMEM,
        compiler_params=_CPARAMS,
    )(*args)


# --------------------------------- forward ----------------------------------- #
def forward(params, batch_flat_int, batch_flat_float, batch_flat_dense,
            batch_h_int, batch_h_float, batch_h_label,
            batch_seq_int, batch_seq_float, batch_seq_label):
    b = batch_flat_int.shape[0]
    lh = batch_h_int.shape[1]
    ld = batch_seq_int.shape[1]

    emb = params["emb"]
    flat_emb = emb[batch_flat_int].reshape(b, -1)                    # (B, 25)
    h_emb = emb[batch_h_int].reshape(b, lh, -1)                      # (B, Lh, 25)
    s_emb = emb[batch_seq_int].reshape(b, ld, -1)                    # (B, Ld, 25)

    flat_static = jnp.concatenate([flat_emb, batch_flat_float[:, :STATIC_SIZE]], axis=-1)
    h_static = jnp.concatenate([h_emb, batch_h_float[:, :, :STATIC_SIZE]], axis=-1)
    s_static = jnp.concatenate([s_emb, batch_seq_float[:, :, :STATIC_SIZE]], axis=-1)
    h_value = jnp.concatenate([h_emb, batch_h_float, batch_h_label], axis=-1)
    s_value = jnp.concatenate([s_emb, batch_seq_float, batch_seq_label], axis=-1)

    # TODO(synk): the independent h/d branches could be batched into single
    # attention/GRU kernels (pad Ld->Lh + softmax/recurrence masking) and split
    # across v7x's two TensorCores; kept separate to preserve exact semantics.
    h_attn_out = multi_head_select_attention(params["h_attn"], h_static, flat_static, h_value)
    s_attn_out = multi_head_select_attention(params["d_attn"], s_static, flat_static, s_value)

    h_gru_in = jnp.concatenate([h_value, h_attn_out], axis=-1)       # (B, Lh, 201)
    d_gru_in = jnp.concatenate([s_value, s_attn_out], axis=-1)       # (B, Ld, 201)

    h_hn = gru_last_hidden(params["h_gru"], h_gru_in)                # (B, 64)
    d_hn = gru_last_hidden(params["d_gru"], d_gru_in)                # (B, 64)

    flat_in = jnp.concatenate(
        [flat_emb, batch_flat_float, batch_flat_dense, h_hn, d_hn], axis=-1)  # (B, 471)
    return fc_tower(flat_in, params["fc"], params["fc_out"])         # (B, 1)


# ------------------------------- parameters ---------------------------------- #
def init_params(key):
    std = 1.0 / math.sqrt(SEQ_HIDDEN)  # matches GruModel.reset_parameters
    keys = iter(jax.random.split(key, 64))
    u = lambda shape: jax.random.uniform(next(keys), shape, jnp.float32, -std, std)

    def attn_params():
        return dict(
            wq=u((STATIC_INPUT, PROJECT)),
            wk=u((STATIC_INPUT, PROJECT)),
            wv=u((SEQ_IN, PROJECT)),
            ln_g=u((PROJECT,)),
            ln_b=u((PROJECT,)),
        )

    def gru_params():
        h = SEQ_HIDDEN
        return dict(
            wih=u((GRU_IN, 3 * h)),
            whh=u((h, 3 * h)),
            bih=u((3 * h,)),
            bhh=u((3 * h,)),
        )

    fc_dims = [(FLAT_IN, 256), (256, 256), (256, 128), (128, 128), (128, 64), (64, 64)]
    fc = []
    for din, dout in fc_dims:
        fc.append(dict(
            w=u((din, dout)), b=u((dout,)),
            g=u((dout,)), beta=u((dout,)),
            rm=jnp.zeros((dout,), jnp.float32),   # BN running stats (untouched buffers)
            rv=jnp.ones((dout,), jnp.float32),
        ))
    fc_out = dict(w=u((64, 1)), b=u((1,)))

    return dict(
        emb=u((CATE_SHAPE, CAT_HIDDEN)),  # padding row overwritten by reset_parameters anyway
        h_attn=attn_params(), d_attn=attn_params(),
        h_gru=gru_params(), d_gru=gru_params(),
        fc=fc, fc_out=fc_out,
    )


def fold_batchnorm(fc_raw):
    # Eval-mode BN folded into the preceding Linear:
    #   (x@W + b - rm) * g/sqrt(rv+eps) + beta  ==  x @ (W*s) + ((b-rm)*s + beta)
    folded = []
    for p in fc_raw:
        s = p["g"] / jnp.sqrt(p["rv"] + 1e-5)
        folded.append(dict(w=p["w"] * s[None, :], b=(p["b"] - p["rm"]) * s + p["beta"]))
    return folded


def prepare_params(params):
    prepared = dict(params)
    prepared["fc"] = fold_batchnorm(params["fc"])
    return prepared


# ---------------------------------- main -------------------------------------- #
if __name__ == "__main__":
    key = jax.random.PRNGKey(0)
    kk = jax.random.split(key, 9)
    B, LH, LD = 2, 8, 6

    batch_flat_int = jax.random.randint(kk[0], (B, CATE_SIZE), 0, CATE_SHAPE)
    batch_flat_float = jax.random.normal(kk[1], (B, FLAT_NUME_SIZE), jnp.float32)
    batch_flat_dense = jax.random.normal(kk[2], (B, EXTRA_FLAT_DIM), jnp.float32)
    batch_h_int = jax.random.randint(kk[3], (B, LH, CATE_SIZE), 0, CATE_SHAPE)
    batch_h_float = jax.random.normal(kk[4], (B, LH, SEQ_NUME_SIZE - 1), jnp.float32)
    batch_h_label = jax.random.normal(kk[5], (B, LH, 1), jnp.float32)
    batch_seq_int = jax.random.randint(kk[6], (B, LD, CATE_SIZE), 0, CATE_SHAPE)
    batch_seq_float = jax.random.normal(kk[7], (B, LD, SEQ_NUME_SIZE - 1), jnp.float32)
    batch_seq_label = jax.random.normal(kk[8], (B, LD, 1), jnp.float32)

    params = prepare_params(init_params(jax.random.PRNGKey(42)))

    fwd = jax.jit(forward)
    out = fwd(params, batch_flat_int, batch_flat_float, batch_flat_dense,
              batch_h_int, batch_h_float, batch_h_label,
              batch_seq_int, batch_seq_float, batch_seq_label)
    jax.block_until_ready(out)

    assert out.shape == (B, 1), out.shape
    assert out.dtype == jnp.float32
    assert bool(jnp.all(jnp.isfinite(out)))
    print("KERNEL_OK")
</pallas_src>

<mosaic_0001>
module attributes {stable_mosaic.version = 11 : i64} {
  func.func @_attn_core_ln_kernel(%arg0: memref<2x6x128xf32, #tpu.memory_space<vmem>>, %arg1: memref<2x128xf32, #tpu.memory_space<vmem>>, %arg2: memref<2x6x128xf32, #tpu.memory_space<vmem>>, %arg3: memref<1x128xf32, #tpu.memory_space<vmem>>, %arg4: memref<1x128xf32, #tpu.memory_space<vmem>>, %arg5: memref<2x6x128xf32, #tpu.memory_space<vmem>>) attributes {dimension_semantics = [], scalar_prefetch = 0 : i64, scratch_operands = 0 : i64, tpu.core_type = #tpu.core_type<tc>} {
    %c0 = arith.constant 0 : index
    %c0_0 = arith.constant 0 : index
    %c0_1 = arith.constant 0 : index
    %0 = vector.load %arg0[%c0, %c0_0, %c0_1] : memref<2x6x128xf32, #tpu.memory_space<vmem>>, vector<2x6x128xf32>
    %c0_2 = arith.constant 0 : index
    %c0_3 = arith.constant 0 : index
    %1 = vector.load %arg1[%c0_2, %c0_3] : memref<2x128xf32, #tpu.memory_space<vmem>>, vector<2x128xf32>
    %c0_4 = arith.constant 0 : index
    %c0_5 = arith.constant 0 : index
    %c0_6 = arith.constant 0 : index
    %2 = vector.load %arg2[%c0_4, %c0_5, %c0_6] : memref<2x6x128xf32, #tpu.memory_space<vmem>>, vector<2x6x128xf32>
    %3 = vector.shape_cast %1 : vector<2x128xf32> to vector<2x1x128xf32>
    %4 = vector.broadcast %3 : vector<2x1x128xf32> to vector<2x6x128xf32>
    %5 = arith.mulf %0, %4 : vector<2x6x128xf32>
    %6 = vector.extract_strided_slice %5 {offsets = [0, 0, 0], sizes = [2, 6, 32], strides = [1, 1, 1]} : vector<2x6x128xf32> to vector<2x6x32xf32>
    %cst = arith.constant dense<0.000000e+00> : vector<2x6xf32>
    %7 = vector.multi_reduction <add>, %6, %cst [2] : vector<2x6x32xf32> to vector<2x6xf32>
    %cst_7 = arith.constant 5.65685415 : f32
    %8 = vector.broadcast %cst_7 : f32 to vector<2x6xf32>
    %9 = arith.divf %7, %8 : vector<2x6xf32>
    %cst_8 = arith.constant dense<0xFF800000> : vector<2xf32>
    %10 = vector.multi_reduction <maximumf>, %9, %cst_8 [1] : vector<2x6xf32> to vector<2xf32>
    %11 = vector.shape_cast %10 : vector<2xf32> to vector<2x1xf32>
    %12 = vector.broadcast %11 : vector<2x1xf32> to vector<2x6xf32>
    %13 = arith.subf %9, %12 : vector<2x6xf32>
    %14 = math.exp %13 : vector<2x6xf32>
    %cst_9 = arith.constant dense<0.000000e+00> : vector<2xf32>
    %15 = vector.multi_reduction <add>, %14, %cst_9 [1] : vector<2x6xf32> to vector<2xf32>
    %16 = vector.shape_cast %15 : vector<2xf32> to vector<2x1xf32>
    %17 = vector.broadcast %16 : vector<2x1xf32> to vector<2x6xf32>
    %18 = arith.divf %14, %17 : vector<2x6xf32>
    %19 = vector.shape_cast %18 : vector<2x6xf32> to vector<2x6x1xf32>
    %20 = vector.extract_strided_slice %2 {offsets = [0, 0, 0], sizes = [2, 6, 32], strides = [1, 1, 1]} : vector<2x6x128xf32> to vector<2x6x32xf32>
    %21 = vector.broadcast %19 : vector<2x6x1xf32> to vector<2x6x32xf32>
    %22 = arith.mulf %21, %20 : vector<2x6x32xf32>
    %23 = vector.extract_strided_slice %5 {offsets = [0, 0, 32], sizes = [2, 6, 32], strides = [1, 1, 1]} : vector<2x6x128xf32> to vector<2x6x32xf32>
    %cst_10 = arith.constant dense<0.000000e+00> : vector<2x6xf32>
    %24 = vector.multi_reduction <add>, %23, %cst_10 [2] : vector<2x6x32xf32> to vector<2x6xf32>
    %cst_11 = arith.constant 5.65685415 : f32
    %25 = vector.broadcast %cst_11 : f32 to vector<2x6xf32>
    %26 = arith.divf %24, %25 : vector<2x6xf32>
    %cst_12 = arith.constant dense<0xFF800000> : vector<2xf32>
    %27 = vector.multi_reduction <maximumf>, %26, %cst_12 [1] : vector<2x6xf32> to vector<2xf32>
    %28 = vector.shape_cast %27 : vector<2xf32> to vector<2x1xf32>
    %29 = vector.broadcast %28 : vector<2x1xf32> to vector<2x6xf32>
    %30 = arith.subf %26, %29 : vector<2x6xf32>
    %31 = math.exp %30 : vector<2x6xf32>
    %cst_13 = arith.constant dense<0.000000e+00> : vector<2xf32>
    %32 = vector.multi_reduction <add>, %31, %cst_13 [1] : vector<2x6xf32> to vector<2xf32>
    %33 = vector.shape_cast %32 : vector<2xf32> to vector<2x1xf32>
    %34 = vector.broadcast %33 : vector<2x1xf32> to vector<2x6xf32>
    %35 = arith.divf %31, %34 : vector<2x6xf32>
    %36 = vector.shape_cast %35 : vector<2x6xf32> to vector<2x6x1xf32>
    %37 = vector.extract_strided_slice %2 {offsets = [0, 0, 32], sizes = [2, 6, 32], strides = [1, 1, 1]} : vector<2x6x128xf32> to vector<2x6x32xf32>
    %38 = vector.broadcast %36 : vector<2x6x1xf32> to vector<2x6x32xf32>
    %39 = arith.mulf %38, %37 : vector<2x6x32xf32>
    %40 = vector.extract_strided_slice %5 {offsets = [0, 0, 64], sizes = [2, 6, 32], strides = [1, 1, 1]} : vector<2x6x128xf32> to vector<2x6x32xf32>
    %cst_14 = arith.constant dense<0.000000e+00> : vector<2x6xf32>
    %41 = vector.multi_reduction <add>, %40, %cst_14 [2] : vector<2x6x32xf32> to vector<2x6xf32>
    %cst_15 = arith.constant 5.65685415 : f32
    %42 = vector.broadcast %cst_15 : f32 to vector<2x6xf32>
    %43 = arith.divf %41, %42 : vector<2x6xf32>
    %cst_16 = arith.constant dense<0xFF800000> : vector<2xf32>
    %44 = vector.multi_reduction <maximumf>, %43, %cst_16 [1] : vector<2x6xf32> to vector<2xf32>
    %45 = vector.shape_cast %44 : vector<2xf32> to vector<2x1xf32>
    %46 = vector.broadcast %45 : vector<2x1xf32> to vector<2x6xf32>
    %47 = arith.subf %43, %46 : vector<2x6xf32>
    %48 = math.exp %47 : vector<2x6xf32>
    %cst_17 = arith.constant dense<0.000000e+00> : vector<2xf32>
    %49 = vector.multi_reduction <add>, %48, %cst_17 [1] : vector<2x6xf32> to vector<2xf32>
    %50 = vector.shape_cast %49 : vector<2xf32> to vector<2x1xf32>
    %51 = vector.broadcast %50 : vector<2x1xf32> to vector<2x6xf32>
    %52 = arith.divf %48, %51 : vector<2x6xf32>
    %53 = vector.shape_cast %52 : vector<2x6xf32> to vector<2x6x1xf32>
    %54 = vector.extract_strided_slice %2 {offsets = [0, 0, 64], sizes = [2, 6, 32], strides = [1, 1, 1]} : vector<2x6x128xf32> to vector<2x6x32xf32>
    %55 = vector.broadcast %53 : vector<2x6x1xf32> to vector<2x6x32xf32>
    %56 = arith.mulf %55, %54 : vector<2x6x32xf32>
    %57 = vector.extract_strided_slice %5 {offsets = [0, 0, 96], sizes = [2, 6, 32], strides = [1, 1, 1]} : vector<2x6x128xf32> to vector<2x6x32xf32>
    %cst_18 = arith.constant dense<0.000000e+00> : vector<2x6xf32>
    %58 = vector.multi_reduction <add>, %57, %cst_18 [2] : vector<2x6x32xf32> to vector<2x6xf32>
    %cst_19 = arith.constant 5.65685415 : f32
    %59 = vector.broadcast %cst_19 : f32 to vector<2x6xf32>
    %60 = arith.divf %58, %59 : vector<2x6xf32>
    %cst_20 = arith.constant dense<0xFF800000> : vector<2xf32>
    %61 = vector.multi_reduction <maximumf>, %60, %cst_20 [1] : vector<2x6xf32> to vector<2xf32>
    %62 = vector.shape_cast %61 : vector<2xf32> to vector<2x1xf32>
    %63 = vector.broadcast %62 : vector<2x1xf32> to vector<2x6xf32>
    %64 = arith.subf %60, %63 : vector<2x6xf32>
    %65 = math.exp %64 : vector<2x6xf32>
    %cst_21 = arith.constant dense<0.000000e+00> : vector<2xf32>
    %66 = vector.multi_reduction <add>, %65, %cst_21 [1] : vector<2x6xf32> to vector<2xf32>
    %67 = vector.shape_cast %66 : vector<2xf32> to vector<2x1xf32>
    %68 = vector.broadcast %67 : vector<2x1xf32> to vector<2x6xf32>
    %69 = arith.divf %65, %68 : vector<2x6xf32>
    %70 = vector.shape_cast %69 : vector<2x6xf32> to vector<2x6x1xf32>
    %71 = vector.extract_strided_slice %2 {offsets = [0, 0, 96], sizes = [2, 6, 32], strides = [1, 1, 1]} : vector<2x6x128xf32> to vector<2x6x32xf32>
    %72 = vector.broadcast %70 : vector<2x6x1xf32> to vector<2x6x32xf32>
    %73 = arith.mulf %72, %71 : vector<2x6x32xf32>
    %74 = tpu.concatenate %22, %39, %56, %73 in 2 : vector<2x6x32xf32>, vector<2x6x32xf32>, vector<2x6x32xf32>, vector<2x6x32xf32> -> vector<2x6x128xf32>
    %cst_22 = arith.constant dense<0.000000e+00> : vector<2x6xf32>
    %75 = vector.multi_reduction <add>, %74, %cst_22 [2] : vector<2x6x128xf32> to vector<2x6xf32>
    %76 = vector.shape_cast %75 : vector<2x6xf32> to vector<2x6x1xf32>
    %cst_23 = arith.constant 1.280000e+02 : f32
    %77 = vector.broadcast %cst_23 : f32 to vector<2x6x1xf32>
    %78 = arith.divf %76, %77 : vector<2x6x1xf32>
    %79 = vector.broadcast %78 : vector<2x6x1xf32> to vector<2x6x128xf32>
    %80 = arith.subf %74, %79 : vector<2x6x128xf32>
    %81 = arith.mulf %80, %80 : vector<2x6x128xf32>
    %cst_24 = arith.constant dense<0.000000e+00> : vector<2x6xf32>
    %82 = vector.multi_reduction <add>, %81, %cst_24 [2] : vector<2x6x128xf32> to vector<2x6xf32>
    %83 = vector.shape_cast %82 : vector<2x6xf32> to vector<2x6x1xf32>
    %cst_25 = arith.constant 1.280000e+02 : f32
    %84 = vector.broadcast %cst_25 : f32 to vector<2x6x1xf32>
    %85 = arith.divf %83, %84 : vector<2x6x1xf32>
    %cst_26 = arith.constant 9.99999974E-6 : f32
    %86 = vector.broadcast %cst_26 : f32 to vector<2x6x1xf32>
    %87 = arith.addf %85, %86 : vector<2x6x1xf32>
    %88 = math.rsqrt %87 : vector<2x6x1xf32>
    %89 = vector.broadcast %88 : vector<2x6x1xf32> to vector<2x6x128xf32>
    %90 = arith.mulf %80, %89 : vector<2x6x128xf32>
    %c0_27 = arith.constant 0 : index
    %c0_28 = arith.constant 0 : index
    %91 = vector.load %arg3[%c0_27, %c0_28] : memref<1x128xf32, #tpu.memory_space<vmem>>, vector<1x128xf32>
    %92 = vector.shape_cast %91 : vector<1x128xf32> to vector<1x1x128xf32>
    %93 = vector.broadcast %92 : vector<1x1x128xf32> to vector<2x6x128xf32>
    %94 = arith.mulf %90, %93 : vector<2x6x128xf32>
    %c0_29 = arith.constant 0 : index
    %c0_30 = arith.constant 0 : index
    %95 = vector.load %arg4[%c0_29, %c0_30] : memref<1x128xf32, #tpu.memory_space<vmem>>, vector<1x128xf32>
    %96 = vector.shape_cast %95 : vector<1x128xf32> to vector<1x1x128xf32>
    %97 = vector.broadcast %96 : vector<1x1x128xf32> to vector<2x6x128xf32>
    %98 = arith.addf %94, %97 : vector<2x6x128xf32>
    %c0_31 = arith.constant 0 : index
    %c0_32 = arith.constant 0 : index
    %c0_33 = arith.constant 0 : index
    %99 = vector.load %arg5[%c0_31, %c0_32, %c0_33] : memref<2x6x128xf32, #tpu.memory_space<vmem>>, vector<2x6x128xf32>
    tpu.vector_store %arg5[%c0_31, %c0_32, %c0_33], %98 {strides = array<i32>} : memref<2x6x128xf32, #tpu.memory_space<vmem>>, vector<2x6x128xf32>,
    return
  }
}

module attributes {stable_mosaic.version = 11 : i64} {
  func.func @_attn_project_kernel(%arg0: memref<12x49xf32, #tpu.memory_space<vmem>>, %arg1: memref<2x49xf32, #tpu.memory_space<vmem>>, %arg2: memref<12x73xf32, #tpu.memory_space<vmem>>, %arg3: memref<49x128xf32, #tpu.memory_space<vmem>>, %arg4: memref<49x128xf32, #tpu.memory_space<vmem>>, %arg5: memref<73x128xf32, #tpu.memory_space<vmem>>, %arg6: memref<12x128xf32, #tpu.memory_space<vmem>>, %arg7: memref<2x128xf32, #tpu.memory_space<vmem>>, %arg8: memref<12x128xf32, #tpu.memory_space<vmem>>) attributes {dimension_semantics = [], scalar_prefetch = 0 : i64, scratch_operands = 0 : i64, tpu.core_type = #tpu.core_type<tc>} {
    %c0 = arith.constant 0 : index
    %c0_0 = arith.constant 0 : index
    %0 = vector.load %arg0[%c0, %c0_0] : memref<12x49xf32, #tpu.memory_space<vmem>>, vector<12x49xf32>
    %c0_1 = arith.constant 0 : index
    %c0_2 = arith.constant 0 : index
    %1 = vector.load %arg3[%c0_1, %c0_2] : memref<49x128xf32, #tpu.memory_space<vmem>>, vector<49x128xf32>
    %cst = arith.constant dense<0.000000e+00> : vector<12x128xf32>
    %2 = tpu.matmul %0, %1, %cst {dimension_numbers = #tpu.dot_dimension_numbers<[1], [0], [0], [1], [0, 0, 1, 1], [], []>} : vector<12x49xf32>, vector<49x128xf32>, vector<12x128xf32> -> vector<12x128xf32>
    %c0_3 = arith.constant 0 : index
    %c0_4 = arith.constant 0 : index
    %3 = vector.load %arg6[%c0_3, %c0_4] : memref<12x128xf32, #tpu.memory_space<vmem>>, vector<12x128xf32>
    tpu.vector_store %arg6[%c0_3, %c0_4], %2 {strides = array<i32>} : memref<12x128xf32, #tpu.memory_space<vmem>>, vector<12x128xf32>,
    %c0_5 = arith.constant 0 : index
    %c0_6 = arith.constant 0 : index
    %4 = vector.load %arg1[%c0_5, %c0_6] : memref<2x49xf32, #tpu.memory_space<vmem>>, vector<2x49xf32>
    %c0_7 = arith.constant 0 : index
    %c0_8 = arith.constant 0 : index
    %5 = vector.load %arg4[%c0_7, %c0_8] : memref<49x128xf32, #tpu.memory_space<vmem>>, vector<49x128xf32>
    %cst_9 = arith.constant dense<0.000000e+00> : vector<2x128xf32>
    %6 = tpu.matmul %4, %5, %cst_9 {dimension_numbers = #tpu.dot_dimension_numbers<[1], [0], [0], [1], [0, 0, 1, 1], [], []>} : vector<2x49xf32>, vector<49x128xf32>, vector<2x128xf32> -> vector<2x128xf32>
    %c0_10 = arith.constant 0 : index
    %c0_11 = arith.constant 0 : index
    %7 = vector.load %arg7[%c0_10, %c0_11] : memref<2x128xf32, #tpu.memory_space<vmem>>, vector<2x128xf32>
    tpu.vector_store %arg7[%c0_10, %c0_11], %6 {strides = array<i32>} : memref<2x128xf32, #tpu.memory_space<vmem>>, vector<2x128xf32>,
    %c0_12 = arith.constant 0 : index
    %c0_13 = arith.constant 0 : index
    %8 = vector.load %arg2[%c0_12, %c0_13] : memref<12x73xf32, #tpu.memory_space<vmem>>, vector<12x73xf32>
    %c0_14 = arith.constant 0 : index
    %c0_15 = arith.constant 0 : index
    %9 = vector.load %arg5[%c0_14, %c0_15] : memref<73x128xf32, #tpu.memory_space<vmem>>, vector<73x128xf32>
    %cst_16 = arith.constant dense<0.000000e+00> : vector<12x128xf32>
    %10 = tpu.matmul %8, %9, %cst_16 {dimension_numbers = #tpu.dot_dimension_numbers<[1], [0], [0], [1], [0, 0, 1, 1], [], []>} : vector<12x73xf32>, vector<73x128xf32>, vector<12x128xf32> -> vector<12x128xf32>
    %c0_17 = arith.constant 0 : index
    %c0_18 = arith.constant 0 : index
    %11 = vector.load %arg8[%c0_17, %c0_18] : memref<12x128xf32, #tpu.memory_space<vmem>>, vector<12x128xf32>
    tpu.vector_store %arg8[%c0_17, %c0_18], %10 {strides = array<i32>} : memref<12x128xf32, #tpu.memory_space<vmem>>, vector<12x128xf32>,
    return
  }
}

module attributes {stable_mosaic.version = 11 : i64} {
  func.func @_gru_kernel(%arg0: memref<48x201xf32, #tpu.memory_space<vmem>>, %arg1: memref<201x192xf32, #tpu.memory_space<vmem>>, %arg2: memref<64x192xf32, #tpu.memory_space<vmem>>, %arg3: memref<1x192xf32, #tpu.memory_space<vmem>>, %arg4: memref<1x192xf32, #tpu.memory_space<vmem>>, %arg5: memref<8x64xf32, #tpu.memory_space<vmem>>) attributes {dimension_semantics = [], scalar_prefetch = 0 : i64, scratch_operands = 0 : i64, tpu.core_type = #tpu.core_type<tc>} {
    %c0 = arith.constant 0 : index
    %c0_0 = arith.constant 0 : index
    %0 = vector.load %arg0[%c0, %c0_0] : memref<48x201xf32, #tpu.memory_space<vmem>>, vector<48x201xf32>
    %c0_1 = arith.constant 0 : index
    %c0_2 = arith.constant 0 : index
    %1 = vector.load %arg1[%c0_1, %c0_2] : memref<201x192xf32, #tpu.memory_space<vmem>>, vector<201x192xf32>
    %cst = arith.constant dense<0.000000e+00> : vector<48x192xf32>
    %2 = tpu.matmul %0, %1, %cst {dimension_numbers = #tpu.dot_dimension_numbers<[1], [0], [0], [1], [0, 0, 1, 1], [], []>} : vector<48x201xf32>, vector<201x192xf32>, vector<48x192xf32> -> vector<48x192xf32>
    %c0_3 = arith.constant 0 : index
    %c0_4 = arith.constant 0 : index
    %3 = vector.load %arg3[%c0_3, %c0_4] : memref<1x192xf32, #tpu.memory_space<vmem>>, vector<1x192xf32>
    %4 = vector.broadcast %3 : vector<1x192xf32> to vector<48x192xf32>
    %5 = arith.addf %2, %4 : vector<48x192xf32>
    %c0_5 = arith.constant 0 : index
    %c0_6 = arith.constant 0 : index
    %6 = vector.load %arg2[%c0_5, %c0_6] : memref<64x192xf32, #tpu.memory_space<vmem>>, vector<64x192xf32>
    %c0_7 = arith.constant 0 : index
    %c0_8 = arith.constant 0 : index
    %7 = vector.load %arg4[%c0_7, %c0_8] : memref<1x192xf32, #tpu.memory_space<vmem>>, vector<1x192xf32>
    %cst_9 = arith.constant 0.000000e+00 : f32
    %8 = vector.broadcast %cst_9 : f32 to vector<8x64xf32>
    %9 = vector.extract_strided_slice %5 {offsets = [0, 0], sizes = [8, 192], strides = [1, 1]} : vector<48x192xf32> to vector<8x192xf32>
    %cst_10 = arith.constant dense<0.000000e+00> : vector<8x192xf32>
    %10 = tpu.matmul %8, %6, %cst_10 {dimension_numbers = #tpu.dot_dimension_numbers<[1], [0], [0], [1], [0, 0, 1, 1], [], []>} : vector<8x64xf32>, vector<64x192xf32>, vector<8x192xf32> -> vector<8x192xf32>
    %11 = vector.broadcast %7 : vector<1x192xf32> to vector<8x192xf32>
    %12 = arith.addf %10, %11 : vector<8x192xf32>
    %13 = vector.extract_strided_slice %9 {offsets = [0, 0], sizes = [8, 64], strides = [1, 1]} : vector<8x192xf32> to vector<8x64xf32>
    %14 = vector.extract_strided_slice %12 {offsets = [0, 0], sizes = [8, 64], strides = [1, 1]} : vector<8x192xf32> to vector<8x64xf32>
    %15 = arith.addf %13, %14 : vector<8x64xf32>
    %16 = arith.negf %15 : vector<8x64xf32>
    %17 = math.exp %16 : vector<8x64xf32>
    %cst_11 = arith.constant 1.000000e+00 : f32
    %18 = vector.broadcast %cst_11 : f32 to vector<8x64xf32>
    %19 = arith.addf %18, %17 : vector<8x64xf32>
    %20 = arith.divf %18, %19 : vector<8x64xf32>
    %21 = vector.extract_strided_slice %9 {offsets = [0, 64], sizes = [8, 64], strides = [1, 1]} : vector<8x192xf32> to vector<8x64xf32>
    %22 = vector.extract_strided_slice %12 {offsets = [0, 64], sizes = [8, 64], strides = [1, 1]} : vector<8x192xf32> to vector<8x64xf32>
    %23 = arith.addf %21, %22 : vector<8x64xf32>
    %24 = arith.negf %23 : vector<8x64xf32>
    %25 = math.exp %24 : vector<8x64xf32>
    %cst_12 = arith.constant 1.000000e+00 : f32
    %26 = vector.broadcast %cst_12 : f32 to vector<8x64xf32>
    %27 = arith.addf %26, %25 : vector<8x64xf32>
    %28 = arith.divf %26, %27 : vector<8x64xf32>
    %29 = vector.extract_strided_slice %9 {offsets = [0, 128], sizes = [8, 64], strides = [1, 1]} : vector<8x192xf32> to vector<8x64xf32>
    %30 = vector.extract_strided_slice %12 {offsets = [0, 128], sizes = [8, 64], strides = [1, 1]} : vector<8x192xf32> to vector<8x64xf32>
    %31 = arith.mulf %20, %30 : vector<8x64xf32>
    %32 = arith.addf %29, %31 : vector<8x64xf32>
    %33 = math.tanh %32 : vector<8x64xf32>
    %cst_13 = arith.constant 1.000000e+00 : f32
    %34 = vector.broadcast %cst_13 : f32 to vector<8x64xf32>
    %35 = arith.subf %34, %28 : vector<8x64xf32>
    %36 = arith.mulf %35, %33 : vector<8x64xf32>
    %37 = arith.mulf %28, %8 : vector<8x64xf32>
    %38 = arith.addf %36, %37 : vector<8x64xf32>
    %39 = vector.extract_strided_slice %5 {offsets = [8, 0], sizes = [8, 192], strides = [1, 1]} : vector<48x192xf32> to vector<8x192xf32>
    %cst_14 = arith.constant dense<0.000000e+00> : vector<8x192xf32>
    %40 = tpu.matmul %38, %6, %cst_14 {dimension_numbers = #tpu.dot_dimension_numbers<[1], [0], [0], [1], [0, 0, 1, 1], [], []>} : vector<8x64xf32>, vector<64x192xf32>, vector<8x192xf32> -> vector<8x192xf32>
    %41 = vector.broadcast %7 : vector<1x192xf32> to vector<8x192xf32>
    %42 = arith.addf %40, %41 : vector<8x192xf32>
    %43 = vector.extract_strided_slice %39 {offsets = [0, 0], sizes = [8, 64], strides = [1, 1]} : vector<8x192xf32> to vector<8x64xf32>
    %44 = vector.extract_strided_slice %42 {offsets = [0, 0], sizes = [8, 64], strides = [1, 1]} : vector<8x192xf32> to vector<8x64xf32>
    %45 = arith.addf %43, %44 : vector<8x64xf32>
    %46 = arith.negf %45 : vector<8x64xf32>
    %47 = math.exp %46 : vector<8x64xf32>
    %cst_15 = arith.constant 1.000000e+00 : f32
    %48 = vector.broadcast %cst_15 : f32 to vector<8x64xf32>
    %49 = arith.addf %48, %47 : vector<8x64xf32>
    %50 = arith.divf %48, %49 : vector<8x64xf32>
    %51 = vector.extract_strided_slice %39 {offsets = [0, 64], sizes = [8, 64], strides = [1, 1]} : vector<8x192xf32> to vector<8x64xf32>
    %52 = vector.extract_strided_slice %42 {offsets = [0, 64], sizes = [8, 64], strides = [1, 1]} : vector<8x192xf32> to vector<8x64xf32>
    %53 = arith.addf %51, %52 : vector<8x64xf32>
    %54 = arith.negf %53 : vector<8x64xf32>
    %55 = math.exp %54 : vector<8x64xf32>
    %cst_16 = arith.constant 1.000000e+00 : f32
    %56 = vector.broadcast %cst_16 : f32 to vector<8x64xf32>
    %57 = arith.addf %56, %55 : vector<8x64xf32>
    %58 = arith.divf %56, %57 : vector<8x64xf32>
    %59 = vector.extract_strided_slice %39 {offsets = [0, 128], sizes = [8, 64], strides = [1, 1]} : vector<8x192xf32> to vector<8x64xf32>
    %60 = vector.extract_strided_slice %42 {offsets = [0, 128], sizes = [8, 64], strides = [1, 1]} : vector<8x192xf32> to vector<8x64xf32>
    %61 = arith.mulf %50, %60 : vector<8x64xf32>
    %62 = arith.addf %59, %61 : vector<8x64xf32>
    %63 = math.tanh %62 : vector<8x64xf32>
    %cst_17 = arith.constant 1.000000e+00 : f32
    %64 = vector.broadcast %cst_17 : f32 to vector<8x64xf32>
    %65 = arith.subf %64, %58 : vector<8x64xf32>
    %66 = arith.mulf %65, %63 : vector<8x64xf32>
    %67 = arith.mulf %58, %38 : vector<8x64xf32>
    %68 = arith.addf %66, %67 : vector<8x64xf32>
    %69 = vector.extract_strided_slice %5 {offsets = [16, 0], sizes = [8, 192], strides = [1, 1]} : vector<48x192xf32> to vector<8x192xf32>
    %cst_18 = arith.constant dense<0.000000e+00> : vector<8x192xf32>
    %70 = tpu.matmul %68, %6, %cst_18 {dimension_numbers = #tpu.dot_dimension_numbers<[1], [0], [0], [1], [0, 0, 1, 1], [], []>} : vector<8x64xf32>, vector<64x192xf32>, vector<8x192xf32> -> vector<8x192xf32>
    %71 = vector.broadcast %7 : vector<1x192xf32> to vector<8x192xf32>
    %72 = arith.addf %70, %71 : vector<8x192xf32>
    %73 = vector.extract_strided_slice %69 {offsets = [0, 0], sizes = [8, 64], strides = [1, 1]} : vector<8x192xf32> to vector<8x64xf32>
    %74 = vector.extract_strided_slice %72 {offsets = [0, 0], sizes = [8, 64], strides = [1, 1]} : vector<8x192xf32> to vector<8x64xf32>
    %75 = arith.addf %73, %74 : vector<8x64xf32>
    %76 = arith.negf %75 : vector<8x64xf32>
    %77 = math.exp %76 : vector<8x64xf32>
    %cst_19 = arith.constant 1.000000e+00 : f32
    %78 = vector.broadcast %cst_19 : f32 to vector<8x64xf32>
    %79 = arith.addf %78, %77 : vector<8x64xf32>
    %80 = arith.divf %78, %79 : vector<8x64xf32>
    %81 = vector.extract_strided_slice %69 {offsets = [0, 64], sizes = [8, 64], strides = [1, 1]} : vector<8x192xf32> to vector<8x64xf32>
    %82 = vector.extract_strided_slice %72 {offsets = [0, 64], sizes = [8, 64], strides = [1, 1]} : vector<8x192xf32> to vector<8x64xf32>
    %83 = arith.addf %81, %82 : vector<8x64xf32>
    %84 = arith.negf %83 : vector<8x64xf32>
    %85 = math.exp %84 : vector<8x64xf32>
    %cst_20 = arith.constant 1.000000e+00 : f32
    %86 = vector.broadcast %cst_20 : f32 to vector<8x64xf32>
    %87 = arith.addf %86, %85 : vector<8x64xf32>
    %88 = arith.divf %86, %87 : vector<8x64xf32>
    %89 = vector.extract_strided_slice %69 {offsets = [0, 128], sizes = [8, 64], strides = [1, 1]} : vector<8x192xf32> to vector<8x64xf32>
    %90 = vector.extract_strided_slice %72 {offsets = [0, 128], sizes = [8, 64], strides = [1, 1]} : vector<8x192xf32> to vector<8x64xf32>
    %91 = arith.mulf %80, %90 : vector<8x64xf32>
    %92 = arith.addf %89, %91 : vector<8x64xf32>
    %93 = math.tanh %92 : vector<8x64xf32>
    %cst_21 = arith.constant 1.000000e+00 : f32
    %94 = vector.broadcast %cst_21 : f32 to vector<8x64xf32>
    %95 = arith.subf %94, %88 : vector<8x64xf32>
    %96 = arith.mulf %95, %93 : vector<8x64xf32>
    %97 = arith.mulf %88, %68 : vector<8x64xf32>
    %98 = arith.addf %96, %97 : vector<8x64xf32>
    %99 = vector.extract_strided_slice %5 {offsets = [24, 0], sizes = [8, 192], strides = [1, 1]} : vector<48x192xf32> to vector<8x192xf32>
    %cst_22 = arith.constant dense<0.000000e+00> : vector<8x192xf32>
    %100 = tpu.matmul %98, %6, %cst_22 {dimension_numbers = #tpu.dot_dimension_numbers<[1], [0], [0], [1], [0, 0, 1, 1], [], []>} : vector<8x64xf32>, vector<64x192xf32>, vector<8x192xf32> -> vector<8x192xf32>
    %101 = vector.broadcast %7 : vector<1x192xf32> to vector<8x192xf32>
    %102 = arith.addf %100, %101 : vector<8x192xf32>
    %103 = vector.extract_strided_slice %99 {offsets = [0, 0], sizes = [8, 64], strides = [1, 1]} : vector<8x192xf32> to vector<8x64xf32>
    %104 = vector.extract_strided_slice %102 {offsets = [0, 0], sizes = [8, 64], strides = [1, 1]} : vector<8x192xf32> to vector<8x64xf32>
    %105 = arith.addf %103, %104 : vector<8x64xf32>
    %106 = arith.negf %105 : vector<8x64xf32>
    %107 = math.exp %106 : vector<8x64xf32>
    %cst_23 = arith.constant 1.000000e+00 : f32
    %108 = vector.broadcast %cst_23 : f32 to vector<8x64xf32>
    %109 = arith.addf %108, %107 : vector<8x64xf32>
    %110 = arith.divf %108, %109 : vector<8x64xf32>
    %111 = vector.extract_strided_slice %99 {offsets = [0, 64], sizes = [8, 64], strides = [1, 1]} : vector<8x192xf32> to vector<8x64xf32>
    %112 = vector.extract_strided_slice %102 {offsets = [0, 64], sizes = [8, 64], strides = [1, 1]} : vector<8x192xf32> to vector<8x64xf32>
    %113 = arith.addf %111, %112 : vector<8x64xf32>
    %114 = arith.negf %113 : vector<8x64xf32>
    %115 = math.exp %114 : vector<8x64xf32>
    %cst_24 = arith.constant 1.000000e+00 : f32
    %116 = vector.broadcast %cst_24 : f32 to vector<8x64xf32>
    %117 = arith.addf %116, %115 : vector<8x64xf32>
    %118 = arith.divf %116, %117 : vector<8x64xf32>
    %119 = vector.extract_strided_slice %99 {offsets = [0, 128], sizes = [8, 64], strides = [1, 1]} : vector<8x192xf32> to vector<8x64xf32>
    %120 = vector.extract_strided_slice %102 {offsets = [0, 128], sizes = [8, 64], strides = [1, 1]} : vector<8x192xf32> to vector<8x64xf32>
    %121 = arith.mulf %110, %120 : vector<8x64xf32>
    %122 = arith.addf %119, %121 : vector<8x64xf32>
    %123 = math.tanh %122 : vector<8x64xf32>
    %cst_25 = arith.constant 1.000000e+00 : f32
    %124 = vector.broadcast %cst_25 : f32 to vector<8x64xf32>
    %125 = arith.subf %124, %118 : vector<8x64xf32>
    %126 = arith.mulf %125, %123 : vector<8x64xf32>
    %127 = arith.mulf %118, %98 : vector<8x64xf32>
    %128 = arith.addf %126, %127 : vector<8x64xf32>
    %129 = vector.extract_strided_slice %5 {offsets = [32, 0], sizes = [8, 192], strides = [1, 1]} : vector<48x192xf32> to vector<8x192xf32>
    %cst_26 = arith.constant dense<0.000000e+00> : vector<8x192xf32>
    %130 = tpu.matmul %128, %6, %cst_26 {dimension_numbers = #tpu.dot_dimension_numbers<[1], [0], [0], [1], [0, 0, 1, 1], [], []>} : vector<8x64xf32>, vector<64x192xf32>, vector<8x192xf32> -> vector<8x192xf32>
    %131 = vector.broadcast %7 : vector<1x192xf32> to vector<8x192xf32>
    %132 = arith.addf %130, %131 : vector<8x192xf32>
    %133 = vector.extract_strided_slice %129 {offsets = [0, 0], sizes = [8, 64], strides = [1, 1]} : vector<8x192xf32> to vector<8x64xf32>
    %134 = vector.extract_strided_slice %132 {offsets = [0, 0], sizes = [8, 64], strides = [1, 1]} : vector<8x192xf32> to vector<8x64xf32>
    %135 = arith.addf %133, %134 : vector<8x64xf32>
    %136 = arith.negf %135 : vector<8x64xf32>
    %137 = math.exp %136 : vector<8x64xf32>
    %cst_27 = arith.constant 1.000000e+00 : f32
    %138 = vector.broadcast %cst_27 : f32 to vector<8x64xf32>
    %139 = arith.addf %138, %137 : vector<8x64xf32>
    %140 = arith.divf %138, %139 : vector<8x64xf32>
    %141 = vector.extract_strided_slice %129 {offsets = [0, 64], sizes = [8, 64], strides = [1, 1]} : vector<8x192xf32> to vector<8x64xf32>
    %142 = vector.extract_strided_slice %132 {offsets = [0, 64], sizes = [8, 64], strides = [1, 1]} : vector<8x192xf32> to vector<8x64xf32>
    %143 = arith.addf %141, %142 : vector<8x64xf32>
    %144 = arith.negf %143 : vector<8x64xf32>
    %145 = math.exp %144 : vector<8x64xf32>
    %cst_28 = arith.constant 1.000000e+00 : f32
    %146 = vector.broadcast %cst_28 : f32 to vector<8x64xf32>
    %147 = arith.addf %146, %145 : vector<8x64xf32>
    %148 = arith.divf %146, %147 : vector<8x64xf32>
    %149 = vector.extract_strided_slice %129 {offsets = [0, 128], sizes = [8, 64], strides = [1, 1]} : vector<8x192xf32> to vector<8x64xf32>
    %150 = vector.extract_strided_slice %132 {offsets = [0, 128], sizes = [8, 64], strides = [1, 1]} : vector<8x192xf32> to vector<8x64xf32>
    %151 = arith.mulf %140, %150 : vector<8x64xf32>
    %152 = arith.addf %149, %151 : vector<8x64xf32>
    %153 = math.tanh %152 : vector<8x64xf32>
    %cst_29 = arith.constant 1.000000e+00 : f32
    %154 = vector.broadcast %cst_29 : f32 to vector<8x64xf32>
    %155 = arith.subf %154, %148 : vector<8x64xf32>
    %156 = arith.mulf %155, %153 : vector<8x64xf32>
    %157 = arith.mulf %148, %128 : vector<8x64xf32>
    %158 = arith.addf %156, %157 : vector<8x64xf32>
    %159 = vector.extract_strided_slice %5 {offsets = [40, 0], sizes = [8, 192], strides = [1, 1]} : vector<48x192xf32> to vector<8x192xf32>
    %cst_30 = arith.constant dense<0.000000e+00> : vector<8x192xf32>
    %160 = tpu.matmul %158, %6, %cst_30 {dimension_numbers = #tpu.dot_dimension_numbers<[1], [0], [0], [1], [0, 0, 1, 1], [], []>} : vector<8x64xf32>, vector<64x192xf32>, vector<8x192xf32> -> vector<8x192xf32>
    %161 = vector.broadcast %7 : vector<1x192xf32> to vector<8x192xf32>
    %162 = arith.addf %160, %161 : vector<8x192xf32>
    %163 = vector.extract_strided_slice %159 {offsets = [0, 0], sizes = [8, 64], strides = [1, 1]} : vector<8x192xf32> to vector<8x64xf32>
    %164 = vector.extract_strided_slice %162 {offsets = [0, 0], sizes = [8, 64], strides = [1, 1]} : vector<8x192xf32> to vector<8x64xf32>
    %165 = arith.addf %163, %164 : vector<8x64xf32>
    %166 = arith.negf %165 : vector<8x64xf32>
    %167 = math.exp %166 : vector<8x64xf32>
    %cst_31 = arith.constant 1.000000e+00 : f32
    %168 = vector.broadcast %cst_31 : f32 to vector<8x64xf32>
    %169 = arith.addf %168, %167 : vector<8x64xf32>
    %170 = arith.divf %168, %169 : vector<8x64xf32>
    %171 = vector.extract_strided_slice %159 {offsets = [0, 64], sizes = [8, 64], strides = [1, 1]} : vector<8x192xf32> to vector<8x64xf32>
    %172 = vector.extract_strided_slice %162 {offsets = [0, 64], sizes = [8, 64], strides = [1, 1]} : vector<8x192xf32> to vector<8x64xf32>
    %173 = arith.addf %171, %172 : vector<8x64xf32>
    %174 = arith.negf %173 : vector<8x64xf32>
    %175 = math.exp %174 : vector<8x64xf32>
    %cst_32 = arith.constant 1.000000e+00 : f32
    %176 = vector.broadcast %cst_32 : f32 to vector<8x64xf32>
    %177 = arith.addf %176, %175 : vector<8x64xf32>
    %178 = arith.divf %176, %177 : vector<8x64xf32>
    %179 = vector.extract_strided_slice %159 {offsets = [0, 128], sizes = [8, 64], strides = [1, 1]} : vector<8x192xf32> to vector<8x64xf32>
    %180 = vector.extract_strided_slice %162 {offsets = [0, 128], sizes = [8, 64], strides = [1, 1]} : vector<8x192xf32> to vector<8x64xf32>
    %181 = arith.mulf %170, %180 : vector<8x64xf32>
    %182 = arith.addf %179, %181 : vector<8x64xf32>
    %183 = math.tanh %182 : vector<8x64xf32>
    %cst_33 = arith.constant 1.000000e+00 : f32
    %184 = vector.broadcast %cst_33 : f32 to vector<8x64xf32>
    %185 = arith.subf %184, %178 : vector<8x64xf32>
    %186 = arith.mulf %185, %183 : vector<8x64xf32>
    %187 = arith.mulf %178, %158 : vector<8x64xf32>
    %188 = arith.addf %186, %187 : vector<8x64xf32>
    %c0_34 = arith.constant 0 : index
    %c0_35 = arith.constant 0 : index
    %189 = vector.load %arg5[%c0_34, %c0_35] : memref<8x64xf32, #tpu.memory_space<vmem>>, vector<8x64xf32>
    tpu.vector_store %arg5[%c0_34, %c0_35], %188 {strides = array<i32>} : memref<8x64xf32, #tpu.memory_space<vmem>>, vector<8x64xf32>,
    return
  }
}

module attributes {stable_mosaic.version = 11 : i64} {
  func.func @_attn_project_kernel(%arg0: memref<16x49xf32, #tpu.memory_space<vmem>>, %arg1: memref<2x49xf32, #tpu.memory_space<vmem>>, %arg2: memref<16x73xf32, #tpu.memory_space<vmem>>, %arg3: memref<49x128xf32, #tpu.memory_space<vmem>>, %arg4: memref<49x128xf32, #tpu.memory_space<vmem>>, %arg5: memref<73x128xf32, #tpu.memory_space<vmem>>, %arg6: memref<16x128xf32, #tpu.memory_space<vmem>>, %arg7: memref<2x128xf32, #tpu.memory_space<vmem>>, %arg8: memref<16x128xf32, #tpu.memory_space<vmem>>) attributes {dimension_semantics = [], scalar_prefetch = 0 : i64, scratch_operands = 0 : i64, tpu.core_type = #tpu.core_type<tc>} {
    %c0 = arith.constant 0 : index
    %c0_0 = arith.constant 0 : index
    %0 = vector.load %arg0[%c0, %c0_0] : memref<16x49xf32, #tpu.memory_space<vmem>>, vector<16x49xf32>
    %c0_1 = arith.constant 0 : index
    %c0_2 = arith.constant 0 : index
    %1 = vector.load %arg3[%c0_1, %c0_2] : memref<49x128xf32, #tpu.memory_space<vmem>>, vector<49x128xf32>
    %cst = arith.constant dense<0.000000e+00> : vector<16x128xf32>
    %2 = tpu.matmul %0, %1, %cst {dimension_numbers = #tpu.dot_dimension_numbers<[1], [0], [0], [1], [0, 0, 1, 1], [], []>} : vector<16x49xf32>, vector<49x128xf32>, vector<16x128xf32> -> vector<16x128xf32>
    %c0_3 = arith.constant 0 : index
    %c0_4 = arith.constant 0 : index
    %3 = vector.load %arg6[%c0_3, %c0_4] : memref<16x128xf32, #tpu.memory_space<vmem>>, vector<16x128xf32>
    tpu.vector_store %arg6[%c0_3, %c0_4], %2 {strides = array<i32>} : memref<16x128xf32, #tpu.memory_space<vmem>>, vector<16x128xf32>,
    %c0_5 = arith.constant 0 : index
    %c0_6 = arith.constant 0 : index
    %4 = vector.load %arg1[%c0_5, %c0_6] : memref<2x49xf32, #tpu.memory_space<vmem>>, vector<2x49xf32>
    %c0_7 = arith.constant 0 : index
    %c0_8 = arith.constant 0 : index
    %5 = vector.load %arg4[%c0_7, %c0_8] : memref<49x128xf32, #tpu.memory_space<vmem>>, vector<49x128xf32>
    %cst_9 = arith.constant dense<0.000000e+00> : vector<2x128xf32>
    %6 = tpu.matmul %4, %5, %cst_9 {dimension_numbers = #tpu.dot_dimension_numbers<[1], [0], [0], [1], [0, 0, 1, 1], [], []>} : vector<2x49xf32>, vector<49x128xf32>, vector<2x128xf32> -> vector<2x128xf32>
    %c0_10 = arith.constant 0 : index
    %c0_11 = arith.constant 0 : index
    %7 = vector.load %arg7[%c0_10, %c0_11] : memref<2x128xf32, #tpu.memory_space<vmem>>, vector<2x128xf32>
    tpu.vector_store %arg7[%c0_10, %c0_11], %6 {strides = array<i32>} : memref<2x128xf32, #tpu.memory_space<vmem>>, vector<2x128xf32>,
    %c0_12 = arith.constant 0 : index
    %c0_13 = arith.constant 0 : index
    %8 = vector.load %arg2[%c0_12, %c0_13] : memref<16x73xf32, #tpu.memory_space<vmem>>, vector<16x73xf32>
    %c0_14 = arith.constant 0 : index
    %c0_15 = arith.constant 0 : index
    %9 = vector.load %arg5[%c0_14, %c0_15] : memref<73x128xf32, #tpu.memory_space<vmem>>, vector<73x128xf32>
    %cst_16 = arith.constant dense<0.000000e+00> : vector<16x128xf32>
    %10 = tpu.matmul %8, %9, %cst_16 {dimension_numbers = #tpu.dot_dimension_numbers<[1], [0], [0], [1], [0, 0, 1, 1], [], []>} : vector<16x73xf32>, vector<73x128xf32>, vector<16x128xf32> -> vector<16x128xf32>
    %c0_17 = arith.constant 0 : index
    %c0_18 = arith.constant 0 : index
    %11 = vector.load %arg8[%c0_17, %c0_18] : memref<16x128xf32, #tpu.memory_space<vmem>>, vector<16x128xf32>
    tpu.vector_store %arg8[%c0_17, %c0_18], %10 {strides = array<i32>} : memref<16x128xf32, #tpu.memory_space<vmem>>, vector<16x128xf32>,
    return
  }
}

module attributes {stable_mosaic.version = 11 : i64} {
  func.func @_attn_core_ln_kernel(%arg0: memref<2x8x128xf32, #tpu.memory_space<vmem>>, %arg1: memref<2x128xf32, #tpu.memory_space<vmem>>, %arg2: memref<2x8x128xf32, #tpu.memory_space<vmem>>, %arg3: memref<1x128xf32, #tpu.memory_space<vmem>>, %arg4: memref<1x128xf32, #tpu.memory_space<vmem>>, %arg5: memref<2x8x128xf32, #tpu.memory_space<vmem>>) attributes {dimension_semantics = [], scalar_prefetch = 0 : i64, scratch_operands = 0 : i64, tpu.core_type = #tpu.core_type<tc>} {
    %c0 = arith.constant 0 : index
    %c0_0 = arith.constant 0 : index
    %c0_1 = arith.constant 0 : index
    %0 = vector.load %arg0[%c0, %c0_0, %c0_1] : memref<2x8x128xf32, #tpu.memory_space<vmem>>, vector<2x8x128xf32>
    %c0_2 = arith.constant 0 : index
    %c0_3 = arith.constant 0 : index
    %1 = vector.load %arg1[%c0_2, %c0_3] : memref<2x128xf32, #tpu.memory_space<vmem>>, vector<2x128xf32>
    %c0_4 = arith.constant 0 : index
    %c0_5 = arith.constant 0 : index
    %c0_6 = arith.constant 0 : index
    %2 = vector.load %arg2[%c0_4, %c0_5, %c0_6] : memref<2x8x128xf32, #tpu.memory_space<vmem>>, vector<2x8x128xf32>
    %3 = vector.shape_cast %1 : vector<2x128xf32> to vector<2x1x128xf32>
    %4 = vector.broadcast %3 : vector<2x1x128xf32> to vector<2x8x128xf32>
    %5 = arith.mulf %0, %4 : vector<2x8x128xf32>
    %6 = vector.extract_strided_slice %5 {offsets = [0, 0, 0], sizes = [2, 8, 32], strides = [1, 1, 1]} : vector<2x8x128xf32> to vector<2x8x32xf32>
    %cst = arith.constant dense<0.000000e+00> : vector<2x8xf32>
    %7 = vector.multi_reduction <add>, %6, %cst [2] : vector<2x8x32xf32> to vector<2x8xf32>
    %cst_7 = arith.constant 5.65685415 : f32
    %8 = vector.broadcast %cst_7 : f32 to vector<2x8xf32>
    %9 = arith.divf %7, %8 : vector<2x8xf32>
    %cst_8 = arith.constant dense<0xFF800000> : vector<2xf32>
    %10 = vector.multi_reduction <maximumf>, %9, %cst_8 [1] : vector<2x8xf32> to vector<2xf32>
    %11 = vector.shape_cast %10 : vector<2xf32> to vector<2x1xf32>
    %12 = vector.broadcast %11 : vector<2x1xf32> to vector<2x8xf32>
    %13 = arith.subf %9, %12 : vector<2x8xf32>
    %14 = math.exp %13 : vector<2x8xf32>
    %cst_9 = arith.constant dense<0.000000e+00> : vector<2xf32>
    %15 = vector.multi_reduction <add>, %14, %cst_9 [1] : vector<2x8xf32> to vector<2xf32>
    %16 = vector.shape_cast %15 : vector<2xf32> to vector<2x1xf32>
    %17 = vector.broadcast %16 : vector<2x1xf32> to vector<2x8xf32>
    %18 = arith.divf %14, %17 : vector<2x8xf32>
    %19 = vector.shape_cast %18 : vector<2x8xf32> to vector<2x8x1xf32>
    %20 = vector.extract_strided_slice %2 {offsets = [0, 0, 0], sizes = [2, 8, 32], strides = [1, 1, 1]} : vector<2x8x128xf32> to vector<2x8x32xf32>
    %21 = vector.broadcast %19 : vector<2x8x1xf32> to vector<2x8x32xf32>
    %22 = arith.mulf %21, %20 : vector<2x8x32xf32>
    %23 = vector.extract_strided_slice %5 {offsets = [0, 0, 32], sizes = [2, 8, 32], strides = [1, 1, 1]} : vector<2x8x128xf32> to vector<2x8x32xf32>
    %cst_10 = arith.constant dense<0.000000e+00> : vector<2x8xf32>
    %24 = vector.multi_reduction <add>, %23, %cst_10 [2] : vector<2x8x32xf32> to vector<2x8xf32>
    %cst_11 = arith.constant 5.65685415 : f32
    %25 = vector.broadcast %cst_11 : f32 to vector<2x8xf32>
    %26 = arith.divf %24, %25 : vector<2x8xf32>
    %cst_12 = arith.constant dense<0xFF800000> : vector<2xf32>
    %27 = vector.multi_reduction <maximumf>, %26, %cst_12 [1] : vector<2x8xf32> to vector<2xf32>
    %28 = vector.shape_cast %27 : vector<2xf32> to vector<2x1xf32>
    %29 = vector.broadcast %28 : vector<2x1xf32> to vector<2x8xf32>
    %30 = arith.subf %26, %29 : vector<2x8xf32>
    %31 = math.exp %30 : vector<2x8xf32>
    %cst_13 = arith.constant dense<0.000000e+00> : vector<2xf32>
    %32 = vector.multi_reduction <add>, %31, %cst_13 [1] : vector<2x8xf32> to vector<2xf32>
    %33 = vector.shape_cast %32 : vector<2xf32> to vector<2x1xf32>
    %34 = vector.broadcast %33 : vector<2x1xf32> to vector<2x8xf32>
    %35 = arith.divf %31, %34 : vector<2x8xf32>
    %36 = vector.shape_cast %35 : vector<2x8xf32> to vector<2x8x1xf32>
    %37 = vector.extract_strided_slice %2 {offsets = [0, 0, 32], sizes = [2, 8, 32], strides = [1, 1, 1]} : vector<2x8x128xf32> to vector<2x8x32xf32>
    %38 = vector.broadcast %36 : vector<2x8x1xf32> to vector<2x8x32xf32>
    %39 = arith.mulf %38, %37 : vector<2x8x32xf32>
    %40 = vector.extract_strided_slice %5 {offsets = [0, 0, 64], sizes = [2, 8, 32], strides = [1, 1, 1]} : vector<2x8x128xf32> to vector<2x8x32xf32>
    %cst_14 = arith.constant dense<0.000000e+00> : vector<2x8xf32>
    %41 = vector.multi_reduction <add>, %40, %cst_14 [2] : vector<2x8x32xf32> to vector<2x8xf32>
    %cst_15 = arith.constant 5.65685415 : f32
    %42 = vector.broadcast %cst_15 : f32 to vector<2x8xf32>
    %43 = arith.divf %41, %42 : vector<2x8xf32>
    %cst_16 = arith.constant dense<0xFF800000> : vector<2xf32>
    %44 = vector.multi_reduction <maximumf>, %43, %cst_16 [1] : vector<2x8xf32> to vector<2xf32>
    %45 = vector.shape_cast %44 : vector<2xf32> to vector<2x1xf32>
    %46 = vector.broadcast %45 : vector<2x1xf32> to vector<2x8xf32>
    %47 = arith.subf %43, %46 : vector<2x8xf32>
    %48 = math.exp %47 : vector<2x8xf32>
    %cst_17 = arith.constant dense<0.000000e+00> : vector<2xf32>
    %49 = vector.multi_reduction <add>, %48, %cst_17 [1] : vector<2x8xf32> to vector<2xf32>
    %50 = vector.shape_cast %49 : vector<2xf32> to vector<2x1xf32>
    %51 = vector.broadcast %50 : vector<2x1xf32> to vector<2x8xf32>
    %52 = arith.divf %48, %51 : vector<2x8xf32>
    %53 = vector.shape_cast %52 : vector<2x8xf32> to vector<2x8x1xf32>
    %54 = vector.extract_strided_slice %2 {offsets = [0, 0, 64], sizes = [2, 8, 32], strides = [1, 1, 1]} : vector<2x8x128xf32> to vector<2x8x32xf32>
    %55 = vector.broadcast %53 : vector<2x8x1xf32> to vector<2x8x32xf32>
    %56 = arith.mulf %55, %54 : vector<2x8x32xf32>
    %57 = vector.extract_strided_slice %5 {offsets = [0, 0, 96], sizes = [2, 8, 32], strides = [1, 1, 1]} : vector<2x8x128xf32> to vector<2x8x32xf32>
    %cst_18 = arith.constant dense<0.000000e+00> : vector<2x8xf32>
    %58 = vector.multi_reduction <add>, %57, %cst_18 [2] : vector<2x8x32xf32> to vector<2x8xf32>
    %cst_19 = arith.constant 5.65685415 : f32
    %59 = vector.broadcast %cst_19 : f32 to vector<2x8xf32>
    %60 = arith.divf %58, %59 : vector<2x8xf32>
    %cst_20 = arith.constant dense<0xFF800000> : vector<2xf32>
    %61 = vector.multi_reduction <maximumf>, %60, %cst_20 [1] : vector<2x8xf32> to vector<2xf32>
    %62 = vector.shape_cast %61 : vector<2xf32> to vector<2x1xf32>
    %63 = vector.broadcast %62 : vector<2x1xf32> to vector<2x8xf32>
    %64 = arith.subf %60, %63 : vector<2x8xf32>
    %65 = math.exp %64 : vector<2x8xf32>
    %cst_21 = arith.constant dense<0.000000e+00> : vector<2xf32>
    %66 = vector.multi_reduction <add>, %65, %cst_21 [1] : vector<2x8xf32> to vector<2xf32>
    %67 = vector.shape_cast %66 : vector<2xf32> to vector<2x1xf32>
    %68 = vector.broadcast %67 : vector<2x1xf32> to vector<2x8xf32>
    %69 = arith.divf %65, %68 : vector<2x8xf32>
    %70 = vector.shape_cast %69 : vector<2x8xf32> to vector<2x8x1xf32>
    %71 = vector.extract_strided_slice %2 {offsets = [0, 0, 96], sizes = [2, 8, 32], strides = [1, 1, 1]} : vector<2x8x128xf32> to vector<2x8x32xf32>
    %72 = vector.broadcast %70 : vector<2x8x1xf32> to vector<2x8x32xf32>
    %73 = arith.mulf %72, %71 : vector<2x8x32xf32>
    %74 = tpu.concatenate %22, %39, %56, %73 in 2 : vector<2x8x32xf32>, vector<2x8x32xf32>, vector<2x8x32xf32>, vector<2x8x32xf32> -> vector<2x8x128xf32>
    %cst_22 = arith.constant dense<0.000000e+00> : vector<2x8xf32>
    %75 = vector.multi_reduction <add>, %74, %cst_22 [2] : vector<2x8x128xf32> to vector<2x8xf32>
    %76 = vector.shape_cast %75 : vector<2x8xf32> to vector<2x8x1xf32>
    %cst_23 = arith.constant 1.280000e+02 : f32
    %77 = vector.broadcast %cst_23 : f32 to vector<2x8x1xf32>
    %78 = arith.divf %76, %77 : vector<2x8x1xf32>
    %79 = vector.broadcast %78 : vector<2x8x1xf32> to vector<2x8x128xf32>
    %80 = arith.subf %74, %79 : vector<2x8x128xf32>
    %81 = arith.mulf %80, %80 : vector<2x8x128xf32>
    %cst_24 = arith.constant dense<0.000000e+00> : vector<2x8xf32>
    %82 = vector.multi_reduction <add>, %81, %cst_24 [2] : vector<2x8x128xf32> to vector<2x8xf32>
    %83 = vector.shape_cast %82 : vector<2x8xf32> to vector<2x8x1xf32>
    %cst_25 = arith.constant 1.280000e+02 : f32
    %84 = vector.broadcast %cst_25 : f32 to vector<2x8x1xf32>
    %85 = arith.divf %83, %84 : vector<2x8x1xf32>
    %cst_26 = arith.constant 9.99999974E-6 : f32
    %86 = vector.broadcast %cst_26 : f32 to vector<2x8x1xf32>
    %87 = arith.addf %85, %86 : vector<2x8x1xf32>
    %88 = math.rsqrt %87 : vector<2x8x1xf32>
    %89 = vector.broadcast %88 : vector<2x8x1xf32> to vector<2x8x128xf32>
    %90 = arith.mulf %80, %89 : vector<2x8x128xf32>
    %c0_27 = arith.constant 0 : index
    %c0_28 = arith.constant 0 : index
    %91 = vector.load %arg3[%c0_27, %c0_28] : memref<1x128xf32, #tpu.memory_space<vmem>>, vector<1x128xf32>
    %92 = vector.shape_cast %91 : vector<1x128xf32> to vector<1x1x128xf32>
    %93 = vector.broadcast %92 : vector<1x1x128xf32> to vector<2x8x128xf32>
    %94 = arith.mulf %90, %93 : vector<2x8x128xf32>
    %c0_29 = arith.constant 0 : index
    %c0_30 = arith.constant 0 : index
    %95 = vector.load %arg4[%c0_29, %c0_30] : memref<1x128xf32, #tpu.memory_space<vmem>>, vector<1x128xf32>
    %96 = vector.shape_cast %95 : vector<1x128xf32> to vector<1x1x128xf32>
    %97 = vector.broadcast %96 : vector<1x1x128xf32> to vector<2x8x128xf32>
    %98 = arith.addf %94, %97 : vector<2x8x128xf32>
    %c0_31 = arith.constant 0 : index
    %c0_32 = arith.constant 0 : index
    %c0_33 = arith.constant 0 : index
    %99 = vector.load %arg5[%c0_31, %c0_32, %c0_33] : memref<2x8x128xf32, #tpu.memory_space<vmem>>, vector<2x8x128xf32>
    tpu.vector_store %arg5[%c0_31, %c0_32, %c0_33], %98 {strides = array<i32>} : memref<2x8x128xf32, #tpu.memory_space<vmem>>, vector<2x8x128xf32>,
    return
  }
}

module attributes {stable_mosaic.version = 11 : i64} {
  func.func @_gru_kernel(%arg0: memref<64x201xf32, #tpu.memory_space<vmem>>, %arg1: memref<201x192xf32, #tpu.memory_space<vmem>>, %arg2: memref<64x192xf32, #tpu.memory_space<vmem>>, %arg3: memref<1x192xf32, #tpu.memory_space<vmem>>, %arg4: memref<1x192xf32, #tpu.memory_space<vmem>>, %arg5: memref<8x64xf32, #tpu.memory_space<vmem>>) attributes {dimension_semantics = [], scalar_prefetch = 0 : i64, scratch_operands = 0 : i64, tpu.core_type = #tpu.core_type<tc>} {
    %c0 = arith.constant 0 : index
    %c0_0 = arith.constant 0 : index
    %0 = vector.load %arg0[%c0, %c0_0] : memref<64x201xf32, #tpu.memory_space<vmem>>, vector<64x201xf32>
    %c0_1 = arith.constant 0 : index
    %c0_2 = arith.constant 0 : index
    %1 = vector.load %arg1[%c0_1, %c0_2] : memref<201x192xf32, #tpu.memory_space<vmem>>, vector<201x192xf32>
    %cst = arith.constant dense<0.000000e+00> : vector<64x192xf32>
    %2 = tpu.matmul %0, %1, %cst {dimension_numbers = #tpu.dot_dimension_numbers<[1], [0], [0], [1], [0, 0, 1, 1], [], []>} : vector<64x201xf32>, vector<201x192xf32>, vector<64x192xf32> -> vector<64x192xf32>
    %c0_3 = arith.constant 0 : index
    %c0_4 = arith.constant 0 : index
    %3 = vector.load %arg3[%c0_3, %c0_4] : memref<1x192xf32, #tpu.memory_space<vmem>>, vector<1x192xf32>
    %4 = vector.broadcast %3 : vector<1x192xf32> to vector<64x192xf32>
    %5 = arith.addf %2, %4 : vector<64x192xf32>
    %c0_5 = arith.constant 0 : index
    %c0_6 = arith.constant 0 : index
    %6 = vector.load %arg2[%c0_5, %c0_6] : memref<64x192xf32, #tpu.memory_space<vmem>>, vector<64x192xf32>
    %c0_7 = arith.constant 0 : index
    %c0_8 = arith.constant 0 : index
    %7 = vector.load %arg4[%c0_7, %c0_8] : memref<1x192xf32, #tpu.memory_space<vmem>>, vector<1x192xf32>
    %cst_9 = arith.constant 0.000000e+00 : f32
    %8 = vector.broadcast %cst_9 : f32 to vector<8x64xf32>
    %9 = vector.extract_strided_slice %5 {offsets = [0, 0], sizes = [8, 192], strides = [1, 1]} : vector<64x192xf32> to vector<8x192xf32>
    %cst_10 = arith.constant dense<0.000000e+00> : vector<8x192xf32>
    %10 = tpu.matmul %8, %6, %cst_10 {dimension_numbers = #tpu.dot_dimension_numbers<[1], [0], [0], [1], [0, 0, 1, 1], [], []>} : vector<8x64xf32>, vector<64x192xf32>, vector<8x192xf32> -> vector<8x192xf32>
    %11 = vector.broadcast %7 : vector<1x192xf32> to vector<8x192xf32>
    %12 = arith.addf %10, %11 : vector<8x192xf32>
    %13 = vector.extract_strided_slice %9 {offsets = [0, 0], sizes = [8, 64], strides = [1, 1]} : vector<8x192xf32> to vector<8x64xf32>
    %14 = vector.extract_strided_slice %12 {offsets = [0, 0], sizes = [8, 64], strides = [1, 1]} : vector<8x192xf32> to vector<8x64xf32>
    %15 = arith.addf %13, %14 : vector<8x64xf32>
    %16 = arith.negf %15 : vector<8x64xf32>
    %17 = math.exp %16 : vector<8x64xf32>
    %cst_11 = arith.constant 1.000000e+00 : f32
    %18 = vector.broadcast %cst_11 : f32 to vector<8x64xf32>
    %19 = arith.addf %18, %17 : vector<8x64xf32>
    %20 = arith.divf %18, %19 : vector<8x64xf32>
    %21 = vector.extract_strided_slice %9 {offsets = [0, 64], sizes = [8, 64], strides = [1, 1]} : vector<8x192xf32> to vector<8x64xf32>
    %22 = vector.extract_strided_slice %12 {offsets = [0, 64], sizes = [8, 64], strides = [1, 1]} : vector<8x192xf32> to vector<8x64xf32>
    %23 = arith.addf %21, %22 : vector<8x64xf32>
    %24 = arith.negf %23 : vector<8x64xf32>
    %25 = math.exp %24 : vector<8x64xf32>
    %cst_12 = arith.constant 1.000000e+00 : f32
    %26 = vector.broadcast %cst_12 : f32 to vector<8x64xf32>
    %27 = arith.addf %26, %25 : vector<8x64xf32>
    %28 = arith.divf %26, %27 : vector<8x64xf32>
    %29 = vector.extract_strided_slice %9 {offsets = [0, 128], sizes = [8, 64], strides = [1, 1]} : vector<8x192xf32> to vector<8x64xf32>
    %30 = vector.extract_strided_slice %12 {offsets = [0, 128], sizes = [8, 64], strides = [1, 1]} : vector<8x192xf32> to vector<8x64xf32>
    %31 = arith.mulf %20, %30 : vector<8x64xf32>
    %32 = arith.addf %29, %31 : vector<8x64xf32>
    %33 = math.tanh %32 : vector<8x64xf32>
    %cst_13 = arith.constant 1.000000e+00 : f32
    %34 = vector.broadcast %cst_13 : f32 to vector<8x64xf32>
    %35 = arith.subf %34, %28 : vector<8x64xf32>
    %36 = arith.mulf %35, %33 : vector<8x64xf32>
    %37 = arith.mulf %28, %8 : vector<8x64xf32>
    %38 = arith.addf %36, %37 : vector<8x64xf32>
    %39 = vector.extract_strided_slice %5 {offsets = [8, 0], sizes = [8, 192], strides = [1, 1]} : vector<64x192xf32> to vector<8x192xf32>
    %cst_14 = arith.constant dense<0.000000e+00> : vector<8x192xf32>
    %40 = tpu.matmul %38, %6, %cst_14 {dimension_numbers = #tpu.dot_dimension_numbers<[1], [0], [0], [1], [0, 0, 1, 1], [], []>} : vector<8x64xf32>, vector<64x192xf32>, vector<8x192xf32> -> vector<8x192xf32>
    %41 = vector.broadcast %7 : vector<1x192xf32> to vector<8x192xf32>
    %42 = arith.addf %40, %41 : vector<8x192xf32>
    %43 = vector.extract_strided_slice %39 {offsets = [0, 0], sizes = [8, 64], strides = [1, 1]} : vector<8x192xf32> to vector<8x64xf32>
    %44 = vector.extract_strided_slice %42 {offsets = [0, 0], sizes = [8, 64], strides = [1, 1]} : vector<8x192xf32> to vector<8x64xf32>
    %45 = arith.addf %43, %44 : vector<8x64xf32>
    %46 = arith.negf %45 : vector<8x64xf32>
    %47 = math.exp %46 : vector<8x64xf32>
    %cst_15 = arith.constant 1.000000e+00 : f32
    %48 = vector.broadcast %cst_15 : f32 to vector<8x64xf32>
    %49 = arith.addf %48, %47 : vector<8x64xf32>
    %50 = arith.divf %48, %49 : vector<8x64xf32>
    %51 = vector.extract_strided_slice %39 {offsets = [0, 64], sizes = [8, 64], strides = [1, 1]} : vector<8x192xf32> to vector<8x64xf32>
    %52 = vector.extract_strided_slice %42 {offsets = [0, 64], sizes = [8, 64], strides = [1, 1]} : vector<8x192xf32> to vector<8x64xf32>
    %53 = arith.addf %51, %52 : vector<8x64xf32>
    %54 = arith.negf %53 : vector<8x64xf32>
    %55 = math.exp %54 : vector<8x64xf32>
    %cst_16 = arith.constant 1.000000e+00 : f32
    %56 = vector.broadcast %cst_16 : f32 to vector<8x64xf32>
    %57 = arith.addf %56, %55 : vector<8x64xf32>
    %58 = arith.divf %56, %57 : vector<8x64xf32>
    %59 = vector.extract_strided_slice %39 {offsets = [0, 128], sizes = [8, 64], strides = [1, 1]} : vector<8x192xf32> to vector<8x64xf32>
    %60 = vector.extract_strided_slice %42 {offsets = [0, 128], sizes = [8, 64], strides = [1, 1]} : vector<8x192xf32> to vector<8x64xf32>
    %61 = arith.mulf %50, %60 : vector<8x64xf32>
    %62 = arith.addf %59, %61 : vector<8x64xf32>
    %63 = math.tanh %62 : vector<8x64xf32>
    %cst_17 = arith.constant 1.000000e+00 : f32
    %64 = vector.broadcast %cst_17 : f32 to vector<8x64xf32>
    %65 = arith.subf %64, %58 : vector<8x64xf32>
    %66 = arith.mulf %65, %63 : vector<8x64xf32>
    %67 = arith.mulf %58, %38 : vector<8x64xf32>
    %68 = arith.addf %66, %67 : vector<8x64xf32>
    %69 = vector.extract_strided_slice %5 {offsets = [16, 0], sizes = [8, 192], strides = [1, 1]} : vector<64x192xf32> to vector<8x192xf32>
    %cst_18 = arith.constant dense<0.000000e+00> : vector<8x192xf32>
    %70 = tpu.matmul %68, %6, %cst_18 {dimension_numbers = #tpu.dot_dimension_numbers<[1], [0], [0], [1], [0, 0, 1, 1], [], []>} : vector<8x64xf32>, vector<64x192xf32>, vector<8x192xf32> -> vector<8x192xf32>
    %71 = vector.broadcast %7 : vector<1x192xf32> to vector<8x192xf32>
    %72 = arith.addf %70, %71 : vector<8x192xf32>
    %73 = vector.extract_strided_slice %69 {offsets = [0, 0], sizes = [8, 64], strides = [1, 1]} : vector<8x192xf32> to vector<8x64xf32>
    %74 = vector.extract_strided_slice %72 {offsets = [0, 0], sizes = [8, 64], strides = [1, 1]} : vector<8x192xf32> to vector<8x64xf32>
    %75 = arith.addf %73, %74 : vector<8x64xf32>
    %76 = arith.negf %75 : vector<8x64xf32>
    %77 = math.exp %76 : vector<8x64xf32>
    %cst_19 = arith.constant 1.000000e+00 : f32
    %78 = vector.broadcast %cst_19 : f32 to vector<8x64xf32>
    %79 = arith.addf %78, %77 : vector<8x64xf32>
    %80 = arith.divf %78, %79 : vector<8x64xf32>
    %81 = vector.extract_strided_slice %69 {offsets = [0, 64], sizes = [8, 64], strides = [1, 1]} : vector<8x192xf32> to vector<8x64xf32>
    %82 = vector.extract_strided_slice %72 {offsets = [0, 64], sizes = [8, 64], strides = [1, 1]} : vector<8x192xf32> to vector<8x64xf32>
    %83 = arith.addf %81, %82 : vector<8x64xf32>
    %84 = arith.negf %83 : vector<8x64xf32>
    %85 = math.exp %84 : vector<8x64xf32>
    %cst_20 = arith.constant 1.000000e+00 : f32
    %86 = vector.broadcast %cst_20 : f32 to vector<8x64xf32>
    %87 = arith.addf %86, %85 : vector<8x64xf32>
    %88 = arith.divf %86, %87 : vector<8x64xf32>
    %89 = vector.extract_strided_slice %69 {offsets = [0, 128], sizes = [8, 64], strides = [1, 1]} : vector<8x192xf32> to vector<8x64xf32>
    %90 = vector.extract_strided_slice %72 {offsets = [0, 128], sizes = [8, 64], strides = [1, 1]} : vector<8x192xf32> to vector<8x64xf32>
    %91 = arith.mulf %80, %90 : vector<8x64xf32>
    %92 = arith.addf %89, %91 : vector<8x64xf32>
    %93 = math.tanh %92 : vector<8x64xf32>
    %cst_21 = arith.constant 1.000000e+00 : f32
    %94 = vector.broadcast %cst_21 : f32 to vector<8x64xf32>
    %95 = arith.subf %94, %88 : vector<8x64xf32>
    %96 = arith.mulf %95, %93 : vector<8x64xf32>
    %97 = arith.mulf %88, %68 : vector<8x64xf32>
    %98 = arith.addf %96, %97 : vector<8x64xf32>
    %99 = vector.extract_strided_slice %5 {offsets = [24, 0], sizes = [8, 192], strides = [1, 1]} : vector<64x192xf32> to vector<8x192xf32>
    %cst_22 = arith.constant dense<0.000000e+00> : vector<8x192xf32>
    %100 = tpu.matmul %98, %6, %cst_22 {dimension_numbers = #tpu.dot_dimension_numbers<[1], [0], [0], [1], [0, 0, 1, 1], [], []>} : vector<8x64xf32>, vector<64x192xf32>, vector<8x192xf32> -> vector<8x192xf32>
    %101 = vector.broadcast %7 : vector<1x192xf32> to vector<8x192xf32>
    %102 = arith.addf %100, %101 : vector<8x192xf32>
    %103 = vector.extract_strided_slice %99 {offsets = [0, 0], sizes = [8, 64], strides = [1, 1]} : vector<8x192xf32> to vector<8x64xf32>
    %104 = vector.extract_strided_slice %102 {offsets = [0, 0], sizes = [8, 64], strides = [1, 1]} : vector<8x192xf32> to vector<8x64xf32>
    %105 = arith.addf %103, %104 : vector<8x64xf32>
    %106 = arith.negf %105 : vector<8x64xf32>
    %107 = math.exp %106 : vector<8x64xf32>
    %cst_23 = arith.constant 1.000000e+00 : f32
    %108 = vector.broadcast %cst_23 : f32 to vector<8x64xf32>
    %109 = arith.addf %108, %107 : vector<8x64xf32>
    %110 = arith.divf %108, %109 : vector<8x64xf32>
    %111 = vector.extract_strided_slice %99 {offsets = [0, 64], sizes = [8, 64], strides = [1, 1]} : vector<8x192xf32> to vector<8x64xf32>
    %112 = vector.extract_strided_slice %102 {offsets = [0, 64], sizes = [8, 64], strides = [1, 1]} : vector<8x192xf32> to vector<8x64xf32>
    %113 = arith.addf %111, %112 : vector<8x64xf32>
    %114 = arith.negf %113 : vector<8x64xf32>
    %115 = math.exp %114 : vector<8x64xf32>
    %cst_24 = arith.constant 1.000000e+00 : f32
    %116 = vector.broadcast %cst_24 : f32 to vector<8x64xf32>
    %117 = arith.addf %116, %115 : vector<8x64xf32>
    %118 = arith.divf %116, %117 : vector<8x64xf32>
    %119 = vector.extract_strided_slice %99 {offsets = [0, 128], sizes = [8, 64], strides = [1, 1]} : vector<8x192xf32> to vector<8x64xf32>
    %120 = vector.extract_strided_slice %102 {offsets = [0, 128], sizes = [8, 64], strides = [1, 1]} : vector<8x192xf32> to vector<8x64xf32>
    %121 = arith.mulf %110, %120 : vector<8x64xf32>
    %122 = arith.addf %119, %121 : vector<8x64xf32>
    %123 = math.tanh %122 : vector<8x64xf32>
    %cst_25 = arith.constant 1.000000e+00 : f32
    %124 = vector.broadcast %cst_25 : f32 to vector<8x64xf32>
    %125 = arith.subf %124, %118 : vector<8x64xf32>
    %126 = arith.mulf %125, %123 : vector<8x64xf32>
    %127 = arith.mulf %118, %98 : vector<8x64xf32>
    %128 = arith.addf %126, %127 : vector<8x64xf32>
    %129 = vector.extract_strided_slice %5 {offsets = [32, 0], sizes = [8, 192], strides = [1, 1]} : vector<64x192xf32> to vector<8x192xf32>
    %cst_26 = arith.constant dense<0.000000e+00> : vector<8x192xf32>
    %130 = tpu.matmul %128, %6, %cst_26 {dimension_numbers = #tpu.dot_dimension_numbers<[1], [0], [0], [1], [0, 0, 1, 1], [], []>} : vector<8x64xf32>, vector<64x192xf32>, vector<8x192xf32> -> vector<8x192xf32>
    %131 = vector.broadcast %7 : vector<1x192xf32> to vector<8x192xf32>
    %132 = arith.addf %130, %131 : vector<8x192xf32>
    %133 = vector.extract_strided_slice %129 {offsets = [0, 0], sizes = [8, 64], strides = [1, 1]} : vector<8x192xf32> to vector<8x64xf32>
    %134 = vector.extract_strided_slice %132 {offsets = [0, 0], sizes = [8, 64], strides = [1, 1]} : vector<8x192xf32> to vector<8x64xf32>
    %135 = arith.addf %133, %134 : vector<8x64xf32>
    %136 = arith.negf %135 : vector<8x64xf32>
    %137 = math.exp %136 : vector<8x64xf32>
    %cst_27 = arith.constant 1.000000e+00 : f32
    %138 = vector.broadcast %cst_27 : f32 to vector<8x64xf32>
    %139 = arith.addf %138, %137 : vector<8x64xf32>
    %140 = arith.divf %138, %139 : vector<8x64xf32>
    %141 = vector.extract_strided_slice %129 {offsets = [0, 64], sizes = [8, 64], strides = [1, 1]} : vector<8x192xf32> to vector<8x64xf32>
    %142 = vector.extract_strided_slice %132 {offsets = [0, 64], sizes = [8, 64], strides = [1, 1]} : vector<8x192xf32> to vector<8x64xf32>
    %143 = arith.addf %141, %142 : vector<8x64xf32>
    %144 = arith.negf %143 : vector<8x64xf32>
    %145 = math.exp %144 : vector<8x64xf32>
    %cst_28 = arith.constant 1.000000e+00 : f32
    %146 = vector.broadcast %cst_28 : f32 to vector<8x64xf32>
    %147 = arith.addf %146, %145 : vector<8x64xf32>
    %148 = arith.divf %146, %147 : vector<8x64xf32>
    %149 = vector.extract_strided_slice %129 {offsets = [0, 128], sizes = [8, 64], strides = [1, 1]} : vector<8x192xf32> to vector<8x64xf32>
    %150 = vector.extract_strided_slice %132 {offsets = [0, 128], sizes = [8, 64], strides = [1, 1]} : vector<8x192xf32> to vector<8x64xf32>
    %151 = arith.mulf %140, %150 : vector<8x64xf32>
    %152 = arith.addf %149, %151 : vector<8x64xf32>
    %153 = math.tanh %152 : vector<8x64xf32>
    %cst_29 = arith.constant 1.000000e+00 : f32
    %154 = vector.broadcast %cst_29 : f32 to vector<8x64xf32>
    %155 = arith.subf %154, %148 : vector<8x64xf32>
    %156 = arith.mulf %155, %153 : vector<8x64xf32>
    %157 = arith.mulf %148, %128 : vector<8x64xf32>
    %158 = arith.addf %156, %157 : vector<8x64xf32>
    %159 = vector.extract_strided_slice %5 {offsets = [40, 0], sizes = [8, 192], strides = [1, 1]} : vector<64x192xf32> to vector<8x192xf32>
    %cst_30 = arith.constant dense<0.000000e+00> : vector<8x192xf32>
    %160 = tpu.matmul %158, %6, %cst_30 {dimension_numbers = #tpu.dot_dimension_numbers<[1], [0], [0], [1], [0, 0, 1, 1], [], []>} : vector<8x64xf32>, vector<64x192xf32>, vector<8x192xf32> -> vector<8x192xf32>
    %161 = vector.broadcast %7 : vector<1x192xf32> to vector<8x192xf32>
    %162 = arith.addf %160, %161 : vector<8x192xf32>
    %163 = vector.extract_strided_slice %159 {offsets = [0, 0], sizes = [8, 64], strides = [1, 1]} : vector<8x192xf32> to vector<8x64xf32>
    %164 = vector.extract_strided_slice %162 {offsets = [0, 0], sizes = [8, 64], strides = [1, 1]} : vector<8x192xf32> to vector<8x64xf32>
    %165 = arith.addf %163, %164 : vector<8x64xf32>
    %166 = arith.negf %165 : vector<8x64xf32>
    %167 = math.exp %166 : vector<8x64xf32>
    %cst_31 = arith.constant 1.000000e+00 : f32
    %168 = vector.broadcast %cst_31 : f32 to vector<8x64xf32>
    %169 = arith.addf %168, %167 : vector<8x64xf32>
    %170 = arith.divf %168, %169 : vector<8x64xf32>
    %171 = vector.extract_strided_slice %159 {offsets = [0, 64], sizes = [8, 64], strides = [1, 1]} : vector<8x192xf32> to vector<8x64xf32>
    %172 = vector.extract_strided_slice %162 {offsets = [0, 64], sizes = [8, 64], strides = [1, 1]} : vector<8x192xf32> to vector<8x64xf32>
    %173 = arith.addf %171, %172 : vector<8x64xf32>
    %174 = arith.negf %173 : vector<8x64xf32>
    %175 = math.exp %174 : vector<8x64xf32>
    %cst_32 = arith.constant 1.000000e+00 : f32
    %176 = vector.broadcast %cst_32 : f32 to vector<8x64xf32>
    %177 = arith.addf %176, %175 : vector<8x64xf32>
    %178 = arith.divf %176, %177 : vector<8x64xf32>
    %179 = vector.extract_strided_slice %159 {offsets = [0, 128], sizes = [8, 64], strides = [1, 1]} : vector<8x192xf32> to vector<8x64xf32>
    %180 = vector.extract_strided_slice %162 {offsets = [0, 128], sizes = [8, 64], strides = [1, 1]} : vector<8x192xf32> to vector<8x64xf32>
    %181 = arith.mulf %170, %180 : vector<8x64xf32>
    %182 = arith.addf %179, %181 : vector<8x64xf32>
    %183 = math.tanh %182 : vector<8x64xf32>
    %cst_33 = arith.constant 1.000000e+00 : f32
    %184 = vector.broadcast %cst_33 : f32 to vector<8x64xf32>
    %185 = arith.subf %184, %178 : vector<8x64xf32>
    %186 = arith.mulf %185, %183 : vector<8x64xf32>
    %187 = arith.mulf %178, %158 : vector<8x64xf32>
    %188 = arith.addf %186, %187 : vector<8x64xf32>
    %189 = vector.extract_strided_slice %5 {offsets = [48, 0], sizes = [8, 192], strides = [1, 1]} : vector<64x192xf32> to vector<8x192xf32>
    %cst_34 = arith.constant dense<0.000000e+00> : vector<8x192xf32>
    %190 = tpu.matmul %188, %6, %cst_34 {dimension_numbers = #tpu.dot_dimension_numbers<[1], [0], [0], [1], [0, 0, 1, 1], [], []>} : vector<8x64xf32>, vector<64x192xf32>, vector<8x192xf32> -> vector<8x192xf32>
    %191 = vector.broadcast %7 : vector<1x192xf32> to vector<8x192xf32>
    %192 = arith.addf %190, %191 : vector<8x192xf32>
    %193 = vector.extract_strided_slice %189 {offsets = [0, 0], sizes = [8, 64], strides = [1, 1]} : vector<8x192xf32> to vector<8x64xf32>
    %194 = vector.extract_strided_slice %192 {offsets = [0, 0], sizes = [8, 64], strides = [1, 1]} : vector<8x192xf32> to vector<8x64xf32>
    %195 = arith.addf %193, %194 : vector<8x64xf32>
    %196 = arith.negf %195 : vector<8x64xf32>
    %197 = math.exp %196 : vector<8x64xf32>
    %cst_35 = arith.constant 1.000000e+00 : f32
    %198 = vector.broadcast %cst_35 : f32 to vector<8x64xf32>
    %199 = arith.addf %198, %197 : vector<8x64xf32>
    %200 = arith.divf %198, %199 : vector<8x64xf32>
    %201 = vector.extract_strided_slice %189 {offsets = [0, 64], sizes = [8, 64], strides = [1, 1]} : vector<8x192xf32> to vector<8x64xf32>
    %202 = vector.extract_strided_slice %192 {offsets = [0, 64], sizes = [8, 64], strides = [1, 1]} : vector<8x192xf32> to vector<8x64xf32>
    %203 = arith.addf %201, %202 : vector<8x64xf32>
    %204 = arith.negf %203 : vector<8x64xf32>
    %205 = math.exp %204 : vector<8x64xf32>
    %cst_36 = arith.constant 1.000000e+00 : f32
    %206 = vector.broadcast %cst_36 : f32 to vector<8x64xf32>
    %207 = arith.addf %206, %205 : vector<8x64xf32>
    %208 = arith.divf %206, %207 : vector<8x64xf32>
    %209 = vector.extract_strided_slice %189 {offsets = [0, 128], sizes = [8, 64], strides = [1, 1]} : vector<8x192xf32> to vector<8x64xf32>
    %210 = vector.extract_strided_slice %192 {offsets = [0, 128], sizes = [8, 64], strides = [1, 1]} : vector<8x192xf32> to vector<8x64xf32>
    %211 = arith.mulf %200, %210 : vector<8x64xf32>
    %212 = arith.addf %209, %211 : vector<8x64xf32>
    %213 = math.tanh %212 : vector<8x64xf32>
    %cst_37 = arith.constant 1.000000e+00 : f32
    %214 = vector.broadcast %cst_37 : f32 to vector<8x64xf32>
    %215 = arith.subf %214, %208 : vector<8x64xf32>
    %216 = arith.mulf %215, %213 : vector<8x64xf32>
    %217 = arith.mulf %208, %188 : vector<8x64xf32>
    %218 = arith.addf %216, %217 : vector<8x64xf32>
    %219 = vector.extract_strided_slice %5 {offsets = [56, 0], sizes = [8, 192], strides = [1, 1]} : vector<64x192xf32> to vector<8x192xf32>
    %cst_38 = arith.constant dense<0.000000e+00> : vector<8x192xf32>
    %220 = tpu.matmul %218, %6, %cst_38 {dimension_numbers = #tpu.dot_dimension_numbers<[1], [0], [0], [1], [0, 0, 1, 1], [], []>} : vector<8x64xf32>, vector<64x192xf32>, vector<8x192xf32> -> vector<8x192xf32>
    %221 = vector.broadcast %7 : vector<1x192xf32> to vector<8x192xf32>
    %222 = arith.addf %220, %221 : vector<8x192xf32>
    %223 = vector.extract_strided_slice %219 {offsets = [0, 0], sizes = [8, 64], strides = [1, 1]} : vector<8x192xf32> to vector<8x64xf32>
    %224 = vector.extract_strided_slice %222 {offsets = [0, 0], sizes = [8, 64], strides = [1, 1]} : vector<8x192xf32> to vector<8x64xf32>
    %225 = arith.addf %223, %224 : vector<8x64xf32>
    %226 = arith.negf %225 : vector<8x64xf32>
    %227 = math.exp %226 : vector<8x64xf32>
    %cst_39 = arith.constant 1.000000e+00 : f32
    %228 = vector.broadcast %cst_39 : f32 to vector<8x64xf32>
    %229 = arith.addf %228, %227 : vector<8x64xf32>
    %230 = arith.divf %228, %229 : vector<8x64xf32>
    %231 = vector.extract_strided_slice %219 {offsets = [0, 64], sizes = [8, 64], strides = [1, 1]} : vector<8x192xf32> to vector<8x64xf32>
    %232 = vector.extract_strided_slice %222 {offsets = [0, 64], sizes = [8, 64], strides = [1, 1]} : vector<8x192xf32> to vector<8x64xf32>
    %233 = arith.addf %231, %232 : vector<8x64xf32>
    %234 = arith.negf %233 : vector<8x64xf32>
    %235 = math.exp %234 : vector<8x64xf32>
    %cst_40 = arith.constant 1.000000e+00 : f32
    %236 = vector.broadcast %cst_40 : f32 to vector<8x64xf32>
    %237 = arith.addf %236, %235 : vector<8x64xf32>
    %238 = arith.divf %236, %237 : vector<8x64xf32>
    %239 = vector.extract_strided_slice %219 {offsets = [0, 128], sizes = [8, 64], strides = [1, 1]} : vector<8x192xf32> to vector<8x64xf32>
    %240 = vector.extract_strided_slice %222 {offsets = [0, 128], sizes = [8, 64], strides = [1, 1]} : vector<8x192xf32> to vector<8x64xf32>
    %241 = arith.mulf %230, %240 : vector<8x64xf32>
    %242 = arith.addf %239, %241 : vector<8x64xf32>
    %243 = math.tanh %242 : vector<8x64xf32>
    %cst_41 = arith.constant 1.000000e+00 : f32
    %244 = vector.broadcast %cst_41 : f32 to vector<8x64xf32>
    %245 = arith.subf %244, %238 : vector<8x64xf32>
    %246 = arith.mulf %245, %243 : vector<8x64xf32>
    %247 = arith.mulf %238, %218 : vector<8x64xf32>
    %248 = arith.addf %246, %247 : vector<8x64xf32>
    %c0_42 = arith.constant 0 : index
    %c0_43 = arith.constant 0 : index
    %249 = vector.load %arg5[%c0_42, %c0_43] : memref<8x64xf32, #tpu.memory_space<vmem>>, vector<8x64xf32>
    tpu.vector_store %arg5[%c0_42, %c0_43], %248 {strides = array<i32>} : memref<8x64xf32, #tpu.memory_space<vmem>>, vector<8x64xf32>,
    return
  }
}

module attributes {stable_mosaic.version = 11 : i64} {
  func.func @_fc_tower_kernel(%arg0: memref<2x471xf32, #tpu.memory_space<vmem>>, %arg1: memref<471x256xf32, #tpu.memory_space<vmem>>, %arg2: memref<1x256xf32, #tpu.memory_space<vmem>>, %arg3: memref<256x256xf32, #tpu.memory_space<vmem>>, %arg4: memref<1x256xf32, #tpu.memory_space<vmem>>, %arg5: memref<256x128xf32, #tpu.memory_space<vmem>>, %arg6: memref<1x128xf32, #tpu.memory_space<vmem>>, %arg7: memref<128x128xf32, #tpu.memory_space<vmem>>, %arg8: memref<1x128xf32, #tpu.memory_space<vmem>>, %arg9: memref<128x64xf32, #tpu.memory_space<vmem>>, %arg10: memref<1x64xf32, #tpu.memory_space<vmem>>, %arg11: memref<64x64xf32, #tpu.memory_space<vmem>>, %arg12: memref<1x64xf32, #tpu.memory_space<vmem>>, %arg13: memref<64x1xf32, #tpu.memory_space<vmem>>, %arg14: memref<1x1xf32, #tpu.memory_space<vmem>>, %arg15: memref<2x1xf32, #tpu.memory_space<vmem>>) attributes {dimension_semantics = [], scalar_prefetch = 0 : i64, scratch_operands = 0 : i64, tpu.core_type = #tpu.core_type<tc>} {
    %c0 = arith.constant 0 : index
    %c0_0 = arith.constant 0 : index
    %0 = vector.load %arg0[%c0, %c0_0] : memref<2x471xf32, #tpu.memory_space<vmem>>, vector<2x471xf32>
    %c0_1 = arith.constant 0 : index
    %c0_2 = arith.constant 0 : index
    %1 = vector.load %arg1[%c0_1, %c0_2] : memref<471x256xf32, #tpu.memory_space<vmem>>, vector<471x256xf32>
    %cst = arith.constant dense<0.000000e+00> : vector<2x256xf32>
    %2 = tpu.matmul %0, %1, %cst {dimension_numbers = #tpu.dot_dimension_numbers<[1], [0], [0], [1], [0, 0, 1, 1], [], []>} : vector<2x471xf32>, vector<471x256xf32>, vector<2x256xf32> -> vector<2x256xf32>
    %c0_3 = arith.constant 0 : index
    %c0_4 = arith.constant 0 : index
    %3 = vector.load %arg2[%c0_3, %c0_4] : memref<1x256xf32, #tpu.memory_space<vmem>>, vector<1x256xf32>
    %4 = vector.broadcast %3 : vector<1x256xf32> to vector<2x256xf32>
    %5 = arith.addf %2, %4 : vector<2x256xf32>
    %6 = math.tanh %5 : vector<2x256xf32>
    %c0_5 = arith.constant 0 : index
    %c0_6 = arith.constant 0 : index
    %7 = vector.load %arg3[%c0_5, %c0_6] : memref<256x256xf32, #tpu.memory_space<vmem>>, vector<256x256xf32>
    %cst_7 = arith.constant dense<0.000000e+00> : vector<2x256xf32>
    %8 = tpu.matmul %6, %7, %cst_7 {dimension_numbers = #tpu.dot_dimension_numbers<[1], [0], [0], [1], [0, 0, 1, 1], [], []>} : vector<2x256xf32>, vector<256x256xf32>, vector<2x256xf32> -> vector<2x256xf32>
    %c0_8 = arith.constant 0 : index
    %c0_9 = arith.constant 0 : index
    %9 = vector.load %arg4[%c0_8, %c0_9] : memref<1x256xf32, #tpu.memory_space<vmem>>, vector<1x256xf32>
    %10 = vector.broadcast %9 : vector<1x256xf32> to vector<2x256xf32>
    %11 = arith.addf %8, %10 : vector<2x256xf32>
    %12 = math.tanh %11 : vector<2x256xf32>
    %c0_10 = arith.constant 0 : index
    %c0_11 = arith.constant 0 : index
    %13 = vector.load %arg5[%c0_10, %c0_11] : memref<256x128xf32, #tpu.memory_space<vmem>>, vector<256x128xf32>
    %cst_12 = arith.constant dense<0.000000e+00> : vector<2x128xf32>
    %14 = tpu.matmul %12, %13, %cst_12 {dimension_numbers = #tpu.dot_dimension_numbers<[1], [0], [0], [1], [0, 0, 1, 1], [], []>} : vector<2x256xf32>, vector<256x128xf32>, vector<2x128xf32> -> vector<2x128xf32>
    %c0_13 = arith.constant 0 : index
    %c0_14 = arith.constant 0 : index
    %15 = vector.load %arg6[%c0_13, %c0_14] : memref<1x128xf32, #tpu.memory_space<vmem>>, vector<1x128xf32>
    %16 = vector.broadcast %15 : vector<1x128xf32> to vector<2x128xf32>
    %17 = arith.addf %14, %16 : vector<2x128xf32>
    %18 = math.tanh %17 : vector<2x128xf32>
    %c0_15 = arith.constant 0 : index
    %c0_16 = arith.constant 0 : index
    %19 = vector.load %arg7[%c0_15, %c0_16] : memref<128x128xf32, #tpu.memory_space<vmem>>, vector<128x128xf32>
    %cst_17 = arith.constant dense<0.000000e+00> : vector<2x128xf32>
    %20 = tpu.matmul %18, %19, %cst_17 {dimension_numbers = #tpu.dot_dimension_numbers<[1], [0], [0], [1], [0, 0, 1, 1], [], []>} : vector<2x128xf32>, vector<128x128xf32>, vector<2x128xf32> -> vector<2x128xf32>
    %c0_18 = arith.constant 0 : index
    %c0_19 = arith.constant 0 : index
    %21 = vector.load %arg8[%c0_18, %c0_19] : memref<1x128xf32, #tpu.memory_space<vmem>>, vector<1x128xf32>
    %22 = vector.broadcast %21 : vector<1x128xf32> to vector<2x128xf32>
    %23 = arith.addf %20, %22 : vector<2x128xf32>
    %24 = math.tanh %23 : vector<2x128xf32>
    %c0_20 = arith.constant 0 : index
    %c0_21 = arith.constant 0 : index
    %25 = vector.load %arg9[%c0_20, %c0_21] : memref<128x64xf32, #tpu.memory_space<vmem>>, vector<128x64xf32>
    %cst_22 = arith.constant dense<0.000000e+00> : vector<2x64xf32>
    %26 = tpu.matmul %24, %25, %cst_22 {dimension_numbers = #tpu.dot_dimension_numbers<[1], [0], [0], [1], [0, 0, 1, 1], [], []>} : vector<2x128xf32>, vector<128x64xf32>, vector<2x64xf32> -> vector<2x64xf32>
    %c0_23 = arith.constant 0 : index
    %c0_24 = arith.constant 0 : index
    %27 = vector.load %arg10[%c0_23, %c0_24] : memref<1x64xf32, #tpu.memory_space<vmem>>, vector<1x64xf32>
    %28 = vector.broadcast %27 : vector<1x64xf32> to vector<2x64xf32>
    %29 = arith.addf %26, %28 : vector<2x64xf32>
    %30 = math.tanh %29 : vector<2x64xf32>
    %c0_25 = arith.constant 0 : index
    %c0_26 = arith.constant 0 : index
    %31 = vector.load %arg11[%c0_25, %c0_26] : memref<64x64xf32, #tpu.memory_space<vmem>>, vector<64x64xf32>
    %cst_27 = arith.constant dense<0.000000e+00> : vector<2x64xf32>
    %32 = tpu.matmul %30, %31, %cst_27 {dimension_numbers = #tpu.dot_dimension_numbers<[1], [0], [0], [1], [0, 0, 1, 1], [], []>} : vector<2x64xf32>, vector<64x64xf32>, vector<2x64xf32> -> vector<2x64xf32>
    %c0_28 = arith.constant 0 : index
    %c0_29 = arith.constant 0 : index
    %33 = vector.load %arg12[%c0_28, %c0_29] : memref<1x64xf32, #tpu.memory_space<vmem>>, vector<1x64xf32>
    %34 = vector.broadcast %33 : vector<1x64xf32> to vector<2x64xf32>
    %35 = arith.addf %32, %34 : vector<2x64xf32>
    %36 = math.tanh %35 : vector<2x64xf32>
    %c0_30 = arith.constant 0 : index
    %c0_31 = arith.constant 0 : index
    %37 = vector.load %arg13[%c0_30, %c0_31] : memref<64x1xf32, #tpu.memory_space<vmem>>, vector<64x1xf32>
    %cst_32 = arith.constant dense<0.000000e+00> : vector<2x1xf32>
    %38 = tpu.matmul %36, %37, %cst_32 {dimension_numbers = #tpu.dot_dimension_numbers<[1], [0], [0], [1], [0, 0, 1, 1], [], []>} : vector<2x64xf32>, vector<64x1xf32>, vector<2x1xf32> -> vector<2x1xf32>
    %c0_33 = arith.constant 0 : index
    %c0_34 = arith.constant 0 : index
    %39 = vector.load %arg14[%c0_33, %c0_34] : memref<1x1xf32, #tpu.memory_space<vmem>>, vector<1x1xf32>
    %40 = vector.broadcast %39 : vector<1x1xf32> to vector<2x1xf32>
    %41 = arith.addf %38, %40 : vector<2x1xf32>
    %c0_35 = arith.constant 0 : index
    %c0_36 = arith.constant 0 : index
    %42 = vector.load %arg15[%c0_35, %c0_36] : memref<2x1xf32, #tpu.memory_space<vmem>>, vector<2x1xf32>
    tpu.vector_store %arg15[%c0_35, %c0_36], %41 {strides = array<i32>} : memref<2x1xf32, #tpu.memory_space<vmem>>, vector<2x1xf32>,
    return
  }
}

</mosaic_0001>

<bundles_post_ra>
// kernel: forward.10
= control target key start
LH: loop header
LB: loop body
LE: loop exit
PB: predicated region body
PF: predicated region fallthrough
CT: control target
= control target key end

     0   :  { %v37_v0 = vlaneseq  ;;  %v545_v1 = vmov 1966171168   ;;  %s546_s23 = smov 64   ;;  %s547_s24 = smov 96   ;;  %vm60_vm0 = vcmask 259072   ;;  %vm82_vm1 = vcmask 1041409   ;;  %s713_s1 = inlined_call_operand.vmem [shape: f32[2,128], index: 1, kind: input, shape index: {}]   ;;  %s714_s0 = inlined_call_operand.vmem [shape: f32[2,6,128], index: 0, kind: input, shape index: {}]   ;;  %s715_s2 = inlined_call_operand.vmem [shape: f32[2,6,128], index: 2, kind: input, shape index: {}]   ;;  %s716_s3 = inlined_call_operand.vmem [shape: f32[1,128], index: 3, kind: input, shape index: {}]   ;;  %s717_s4 = inlined_call_operand.vmem [shape: f32[1,128], index: 4, kind: input, shape index: {}]   ;;  %s718_s5 = inlined_call_operand.vmem [shape: f32[2,6,128], index: 5, kind: output, shape index: {}]  }
   0x1   :  { %v35_v2 = vunpack.c.l.s4 %v545_v1  ;;  %v499_v3 = vld.sshfl [vmem:[%s713_s1] sm:$0x11 pattern:$0x75316420]  ;;  %v21_v16 = vld [vmem:[%s714_s0 + $0x8] sm:$0x3f] }
   0x2   :  { %v583_v4 = vshrl.u32 %v37_v0, 7  ;;  %v73_v5 = vand.u32 127, %v37_v0  ;;  %v33_v7 = vcombine.high %v499_v3, %v499_v3  ;;  %v20_v13 = vld [vmem:[%s714_s0] sm:$0x3f]  ;;  %s548_s25 = smov 32   ;;  %vm85_vm2 = vcmask 41984  }
   0x3   :  { %v36_v6 = vunpack.c.0.s8 %v35_v2  ;;  %v549_v41 = vmov 0   ;;  %vm438_vm3 = vcmask 261120   ;;  %vm441_vm4 = vcmask 523264  }
   0x4   :  { %v586_v8 = vsub.s32 %v73_v5, %v583_v4  ;;  %v590_v10 = vsub.s32 0, %v583_v4  ;;  %508 = vset.pattern.permute.xlu0 %v549_v41  ;;  %507 = vset.pattern.permute.xlu1 %v549_v41  ;;  %v625_v2 = vsub.s32 1, %v583_v4  ;;  %vm444_vm5 = vcmask 785408  }
   0x5   :  { %v39_v9 = vsub.s32 %v36_v6, %v583_v4  ;;  %vm447_vm6 = vcmask 1045504  }
   0x7   :  { %v40_v11 = vrot.slane %v499_v3, %v39_v9  ;;  %v47_v12 = vrot.slane %v33_v7, %v39_v9 }
   0x9   :  { %v51_v14 = vrot.slane %v40_v11, %v590_v10  ;;  %v55_v15 = vrot.slane %v47_v12, %v590_v10 }
   0xb   :  { %v58_v17 = vmul.f32 %v51_v14, %v20_v13  ;;  %v59_v18 = vmul.f32 %v55_v15, %v21_v16 }
   0xd   :  { %250 = vrot.lane.b32.xlu1 %v58_v17, %s546_s23  ;;  %156 = vrot.lane.b32.xlu0 %v58_v17, %s547_s24  ;;  %v61_v19 = vsel %vm60_vm0, %v58_v17, 0.0  ;;  %v64_v20 = vsel %vm60_vm0, %v59_v18, 0.0 }
  0x11   :  { %252 = vrot.lane.b32.xlu1 %v59_v18, %s546_s23  ;;  %158 = vrot.lane.b32.xlu0 %v59_v18, %s547_s24 }
  0x15   :  { %346 = vrot.lane.b32.xlu1 %v59_v18, %s548_s25  ;;  %344 = vrot.lane.b32.xlu0 %v58_v17, %s548_s25 }
  0x34   :  { %62 = vadd.xlane.f32.xlu0 %v61_v19 }
  0x39   :  { %65 = vadd.xlane.f32.xlu1 %v64_v20 }
  0x7f   :  { %v157_v21 = vpop.permute.xlu0 %156  ;;  %v251_v22 = vpop.permute.xlu1 %250 }
  0x80   :  { %v162_v23 = vsel %vm60_vm0, %v157_v21, 0.0  ;;  %v256_v24 = vsel %vm60_vm0, %v251_v22, 0.0 }
  0x81   :  { %163 = vadd.xlane.f32.xlu0 %v162_v23  ;;  %257 = vadd.xlane.f32.xlu1 %v256_v24 }
  0x83   :  { %v159_v25 = vpop.permute.xlu0 %158  ;;  %v253_v26 = vpop.permute.xlu1 %252 }
  0x84   :  { %v165_v27 = vsel %vm60_vm0, %v159_v25, 0.0  ;;  %v259_v28 = vsel %vm60_vm0, %v253_v26, 0.0 }
  0x85   :  { %166 = vadd.xlane.f32.xlu0 %v165_v27 }
  0x87   :  { %v347_v29 = vpop.permute.xlu1 %346  ;;  %v345_v30 = vpop.permute.xlu0 %344 }
  0x88   :  { %v350_v31 = vsel %vm60_vm0, %v345_v30, 0.0  ;;  %v353_v32 = vsel %vm60_vm0, %v347_v29, 0.0 }
  0x89   :  { %260 = vadd.xlane.f32.xlu0 %v259_v28  ;;  %351 = vadd.xlane.f32.xlu1 %v350_v31 }
  0x8d   :  { %354 = vadd.xlane.f32.xlu0 %v353_v32 }
  0xc1   :  { %v63_v33 = vpop.xlane.xlu0 %62 }
  0xc2   :  { %v68_v34 = vmul.f32 0.17677669, %v63_v33 }
  0xc4   :  { %v77_v37 = vrot.slane %v68_v34, %v586_v8 }
  0xc6   :  { %v66_v35 = vpop.xlane.xlu1 %65 }
  0xc7   :  { %v69_v36 = vmul.f32 0.17677669, %v66_v35 }
  0xc9   :  { %v81_v38 = vrot.slane %v69_v36, %v586_v8 }
  0xcb   :  { %v83_v39 = vsel %vm82_vm1, %v81_v38, %v77_v37 }
  0xcc   :  { %v86_v40 = vsel %vm85_vm2, %v83_v39, -inf }
  0xcd   :  { %87 = vmax.xlane.f32.xlu1 %v86_v40 }
 0x10e   :  { %v164_v42 = vpop.xlane.xlu0 %163  ;;  %v258_v43 = vpop.xlane.xlu1 %257 }
 0x10f   :  { %v168_v44 = vmul.f32 0.17677669, %v164_v42  ;;  %v262_v47 = vmul.f32 0.17677669, %v258_v43 }
 0x111   :  { %v175_v48 = vrot.slane %v168_v44, %v586_v8  ;;  %v269_v52 = vrot.slane %v262_v47, %v586_v8 }
 0x112   :  { %v167_v45 = vpop.xlane.xlu0 %166 }
 0x113   :  { %v169_v46 = vmul.f32 0.17677669, %v167_v45 }
 0x115   :  { %v179_v49 = vrot.slane %v169_v46, %v586_v8 }
 0x116   :  { %v261_v50 = vpop.xlane.xlu0 %260  ;;  %v352_v51 = vpop.xlane.xlu1 %351 }
 0x117   :  { %v263_v53 = vmul.f32 0.17677669, %v261_v50  ;;  %v180_v54 = vsel %vm82_vm1, %v179_v49, %v175_v48  ;;  %v356_v55 = vmul.f32 0.17677669, %v352_v51 }
 0x118   :  { %v182_v56 = vsel %vm85_vm2, %v180_v54, -inf }
 0x119   :  { %v273_v57 = vrot.slane %v263_v53, %v586_v8  ;;  %183 = vmax.xlane.f32.xlu0 %v182_v56  ;;  %v363_v59 = vrot.slane %v356_v55, %v586_v8 }
 0x11a   :  { %v355_v58 = vpop.xlane.xlu0 %354 }
 0x11b   :  { %v357_v60 = vmul.f32 0.17677669, %v355_v58  ;;  %v274_v61 = vsel %vm82_vm1, %v273_v57, %v269_v52 }
 0x11c   :  { %v276_v62 = vsel %vm85_vm2, %v274_v61, -inf }
 0x11d   :  { %v367_v63 = vrot.slane %v357_v60, %v586_v8  ;;  %277 = vmax.xlane.f32.xlu1 %v276_v62 }
 0x11f   :  { %v368_v0 = vsel %vm82_vm1, %v367_v63, %v363_v59 }
 0x120   :  { %v370_v1 = vsel %vm85_vm2, %v368_v0, -inf }
 0x121   :  { %371 = vmax.xlane.f32.xlu0 %v370_v1 }
 0x15a   :  { %v88_v3 = vpop.xlane.xlu1 %87 }
 0x15b   :  { %v93_v5 = vrot.slane %v88_v3, %v590_v10  ;;  %v97_v6 = vrot.slane %v88_v3, %v625_v2 }
 0x15d   :  { %v100_v7 = vsub.f32 %v68_v34, %v93_v5  ;;  %v101_v9 = vsub.f32 %v69_v36, %v97_v6 }
 0x15f   :  { %v102_v11 = vmul.f32 1.442695, %v100_v7  ;;  %v104_v12 = vmul.f32 1.442695, %v101_v9 }
 0x161   :  { %509 = vpow2.f32 %v102_v11 }
 0x162   :  { %511 = vpow2.f32 %v104_v12 }
 0x16b   :  { %v629_v13 = vpop.eup %509 }
 0x16c   :  { %v631_v14 = vpop.eup %511  ;;  %109 = vperm.xlu1 %507, %v629_v13  }
 0x16d   :  { %112 = vperm.xlu0 %508, %v631_v14  }
 0x1a6   :  { %v184_v4 = vpop.xlane.xlu0 %183 }
 0x1a7   :  { %v189_v15 = vrot.slane %v184_v4, %v590_v10  ;;  %v193_v16 = vrot.slane %v184_v4, %v625_v2 }
 0x1a9   :  { %v196_v17 = vsub.f32 %v168_v44, %v189_v15  ;;  %v197_v18 = vsub.f32 %v169_v46, %v193_v16 }
 0x1aa   :  { %v278_v19 = vpop.xlane.xlu1 %277 }
 0x1ab   :  { %v198_v20 = vmul.f32 1.442695, %v196_v17  ;;  %v283_v21 = vrot.slane %v278_v19, %v590_v10  ;;  %v200_v22 = vmul.f32 1.442695, %v197_v18  ;;  %v287_v23 = vrot.slane %v278_v19, %v625_v2 }
 0x1ad   :  { %513 = vpow2.f32 %v198_v20  ;;  %v290_v24 = vsub.f32 %v262_v47, %v283_v21  ;;  %v291_v26 = vsub.f32 %v263_v53, %v287_v23 }
 0x1ae   :  { %v372_v25 = vpop.xlane.xlu0 %371  ;;  %515 = vpow2.f32 %v200_v22 }
 0x1af   :  { %v292_v27 = vmul.f32 1.442695, %v290_v24  ;;  %v377_v28 = vrot.slane %v372_v25, %v590_v10  ;;  %v294_v29 = vmul.f32 1.442695, %v291_v26  ;;  %v381_v30 = vrot.slane %v372_v25, %v625_v2 }
 0x1b1   :  { %517 = vpow2.f32 %v292_v27  ;;  %v384_v31 = vsub.f32 %v356_v55, %v377_v28  ;;  %v385_v33 = vsub.f32 %v357_v60, %v381_v30 }
 0x1b2   :  { %519 = vpow2.f32 %v294_v29 }
 0x1b3   :  { %v386_v34 = vmul.f32 1.442695, %v384_v31  ;;  %v388_v36 = vmul.f32 1.442695, %v385_v33 }
 0x1b5   :  { %521 = vpow2.f32 %v386_v34  ;;  %v23_v34 = vld [vmem:[%s715_s2] sm:$0x3f] }
 0x1b6   :  { %523 = vpow2.f32 %v388_v36  ;;  %v24_v36 = vld [vmem:[%s715_s2 + $0x8] sm:$0x3f] }
 0x1b7   :  { %v641_v32 = vpop.eup %513 }
 0x1b8   :  { %205 = vperm.xlu1 %507, %v641_v32   ;;  %v644_v35 = vpop.eup %515 }
 0x1bb   :  { %v647_v37 = vpop.eup %517 }
 0x1bc   :  { %208 = vperm.xlu1 %507, %v644_v35   ;;  %v650_v38 = vpop.eup %519 }
 0x1bf   :  { %v653_v39 = vpop.eup %521 }
 0x1c0   :  { %299 = vperm.xlu1 %507, %v647_v37   ;;  %v656_v40 = vpop.eup %523 }
 0x1c4   :  { %302 = vperm.xlu1 %507, %v650_v38  }
 0x1c8   :  { %393 = vperm.xlu1 %507, %v653_v39  }
 0x1cc   :  { %396 = vperm.xlu1 %507, %v656_v40  }
 0x1eb   :  { %v110_v41 = vpop.permute.xlu1 %109 }
 0x1ec   :  { %v117_v42 = vrot.slane %v110_v41, %v586_v8  ;;  %v113_v43 = vpop.permute.xlu0 %112 }
 0x1ed   :  { %v121_v44 = vrot.slane %v113_v43, %v586_v8 }
 0x1ef   :  { %v122_v45 = vsel %vm82_vm1, %v121_v44, %v117_v42 }
 0x1f0   :  { %v124_v46 = vsel %vm85_vm2, %v122_v45, 0.0 }
 0x1f1   :  { %125 = vadd.xlane.f32.xlu1 %v124_v46 }
 0x237   :  { %v206_v47 = vpop.permute.xlu1 %205 }
 0x238   :  { %v213_v49 = vrot.slane %v206_v47, %v586_v8 }
 0x23b   :  { %v209_v48 = vpop.permute.xlu1 %208 }
 0x23c   :  { %v217_v50 = vrot.slane %v209_v48, %v586_v8 }
 0x23e   :  { %v218_v51 = vsel %vm82_vm1, %v217_v50, %v213_v49 }
 0x23f   :  { %v300_v52 = vpop.permute.xlu1 %299  ;;  %v220_v53 = vsel %vm85_vm2, %v218_v51, 0.0 }
 0x240   :  { %221 = vadd.xlane.f32.xlu0 %v220_v53  ;;  %v307_v55 = vrot.slane %v300_v52, %v586_v8 }
 0x243   :  { %v303_v54 = vpop.permute.xlu1 %302 }
 0x244   :  { %v311_v56 = vrot.slane %v303_v54, %v586_v8 }
 0x246   :  { %v312_v57 = vsel %vm82_vm1, %v311_v56, %v307_v55 }
 0x247   :  { %v394_v58 = vpop.permute.xlu1 %393  ;;  %v314_v59 = vsel %vm85_vm2, %v312_v57, 0.0 }
 0x248   :  { %315 = vadd.xlane.f32.xlu1 %v314_v59  ;;  %v401_v61 = vrot.slane %v394_v58, %v586_v8 }
 0x24b   :  { %v397_v60 = vpop.permute.xlu1 %396 }
 0x24c   :  { %v405_v62 = vrot.slane %v397_v60, %v586_v8 }
 0x24e   :  { %v406_v63 = vsel %vm82_vm1, %v405_v62, %v401_v61 }
 0x24f   :  { %v408_v0 = vsel %vm85_vm2, %v406_v63, 0.0 }
 0x250   :  { %409 = vadd.xlane.f32.xlu0 %v408_v0 }
 0x27e   :  { %v126_v1 = vpop.xlane.xlu1 %125 }
 0x27f   :  { %v131_v3 = vrot.slane %v126_v1, %v590_v10  ;;  %v135_v5 = vrot.slane %v126_v1, %v625_v2 }
 0x281   :  { %525 = vrcp.f32 %v131_v3 }
 0x282   :  { %527 = vrcp.f32 %v135_v5 }
 0x28b   :  { %v526_v6 = vpop.eup %525 }
 0x28c   :  { %v528_v7 = vpop.eup %527  ;;  %v139_v9 = vmul.f32 %v526_v6, %v629_v13 }
 0x28d   :  { %v141_v11 = vmul.f32 %v528_v7, %v631_v14 }
 0x28e   :  { %144 = vperm.xlu1 %507, %v139_v9  }
 0x28f   :  { %149 = vperm.xlu0 %508, %v141_v11  }
 0x2cd   :  { %v222_v8 = vpop.xlane.xlu0 %221 }
 0x2ce   :  { %v227_v12 = vrot.slane %v222_v8, %v590_v10  ;;  %v231_v4 = vrot.slane %v222_v8, %v625_v2  ;;  %v500_v8 = vld [vmem:[%s716_s3] ss:$0 sm:$0xff] }
 0x2d0   :  { %529 = vrcp.f32 %v227_v12 }
 0x2d1   :  { %531 = vrcp.f32 %v231_v4  ;;  %v501_v4 = vld [vmem:[%s717_s4] ss:$0 sm:$0xff] }
 0x2d5   :  { %v316_v15 = vpop.xlane.xlu1 %315 }
 0x2d6   :  { %v321_v16 = vrot.slane %v316_v15, %v590_v10  ;;  %v325_v17 = vrot.slane %v316_v15, %v625_v2 }
 0x2d8   :  { %533 = vrcp.f32 %v321_v16 }
 0x2d9   :  { %535 = vrcp.f32 %v325_v17 }
 0x2da   :  { %v530_v18 = vpop.eup %529 }
 0x2db   :  { %v235_v13 = vmul.f32 %v530_v18, %v641_v32  ;;  %v532_v14 = vpop.eup %531 }
 0x2dc   :  { %v237_v22 = vmul.f32 %v532_v14, %v644_v35 }
 0x2dd   :  { %240 = vperm.xlu1 %507, %v235_v13   ;;  %v410_v19 = vpop.xlane.xlu0 %409 }
 0x2de   :  { %v415_v20 = vrot.slane %v410_v19, %v590_v10  ;;  %v419_v21 = vrot.slane %v410_v19, %v625_v2 }
 0x2e0   :  { %537 = vrcp.f32 %v415_v20 }
 0x2e1   :  { %539 = vrcp.f32 %v419_v21  ;;  %245 = vperm.xlu1 %507, %v237_v22  }
 0x2e2   :  { %v534_v23 = vpop.eup %533 }
 0x2e3   :  { %v536_v24 = vpop.eup %535  ;;  %v329_v25 = vmul.f32 %v534_v23, %v647_v37 }
 0x2e4   :  { %v331_v26 = vmul.f32 %v536_v24, %v650_v38 }
 0x2e5   :  { %334 = vperm.xlu0 %508, %v329_v25  }
 0x2e6   :  { %339 = vperm.xlu1 %507, %v331_v26  }
 0x2ea   :  { %v538_v27 = vpop.eup %537 }
 0x2eb   :  { %v540_v28 = vpop.eup %539  ;;  %v423_v29 = vmul.f32 %v538_v27, %v653_v39 }
 0x2ec   :  { %v425_v10 = vmul.f32 %v540_v28, %v656_v40 }
 0x2ed   :  { %428 = vperm.xlu0 %508, %v423_v29  }
 0x2ee   :  { %433 = vperm.xlu1 %507, %v425_v10  }
 0x30d   :  { %v145_v2 = vpop.permute.xlu1 %144 }
 0x30e   :  { %v150_v32 = vpop.permute.xlu0 %149  ;;  %v152_v40 = vmul.f32 %v145_v2, %v23_v34 }
 0x30f   :  { %v153_v42 = vmul.f32 %v150_v32, %v24_v36 }
 0x35c   :  { %v241_v30 = vpop.permute.xlu1 %240 }
 0x35d   :  { %v248_v37 = vmul.f32 %v241_v30, %v23_v34 }
 0x35f   :  { %v439_v44 = vsel %vm438_vm3, %v152_v40, %v248_v37 }
 0x360   :  { %v246_v31 = vpop.permute.xlu1 %245 }
 0x361   :  { %v249_v38 = vmul.f32 %v246_v31, %v24_v36 }
 0x363   :  { %v440_v47 = vsel %vm438_vm3, %v153_v42, %v249_v38 }
 0x364   :  { %v335_v33 = vpop.permute.xlu0 %334 }
 0x365   :  { %v340_v35 = vpop.permute.xlu1 %339  ;;  %v342_v39 = vmul.f32 %v335_v33, %v23_v34 }
 0x366   :  { %v343_v41 = vmul.f32 %v340_v35, %v24_v36 }
 0x367   :  { %v442_v49 = vsel %vm441_vm4, %v439_v44, %v342_v39 }
 0x368   :  { %v443_v50 = vsel %vm441_vm4, %v440_v47, %v343_v41 }
 0x36c   :  { %v429_v43 = vpop.permute.xlu0 %428 }
 0x36d   :  { %v434_v45 = vpop.permute.xlu1 %433  ;;  %v436_v46 = vmul.f32 %v429_v43, %v23_v34 }
 0x36e   :  { %v437_v48 = vmul.f32 %v434_v45, %v24_v36 }
 0x36f   :  { %v445_v51 = vsel %vm444_vm5, %v442_v49, %v436_v46 }
 0x370   :  { %v446_v52 = vsel %vm444_vm5, %v443_v50, %v437_v48  ;;  %v448_v53 = vsel %vm447_vm6, %v445_v51, 0.0 }
 0x371   :  { %v451_v54 = vsel %vm447_vm6, %v446_v52, 0.0  ;;  %449 = vadd.xlane.f32.xlu0 %v448_v53 }
 0x372   :  { %452 = vadd.xlane.f32.xlu1 %v451_v54 }
 0x3fe   :  { %v450_v55 = vpop.xlane.xlu0 %449 }
 0x3ff   :  { %v453_v56 = vpop.xlane.xlu1 %452  ;;  %v455_v57 = vmul.f32 0.0078125, %v450_v55 }
 0x400   :  { %v456_v58 = vmul.f32 0.0078125, %v453_v56 }
 0x401   :  { %v457_v59 = vsub.f32 %v445_v51, %v455_v57 }
 0x402   :  { %v458_v60 = vsub.f32 %v446_v52, %v456_v58 }
 0x403   :  { %v459_v61 = vmul.f32 %v457_v59, %v457_v59 }
 0x404   :  { %v460_v63 = vmul.f32 %v458_v60, %v458_v60 }
 0x405   :  { %v461_v62 = vsel %vm447_vm6, %v459_v61, 0.0 }
 0x406   :  { %462 = vadd.xlane.f32.xlu0 %v461_v62  ;;  %v464_v0 = vsel %vm447_vm6, %v460_v63, 0.0 }
 0x40a   :  { %465 = vadd.xlane.f32.xlu0 %v464_v0 }
 0x493   :  { %v463_v1 = vpop.xlane.xlu0 %462 }
 0x494   :  { %v467_v3 = vmul.f32 0.0078125, %v463_v1 }
 0x496   :  { %v469_v5 = vadd.f32 1e-05, %v467_v3 }
 0x497   :  { %v466_v6 = vpop.xlane.xlu0 %465 }
 0x498   :  { %541 = vrsqrt.f32 %v469_v5  ;;  %v468_v7 = vmul.f32 0.0078125, %v466_v6 }
 0x49a   :  { %v470_v9 = vadd.f32 1e-05, %v468_v7 }
 0x49c   :  { %543 = vrsqrt.f32 %v470_v9 }
 0x4a2   :  { %v542_v11 = vpop.eup %541 }
 0x4a3   :  { %v473_v12 = vmul.f32 %v542_v11, %v457_v59 }
 0x4a5   :  { %v482_v15 = vmul.f32 %v500_v8, %v473_v12 }
 0x4a6   :  { %v544_v16 = vpop.eup %543 }
 0x4a7   :  { %v491_v17 = vadd.f32 %v501_v4, %v482_v15  ;;  %v474_v18 = vmul.f32 %v544_v16, %v458_v60 }
 0x4a9   :  { %493 = vst [vmem:[%s718_s5] sm:$0x3f] %v491_v17  ;;  %v483_v13 = vmul.f32 %v500_v8, %v474_v18 }
 0x4ab   :  { %v492_v14 = vadd.f32 %v501_v4, %v483_v13 }
 0x4ad   :  { %494 = vst [vmem:[%s718_s5 + $0x8] sm:$0x3f] %v492_v14 }

// kernel: forward.9
= control target key start
LH: loop header
LB: loop body
LE: loop exit
PB: predicated region body
PF: predicated region fallthrough
CT: control target
= control target key end

     0   :  { %vm35_vm0 = vcmask 400384   ;;  %vm220_vm1 = vcmask 596992   ;;  %vm42_vm2 = vcmask 1040384   ;;  %vm460_vm3 = vmmov 1   ;;  %s628_s3 = inlined_call_operand.vmem [shape: f32[49,128], index: 3, kind: input, shape index: {}]   ;;  %s629_s5 = inlined_call_operand.vmem [shape: f32[73,128], index: 5, kind: input, shape index: {}]   ;;  %s630_s0 = inlined_call_operand.vmem [shape: f32[12,49], index: 0, kind: input, shape index: {}]   ;;  %s631_s2 = inlined_call_operand.vmem [shape: f32[12,73], index: 2, kind: input, shape index: {}]   ;;  %s632_s4 = inlined_call_operand.vmem [shape: f32[49,128], index: 4, kind: input, shape index: {}]   ;;  %s633_s1 = inlined_call_operand.vmem [shape: f32[2,49], index: 1, kind: input, shape index: {}]   ;;  %s634_s6 = inlined_call_operand.vmem [shape: f32[12,128], index: 6, kind: output, shape index: {0}]   ;;  %s635_s8 = inlined_call_operand.vmem [shape: f32[12,128], index: 8, kind: output, shape index: {2}]   ;;  %s636_s7 = inlined_call_operand.vmem [shape: f32[2,128], index: 7, kind: output, shape index: {1}]  }
   0x1   :  { %v28_v0 = vld [vmem:[%s628_s3] sm:$0xff]  ;;  %v29_v1 = vld [vmem:[%s628_s3 + $0x8] sm:$0xff]  ;;  %v30_v2 = vld [vmem:[%s628_s3 + $0x10] sm:$0xff]  ;;  %v461_v34 = vmov 0.0|0.0   ;;  %vm462_vm5 = vmmov 0   ;;  %v463_v38 = vmov 0.0  }
   0x2   :  { %v413_v3 = vpack.c.bf16 %v29_v1, %v28_v0  ;;  %v31_v4 = vld [vmem:[%s628_s3 + $0x18] sm:$0xff]  ;;  %v210_v5 = vld [vmem:[%s629_s5] sm:$0xff]  ;;  %v211_v6 = vld [vmem:[%s629_s5 + $0x8] sm:$0xff] }
   0x3   :  { %v417_v7 = vpack.c.bf16 %v31_v4, %v30_v2  ;;  %v434_v8 = vpack.c.bf16 %v211_v6, %v210_v5  ;;  %v32_v9 = vld [vmem:[%s628_s3 + $0x20] sm:$0xff]  ;;  %v33_v10 = vld [vmem:[%s628_s3 + $0x28] sm:$0xff]  ;;  %v212_v11 = vld [vmem:[%s629_s5 + $0x10] sm:$0xff] }
   0x4   :  { %414 = vmatprep.subr.bf16.mxu1 %v413_v3  ;;  %v213_v12 = vld [vmem:[%s629_s5 + $0x18] sm:$0xff]  ;;  %v26_v13 = vld [vmem:[%s630_s0] sm:$0xff]  ;;  %v215_v16 = vld [vmem:[%s629_s5 + $0x28] sm:$0xff]  ;;  %v421_v17 = vpack.c.bf16 %v33_v10, %v32_v9 }
   0x5   :  { %416 = vmatpush3.bf16.msra.mxu1 %v413_v3  ;;  %435 = vmatprep.subr.bf16.mxu0 %v434_v8  ;;  %v438_v14 = vpack.c.bf16 %v213_v12, %v212_v11  ;;  %v214_v15 = vld [vmem:[%s629_s5 + $0x20] sm:$0xff]  ;;  %v216_v19 = vld [vmem:[%s629_s5 + $0x30] sm:$0xff]  ;;  %v217_v20 = vld [vmem:[%s629_s5 + $0x38] sm:$0xff] }
   0x6   :  { %418 = vmatprep.subr.bf16.mxu1 %v417_v7  ;;  %437 = vmatpush3.bf16.msra.mxu0 %v434_v8  ;;  %v442_v18 = vpack.c.bf16 %v215_v16, %v214_v15  ;;  %v208_v21 = vld [vmem:[%s631_s2] sm:$0xff]  ;;  %v34_v22 = vld [vmem:[%s628_s3 + $0x30] sm:$0x1]  ;;  %v446_v23 = vpack.c.bf16 %v217_v20, %v216_v19  ;;  %v125_v25 = vld [vmem:[%s632_s4 + $0x8] sm:$0xff] }
   0x7   :  { %439 = vmatprep.subr.bf16.mxu0 %v438_v14  ;;  %370 = vmatprep.mubr.msk.f32.mxu1 %vm35_vm0, %v26_v13  ;;  %v124_v24 = vld [vmem:[%s632_s4] sm:$0xff]  ;;  %v219_v27 = vld [vmem:[%s629_s5 + $0x48] sm:$0x1]  ;;  %v126_v30 = vld [vmem:[%s632_s4 + $0x10] sm:$0xff] }
   0x8   :  { %410 = vmatprep.mubr.msk.f32.mxu0 %vm220_vm1, %v208_v21  ;;  %v218_v26 = vld [vmem:[%s629_s5 + $0x40] sm:$0xff]  ;;  %v27_v28 = vld [vmem:[%s630_s0 + $0x8] sm:$0xf]  ;;  %v426_v29 = vpack.c.bf16 %v125_v25, %v124_v24  ;;  %v127_v31 = vld [vmem:[%s632_s4 + $0x18] sm:$0xff] }
   0x9   :  { %420 = vmatpush3.bf16.msra.mxu1 %v417_v7  ;;  %v450_v32 = vpack.c.bf16 %v219_v27, %v218_v26  ;;  %vm586_vm4 = vmpackc.low %vm42_vm2, %vm460_vm3  ;;  %v429_v35 = vpack.c.bf16 %v127_v31, %v126_v30  ;;  %v128_v36 = vld [vmem:[%s632_s4 + $0x20] sm:$0xff]  ;;  %v129_v37 = vld [vmem:[%s632_s4 + $0x28] sm:$0xff] }
   0xa   :  { %422 = vmatprep.subr.bf16.mxu1 %v421_v17  ;;  %441 = vmatpush3.bf16.msra.mxu0 %v438_v14  ;;  %v432_v39 = vpack.c.bf16 %v129_v37, %v128_v36  ;;  %v209_v40 = vld [vmem:[%s631_s2 + $0x8] sm:$0xf]  ;;  %v130_v41 = vld [vmem:[%s632_s4 + $0x30] sm:$0x1]  ;;  %v123_v42 = vld [vmem:[%s633_s1] sm:$0x3] }
   0xb   :  { %443 = vmatprep.subr.bf16.mxu0 %v442_v18 }
   0xd   :  { %424 = vmatpush3.bf16.msra.mxu1 %v421_v17 }
   0xe   :  { %368 = vmatprep.subr.msk.mxu1 %vm42_vm2, %v34_v22  ;;  %445 = vmatpush3.bf16.msra.mxu0 %v442_v18 }
   0xf   :  { %447 = vmatprep.subr.bf16.mxu0 %v446_v23 }
  0x11   :  { %369 = vmatpush3.msk.msra.mxu1 %vm42_vm2, %v34_v22 }
  0x12   :  { %371 = vmatmul.mubr.msk.f32.vlgmr.msra.gmra.mrb[0].mxu1 %vm35_vm0, %v27_v28  ;;  %425 = vmatprep.subr.bf16.mxu1 %v461_v34 }
  0x13   :  { %427 = vmatpush3.bf16.msra.mxu1 %v426_v29  ;;  %449 = vmatpush3.bf16.msra.mxu0 %v446_v23 }
  0x14   :  { %428 = vmatprep.subr.bf16.mxu1 %v461_v34  ;;  %452 = vmatprep.subr.msk.bf16.mxu0 %vm586_vm4, %v450_v32 }
  0x15   :  { %387 = vmatprep.mubr.msk.f32.mxu1 %vm462_vm5, %v463_v38 }
  0x17   :  { %430 = vmatpush3.bf16.msra.mxu1 %v429_v35  ;;  %455 = vmatpush3.bf16.msk.msra.mxu0 %vm586_vm4, %v450_v32 }
  0x18   :  { %431 = vmatprep.subr.bf16.mxu1 %v461_v34 }
  0x1a   :  { %411 = vmatmul.mubr.msk.f32.vlgmr.msra.gmra.mrb[0].mxu0 %vm220_vm1, %v209_v40 }
  0x1b   :  { %433 = vmatpush3.bf16.msra.mxu1 %v432_v39 }
  0x1c   :  { %385 = vmatprep.subr.mxu1 %v463_v38 }
  0x1f   :  { %386 = vmatpush3.msk.msra.mxu1 %vm42_vm2, %v130_v41 }
  0x20   :  { %388 = vmatmul.mubr.msk.f32.vlgmr.msra.gmra.mrb[2].mxu1 %vm35_vm0, %v123_v42 }
  0xe5   :  { %v372_v43 = vpop.f32.mrb[0].mxu1 }
  0xe6   :  { %122 = vst [vmem:[%s634_s6 + $0x8] sm:$0xf] %v372_v43  ;;  %v112_v44 = vpop.f32.mrb[1].mxu1 }
  0xe7   :  { %121 = vst [vmem:[%s634_s6] sm:$0xff] %v112_v44 }
  0xed   :  { %v412_v45 = vpop.f32.mrb[0].mxu0 }
  0xee   :  { %306 = vst [vmem:[%s635_s8 + $0x8] sm:$0xf] %v412_v45  ;;  %v296_v46 = vpop.f32.mrb[1].mxu0 }
  0xef   :  { %305 = vst [vmem:[%s635_s8] sm:$0xff] %v296_v46 }
  0xf3   :  { %v203_v47 = vpop.f32.mrb[2].mxu1 }
  0xf4   :  { %207 = vst [vmem:[%s636_s7] sm:$0x3] %v203_v47  ;;  %v389_v48 = vpop.f32.mrb[3].mxu1 }

// kernel: forward.12
= control target key start
LH: loop header
LB: loop body
LE: loop exit
PB: predicated region body
PF: predicated region fallthrough
CT: control target
= control target key end

     0   :  { %v1031_v3 = vmov 0.0   ;;  %vm96_vm0 = vcmask 596992   ;;  %vm115_vm1 = vcmask 1040384   ;;  %vm1032_vm2 = vmmov 1   ;;  %s1033_s11 = smov 64   ;;  %s1440_s1 = inlined_call_operand.vmem [shape: f32[201,192], index: 1, kind: input, shape index: {}]   ;;  %s1441_s2 = inlined_call_operand.vmem [shape: f32[64,192], index: 2, kind: input, shape index: {}]   ;;  %s1442_s0 = inlined_call_operand.vmem [shape: f32[48,201], index: 0, kind: input, shape index: {}]   ;;  %s1443_s4 = inlined_call_operand.vmem [shape: f32[1,192], index: 4, kind: input, shape index: {}]   ;;  %s1444_s3 = inlined_call_operand.vmem [shape: f32[1,192], index: 3, kind: input, shape index: {}]   ;;  %s1445_s5 = inlined_call_operand.vmem [shape: f32[8,64], index: 5, kind: output, shape index: {}]  }
   0x1   :  { %v33_v0 = vld [vmem:[%s1440_s1 + $0x8] sm:$0xff]  ;;  %v35_v1 = vld [vmem:[%s1440_s1 + $0x18] sm:$0xff]  ;;  %v32_v2 = vld [vmem:[%s1440_s1] sm:$0xff]  ;;  %319 = vmatprep.mubr.f32.mxu1 %v1031_v3  ;;  %vm251_vm4 = vcmask 523264  }
   0x2   :  { %v842_v4 = vpack.c.bf16 %v35_v1, %v33_v0  ;;  %v34_v5 = vld [vmem:[%s1440_s1 + $0x10] sm:$0xff]  ;;  %v37_v6 = vld [vmem:[%s1440_s1 + $0x28] sm:$0xff]  ;;  %v39_v7 = vld [vmem:[%s1440_s1 + $0x38] sm:$0xff] }
   0x3   :  { %v844_v8 = vpack.c.bf16 %v34_v5, %v32_v2  ;;  %v846_v9 = vpack.c.bf16 %v39_v7, %v37_v6  ;;  %v36_v10 = vld [vmem:[%s1440_s1 + $0x20] sm:$0xff]  ;;  %v38_v11 = vld [vmem:[%s1440_s1 + $0x30] sm:$0xff]  ;;  %v41_v12 = vld [vmem:[%s1440_s1 + $0x48] sm:$0xff] }
   0x4   :  { %843 = vmatprep.subr.bf16.mxu0 %v842_v4  ;;  %v43_v13 = vld [vmem:[%s1440_s1 + $0x58] sm:$0xff]  ;;  %v848_v14 = vpack.c.bf16 %v38_v11, %v36_v10  ;;  %v40_v16 = vld [vmem:[%s1440_s1 + $0x40] sm:$0xff]  ;;  %v42_v17 = vld [vmem:[%s1440_s1 + $0x50] sm:$0xff] }
   0x5   :  { %845 = vmatpush1.bf16.msra.mxu0 %v844_v8  ;;  %v850_v15 = vpack.c.bf16 %v43_v13, %v41_v12  ;;  %v45_v18 = vld [vmem:[%s1440_s1 + $0x68] sm:$0xff]  ;;  %v47_v19 = vld [vmem:[%s1440_s1 + $0x78] sm:$0xff]  ;;  %v852_v20 = vpack.c.bf16 %v42_v17, %v40_v16  ;;  %v44_v22 = vld [vmem:[%s1440_s1 + $0x60] sm:$0xff] }
   0x6   :  { %847 = vmatprep.subr.bf16.mxu0 %v846_v9  ;;  %v854_v21 = vpack.c.bf16 %v47_v19, %v45_v18  ;;  %v46_v23 = vld [vmem:[%s1440_s1 + $0x70] sm:$0xff]  ;;  %v49_v24 = vld [vmem:[%s1440_s1 + $0x88] sm:$0xff]  ;;  %v51_v25 = vld [vmem:[%s1440_s1 + $0x98] sm:$0xff] }
   0x7   :  { %v856_v26 = vpack.c.bf16 %v46_v23, %v44_v22  ;;  %v48_v27 = vld [vmem:[%s1440_s1 + $0x80] sm:$0xff]  ;;  %v224_v28 = vld [vmem:[%s1441_s2 + $0x8] sm:$0xff]  ;;  %v226_v29 = vld [vmem:[%s1441_s2 + $0x18] sm:$0xff]  ;;  %v858_v30 = vpack.c.bf16 %v51_v25, %v49_v24 }
   0x8   :  { %v50_v31 = vld [vmem:[%s1440_s1 + $0x90] sm:$0xff]  ;;  %v1131_v32 = vpack.c.bf16 %v226_v29, %v224_v28  ;;  %v223_v33 = vld [vmem:[%s1441_s2] sm:$0xff]  ;;  %v53_v35 = vld [vmem:[%s1440_s1 + $0xa8] sm:$0xff] }
   0x9   :  { %849 = vmatpush1.bf16.msra.mxu0 %v848_v14  ;;  %v225_v34 = vld [vmem:[%s1441_s2 + $0x10] sm:$0xff]  ;;  %v55_v36 = vld [vmem:[%s1440_s1 + $0xb8] sm:$0xff]  ;;  %v228_v38 = vld [vmem:[%s1441_s2 + $0x28] sm:$0xff]  ;;  %v860_v40 = vpack.c.bf16 %v50_v31, %v48_v27 }
   0xa   :  { %851 = vmatprep.subr.bf16.mxu0 %v850_v15  ;;  %v1145_v37 = vpack.c.bf16 %v225_v34, %v223_v33  ;;  %897 = vmatprep.subr.bf16.mxu1 %v1131_v32  ;;  %v230_v39 = vld [vmem:[%s1441_s2 + $0x38] sm:$0xff]  ;;  %v52_v41 = vld [vmem:[%s1440_s1 + $0xa0] sm:$0xff]  ;;  %v229_v44 = vld [vmem:[%s1441_s2 + $0x30] sm:$0xff]  ;;  %v862_v45 = vpack.c.bf16 %v55_v36, %v53_v35 }
   0xb   :  { %v1158_v42 = vpack.c.bf16 %v230_v39, %v228_v38  ;;  %v227_v43 = vld [vmem:[%s1441_s2 + $0x20] sm:$0xff]  ;;  %v54_v46 = vld [vmem:[%s1440_s1 + $0xb0] sm:$0xff]  ;;  %v232_v48 = vld [vmem:[%s1441_s2 + $0x48] sm:$0xff] }
   0xc   :  { %899 = vmatpush1.bf16.msra.mxu1 %v1145_v37  ;;  %v1169_v47 = vpack.c.bf16 %v229_v44, %v227_v43  ;;  %v234_v49 = vld [vmem:[%s1441_s2 + $0x58] sm:$0xff]  ;;  %v57_v50 = vld [vmem:[%s1440_s1 + $0xc8] sm:$0xff]  ;;  %v231_v53 = vld [vmem:[%s1441_s2 + $0x40] sm:$0xff]  ;;  %v864_v55 = vpack.c.bf16 %v54_v46, %v52_v41 }
   0xd   :  { %853 = vmatpush1.bf16.msra.mxu0 %v852_v20  ;;  %v59_v51 = vld [vmem:[%s1440_s1 + $0xd8] sm:$0xff]  ;;  %901 = vmatprep.subr.bf16.mxu1 %v1158_v42  ;;  %v1184_v52 = vpack.c.bf16 %v234_v49, %v232_v48  ;;  %v233_v54 = vld [vmem:[%s1441_s2 + $0x50] sm:$0xff]  ;;  %v236_v57 = vld [vmem:[%s1441_s2 + $0x68] sm:$0xff]  ;;  %v86_v48 = vlaneseq }
   0xe   :  { %855 = vmatprep.subr.bf16.mxu0 %v854_v21  ;;  %v1193_v56 = vpack.c.bf16 %v233_v54, %v231_v53  ;;  %v238_v58 = vld [vmem:[%s1441_s2 + $0x78] sm:$0xff]  ;;  %v866_v59 = vpack.c.bf16 %v59_v51, %v57_v50  ;;  %v56_v60 = vld [vmem:[%s1440_s1 + $0xc0] sm:$0xff]  ;;  %v58_v61 = vld [vmem:[%s1440_s1 + $0xd0] sm:$0xff] }
   0xf   :  { %v1208_v62 = vpack.c.bf16 %v238_v58, %v236_v57  ;;  %v235_v63 = vld [vmem:[%s1441_s2 + $0x60] sm:$0xff]  ;;  %v61_v0 = vld [vmem:[%s1440_s1 + $0xe8] sm:$0xff]  ;;  %v63_v1 = vld [vmem:[%s1440_s1 + $0xf8] sm:$0xff]  ;;  %v868_v5 = vpack.c.bf16 %v58_v61, %v56_v60  ;;  %v87_v49 = vshrl.u32 %v86_v48, 7 }
  0x10   :  { %903 = vmatpush1.bf16.msra.mxu1 %v1169_v47  ;;  %v237_v2 = vld [vmem:[%s1441_s2 + $0x70] sm:$0xff]  ;;  %v21_v4 = vld [vmem:[%s1442_s0 + $0x8] sm:$0xff]  ;;  %v870_v7 = vpack.c.bf16 %v63_v1, %v61_v0  ;;  %v60_v8 = vld [vmem:[%s1440_s1 + $0xe0] sm:$0xff] }
  0x11   :  { %857 = vmatpush1.bf16.msra.mxu0 %v856_v26  ;;  %905 = vmatprep.subr.bf16.mxu1 %v1184_v52  ;;  %v1226_v6 = vpack.c.bf16 %v237_v2, %v235_v63  ;;  %v62_v9 = vld [vmem:[%s1440_s1 + $0xf0] sm:$0xff]  ;;  %v65_v10 = vld [vmem:[%s1440_s1 + $0x108] sm:$0xff]  ;;  %v67_v11 = vld [vmem:[%s1440_s1 + $0x118] sm:$0xff]  ;;  %v88_v50 = vsub.s32 0, %v87_v49  ;;  %v92_v2 = vsub.s32 1, %v87_v49 }
  0x12   :  { %859 = vmatprep.subr.bf16.mxu0 %v858_v30  ;;  %825 = vmatprep.mubr.msk.f32.mxu0 %vm96_vm0, %v21_v4  ;;  %v872_v12 = vpack.c.bf16 %v62_v9, %v60_v8  ;;  %v874_v13 = vpack.c.bf16 %v67_v11, %v65_v10  ;;  %v64_v14 = vld [vmem:[%s1440_s1 + $0x100] sm:$0xff]  ;;  %v66_v15 = vld [vmem:[%s1440_s1 + $0x110] sm:$0xff]  ;;  %v69_v16 = vld [vmem:[%s1440_s1 + $0x128] sm:$0xff] }
  0x13   :  { %v71_v17 = vld [vmem:[%s1440_s1 + $0x138] sm:$0xff]  ;;  %v876_v18 = vpack.c.bf16 %v66_v15, %v64_v14  ;;  %v68_v20 = vld [vmem:[%s1440_s1 + $0x120] sm:$0xff]  ;;  %v70_v21 = vld [vmem:[%s1440_s1 + $0x130] sm:$0xff] }
  0x14   :  { %907 = vmatpush1.bf16.msra.mxu1 %v1193_v56  ;;  %v878_v19 = vpack.c.bf16 %v71_v17, %v69_v16  ;;  %v73_v22 = vld [vmem:[%s1440_s1 + $0x148] sm:$0xff]  ;;  %v75_v23 = vld [vmem:[%s1440_s1 + $0x158] sm:$0xff]  ;;  %v880_v24 = vpack.c.bf16 %v70_v21, %v68_v20  ;;  %v72_v26 = vld [vmem:[%s1440_s1 + $0x140] sm:$0xff] }
  0x15   :  { %861 = vmatpush1.bf16.msra.mxu0 %v860_v40  ;;  %909 = vmatprep.subr.bf16.mxu1 %v1208_v62  ;;  %v882_v25 = vpack.c.bf16 %v75_v23, %v73_v22  ;;  %v74_v27 = vld [vmem:[%s1440_s1 + $0x150] sm:$0xff]  ;;  %v77_v28 = vld [vmem:[%s1440_s1 + $0x168] sm:$0xff]  ;;  %v79_v29 = vld [vmem:[%s1440_s1 + $0x178] sm:$0xff] }
  0x16   :  { %863 = vmatprep.subr.bf16.mxu0 %v862_v45  ;;  %v884_v30 = vpack.c.bf16 %v74_v27, %v72_v26  ;;  %v886_v31 = vpack.c.bf16 %v79_v29, %v77_v28  ;;  %v76_v33 = vld [vmem:[%s1440_s1 + $0x160] sm:$0xff]  ;;  %v78_v34 = vld [vmem:[%s1440_s1 + $0x170] sm:$0xff]  ;;  %v81_v35 = vld [vmem:[%s1440_s1 + $0x188] sm:$0xff] }
  0x17   :  { %v83_v36 = vld [vmem:[%s1440_s1 + $0x198] sm:$0x1]  ;;  %v888_v38 = vpack.c.bf16 %v78_v34, %v76_v33  ;;  %v80_v40 = vld [vmem:[%s1440_s1 + $0x180] sm:$0xff]  ;;  %v82_v41 = vld [vmem:[%s1440_s1 + $0x190] sm:$0x1] }
  0x18   :  { %911 = vmatpush1.bf16.msra.mxu1 %v1226_v6  ;;  %v890_v39 = vpack.c.bf16 %v83_v36, %v81_v35  ;;  %vm891_vm3 = vmpackc.low %vm115_vm1, %vm1032_vm2  ;;  %v893_v43 = vpack.c.bf16 %v82_v41, %v80_v40  ;;  %v20_v44 = vld [vmem:[%s1442_s0] sm:$0xff] }
  0x19   :  { %865 = vmatpush1.bf16.msra.mxu0 %v864_v55  ;;  %913 = vmatprep.subr.bf16.mxu1 %v1131_v32  ;;  %v239_v51 = vld [vmem:[%s1443_s4] sm:$0x3] }
  0x1a   :  { %867 = vmatprep.subr.bf16.mxu0 %v866_v59  ;;  %v84_v53 = vld [vmem:[%s1444_s3] sm:$0x3]  ;;  %v1325_v54 = vrot.slane %v239_v51, %v88_v50  ;;  %v1331_v4 = vrot.slane %v239_v51, %v92_v2 }
  0x1b   :  { %320 = vmatmul.mubr.f32.vlgmr.msra.gmra.mrb[0].mxu1 %v1031_v3  ;;  %v1327_v55 = vrot.slane %v84_v53, %v88_v50 }
  0x1c   :  { %915 = vmatpush1.bf16.msra.mxu1 %v1145_v37  ;;  %413 = vmatprep.mubr.f32.mxu1 %v1031_v3 }
  0x1d   :  { %869 = vmatpush1.bf16.msra.mxu0 %v868_v5  ;;  %917 = vmatprep.subr.bf16.mxu1 %v1158_v42  ;;  %v1333_v5 = vrot.slane %v84_v53, %v92_v2 }
  0x1e   :  { %871 = vmatprep.subr.bf16.mxu0 %v870_v7 }
  0x20   :  { %919 = vmatpush1.bf16.msra.mxu1 %v1169_v47 }
  0x21   :  { %873 = vmatpush1.bf16.msra.mxu0 %v872_v12  ;;  %921 = vmatprep.subr.bf16.mxu1 %v1184_v52  ;;  %v23_v12 = vld [vmem:[%s1442_s0 + $0x18] sm:$0xff] }
  0x22   :  { %875 = vmatprep.subr.bf16.mxu0 %v874_v13  ;;  %v22_v13 = vld [vmem:[%s1442_s0 + $0x10] sm:$0xff] }
  0x24   :  { %923 = vmatpush1.bf16.msra.mxu1 %v1193_v56 }
  0x25   :  { %877 = vmatpush1.bf16.msra.mxu0 %v876_v18  ;;  %925 = vmatprep.subr.bf16.mxu1 %v1208_v62 }
  0x26   :  { %879 = vmatprep.subr.bf16.mxu0 %v878_v19 }
  0x28   :  { %927 = vmatpush1.bf16.msra.mxu1 %v1226_v6 }
  0x29   :  { %881 = vmatpush1.bf16.msra.mxu0 %v880_v24  ;;  %929 = vmatprep.subr.bf16.mxu1 %v1131_v32 }
  0x2a   :  { %883 = vmatprep.subr.bf16.mxu0 %v882_v25 }
  0x2d   :  { %885 = vmatpush1.bf16.msra.mxu0 %v884_v30 }
  0x2e   :  { %887 = vmatprep.subr.bf16.mxu0 %v886_v31 }
  0x31   :  { %889 = vmatpush1.bf16.msra.mxu0 %v888_v38  ;;  %v25_v38 = vld [vmem:[%s1442_s0 + $0x28] sm:$0xff] }
  0x32   :  { %892 = vmatprep.subr.msk.bf16.mxu0 %vm891_vm3, %v890_v39  ;;  %v24_v39 = vld [vmem:[%s1442_s0 + $0x20] sm:$0xff] }
  0x35   :  { %895 = vmatpush1.bf16.msk.msra.mxu0 %vm891_vm3, %v893_v43 }
  0x36   :  { %961 = vmatprep.subr.bf16.mxu0 %v1131_v32 }
  0x38   :  { %187 = vmatmul.mubr.f32.vlgmr.msra.gmra.mrb[0].mxu0 %v20_v44 }
  0x39   :  { %963 = vmatpush1.bf16.msra.mxu0 %v1145_v37  ;;  %826 = vmatprep.mubr.msk.f32.mxu0 %vm96_vm0, %v23_v12 }
  0x3a   :  { %965 = vmatprep.subr.bf16.mxu0 %v1158_v42 }
  0x3c   :  { %193 = vmatmul.mubr.f32.gmra.mrb[2].mxu0 %v22_v13 }
  0x3d   :  { %967 = vmatpush1.bf16.msra.mxu0 %v1169_v47  ;;  %827 = vmatprep.mubr.msk.f32.mxu0 %vm96_vm0, %v25_v38 }
  0x3e   :  { %969 = vmatprep.subr.bf16.mxu0 %v1184_v52 }
  0x40   :  { %199 = vmatmul.mubr.f32.gmra.mrb[4].mxu0 %v24_v39 }
  0x41   :  { %971 = vmatpush1.bf16.msra.mxu0 %v1193_v56 }
  0x42   :  { %973 = vmatprep.subr.bf16.mxu0 %v1208_v62 }
  0x45   :  { %975 = vmatpush1.bf16.msra.mxu0 %v1226_v6 }
  0xee   :  { %v321_v45 = vpop.f32.mrb[0].mxu1 }
  0xef   :  { %v323_v46 = vpop.f32.mrb[1].mxu1  ;;  %v322_v57 = vadd.f32 %v321_v45, %v1325_v54 }
  0xf0   :  { %v324_v7 = vadd.f32 %v323_v46, %v1331_v4 }
 0x10b   :  { %v188_v58 = vpop.f32.mrb[0].mxu0 }
 0x10c   :  { %v189_v59 = vadd.f32 %v188_v58, %v1327_v55  ;;  %v190_v60 = vpop.f32.mrb[1].mxu0 }
 0x10d   :  { %v191_v10 = vadd.f32 %v190_v60, %v1333_v5 }
 0x10e   :  { %v326_v61 = vadd.f32 %v322_v57, %v189_v59 }
 0x10f   :  { %v194_v20 = vpop.f32.mrb[2].mxu0 }
 0x110   :  { %v831_v63 = vmul.f32 -1.442695, %v326_v61  ;;  %v196_v21 = vpop.f32.mrb[3].mxu0  ;;  %v195_v23 = vadd.f32 %v194_v20, %v1327_v55 }
 0x111   :  { %v197_v34 = vadd.f32 %v196_v21, %v1333_v5 }
 0x112   :  { %995 = vpow2.f32 %v831_v63 }
 0x113   :  { %v200_v48 = vpop.f32.mrb[4].mxu0 }
 0x114   :  { %v202_v49 = vpop.f32.mrb[5].mxu0  ;;  %v201_v51 = vadd.f32 %v200_v48, %v1327_v55 }
 0x115   :  { %v203_v2 = vadd.f32 %v202_v49, %v1333_v5 }
 0x11c   :  { %v996_v0 = vpop.eup %995 }
 0x11d   :  { %v330_v1 = vadd.f32 1.0, %v996_v0 }
 0x11f   :  { %997 = vrcp.f32 %v330_v1 }
 0x129   :  { %v998_v8 = vpop.eup %997 }
 0x12a   :  { %v333_v9 = vmul.f32 %v998_v8, %v324_v7  ;;  %v336_v15 = vsub.f32 1.0, %v998_v8  ;;  %v342_v17 = vmul.f32 0.0, %v998_v8 }
 0x12c   :  { %v334_v11 = vadd.f32 %v333_v9, %v191_v10  ;;  %v26_v9 = vld [vmem:[%s1442_s0 + $0x30] sm:$0xff] }
 0x12e   :  { %999 = vtanh.f32 %v334_v11 }
 0x138   :  { %v1000_v14 = vpop.eup %999 }
 0x139   :  { %338 = vrot.lane.b32.xlu0 %v1000_v14, %s1033_s11 }
 0x1ab   :  { %v339_v16 = vpop.permute.xlu0 %338 }
 0x1ac   :  { %v341_v18 = vmul.f32 %v339_v16, %v336_v15 }
 0x1ae   :  { %v343_v19 = vadd.f32 %v342_v17, %v341_v18 }
 0x1b0   :  { %345 = vrot.lane.b32.xlu0 %v343_v19, %s1033_s11 }
 0x222   :  { %v346_v22 = vpop.permute.xlu0 %345 }
 0x223   :  { %832 = vmatmul.mubr.msk.f32.vlgmr.msra.gmra.mrb[2].mxu1 %vm251_vm4, %v346_v22 }
 0x224   :  { %931 = vmatpush1.bf16.msra.mxu1 %v1145_v37  ;;  %507 = vmatprep.mubr.f32.mxu1 %v1031_v3 }
 0x225   :  { %933 = vmatprep.subr.bf16.mxu1 %v1158_v42 }
 0x228   :  { %935 = vmatpush1.bf16.msra.mxu1 %v1169_v47 }
 0x229   :  { %937 = vmatprep.subr.bf16.mxu1 %v1184_v52 }
 0x22c   :  { %939 = vmatpush1.bf16.msra.mxu1 %v1193_v56 }
 0x22d   :  { %941 = vmatprep.subr.bf16.mxu1 %v1208_v62 }
 0x230   :  { %943 = vmatpush1.bf16.msra.mxu1 %v1226_v6 }
 0x231   :  { %945 = vmatprep.subr.bf16.mxu1 %v1131_v32 }
 0x2f6   :  { %v415_v24 = vpop.f32.mrb[2].mxu1 }
 0x2f7   :  { %v416_v25 = vadd.f32 %v415_v24, %v1325_v54  ;;  %v417_v26 = vpop.f32.mrb[3].mxu1 }
 0x2f8   :  { %v418_v31 = vadd.f32 %v417_v26, %v1331_v4  ;;  %v28_v26 = vld [vmem:[%s1442_s0 + $0x40] sm:$0xff] }
 0x2f9   :  { %v420_v27 = vadd.f32 %v416_v25, %v195_v23 }
 0x2fb   :  { %v833_v28 = vmul.f32 -1.442695, %v420_v27  ;;  %v31_v27 = vld [vmem:[%s1442_s0 + $0x58] sm:$0xff] }
 0x2fd   :  { %1001 = vpow2.f32 %v833_v28  ;;  %v30_v28 = vld [vmem:[%s1442_s0 + $0x50] sm:$0xff] }
 0x307   :  { %v1002_v29 = vpop.eup %1001 }
 0x308   :  { %v424_v30 = vadd.f32 1.0, %v1002_v29 }
 0x30a   :  { %1003 = vrcp.f32 %v424_v30 }
 0x314   :  { %v1004_v33 = vpop.eup %1003 }
 0x315   :  { %v427_v35 = vmul.f32 %v1004_v33, %v418_v31  ;;  %v430_v41 = vsub.f32 1.0, %v1004_v33  ;;  %v436_v44 = vmul.f32 %v1004_v33, %v343_v19 }
 0x317   :  { %v428_v36 = vadd.f32 %v427_v35, %v197_v34 }
 0x319   :  { %1005 = vtanh.f32 %v428_v36 }
 0x323   :  { %v1006_v40 = vpop.eup %1005 }
 0x324   :  { %432 = vrot.lane.b32.xlu1 %v1006_v40, %s1033_s11 }
 0x396   :  { %v433_v43 = vpop.permute.xlu1 %432 }
 0x397   :  { %v435_v45 = vmul.f32 %v433_v43, %v430_v41 }
 0x399   :  { %v437_v46 = vadd.f32 %v436_v44, %v435_v45 }
 0x39b   :  { %439 = vrot.lane.b32.xlu1 %v437_v46, %s1033_s11 }
 0x40d   :  { %v440_v50 = vpop.permute.xlu1 %439 }
 0x40e   :  { %834 = vmatmul.mubr.msk.f32.vlgmr.msra.gmra.mrb[4].mxu1 %vm251_vm4, %v440_v50 }
 0x40f   :  { %947 = vmatpush1.bf16.msra.mxu1 %v1145_v37  ;;  %601 = vmatprep.mubr.f32.mxu1 %v1031_v3 }
 0x410   :  { %949 = vmatprep.subr.bf16.mxu1 %v1158_v42 }
 0x413   :  { %951 = vmatpush1.bf16.msra.mxu1 %v1169_v47 }
 0x414   :  { %953 = vmatprep.subr.bf16.mxu1 %v1184_v52 }
 0x417   :  { %955 = vmatpush1.bf16.msra.mxu1 %v1193_v56 }
 0x418   :  { %957 = vmatprep.subr.bf16.mxu1 %v1208_v62 }
 0x41b   :  { %959 = vmatpush1.bf16.msra.mxu1 %v1226_v6 }
 0x41c   :  { %977 = vmatprep.subr.bf16.mxu1 %v1131_v32  ;;  %v27_v32 = vld [vmem:[%s1442_s0 + $0x38] sm:$0xff] }
 0x41d   :  { %828 = vmatprep.mubr.msk.f32.mxu0 %vm96_vm0, %v27_v32 }
 0x41e   :  { %205 = vmatmul.mubr.f32.gmra.mrb[6].mxu0 %v26_v9 }
 0x4e1   :  { %v509_v53 = vpop.f32.mrb[4].mxu1 }
 0x4e2   :  { %v510_v57 = vadd.f32 %v509_v53, %v1325_v54  ;;  %v511_v58 = vpop.f32.mrb[5].mxu1 }
 0x4e3   :  { %v512_v0 = vadd.f32 %v511_v58, %v1331_v4 }
 0x4e4   :  { %v514_v59 = vadd.f32 %v510_v57, %v201_v51 }
 0x4e6   :  { %v835_v60 = vmul.f32 -1.442695, %v514_v59 }
 0x4e8   :  { %1007 = vpow2.f32 %v835_v60 }
 0x4f1   :  { %v206_v16 = vpop.f32.mrb[6].mxu0 }
 0x4f2   :  { %v1008_v61 = vpop.eup %1007  ;;  %v208_v17 = vpop.f32.mrb[7].mxu0  ;;  %v207_v19 = vadd.f32 %v206_v16, %v1327_v55 }
 0x4f3   :  { %v518_v63 = vadd.f32 1.0, %v1008_v61 }
 0x4f5   :  { %1009 = vrcp.f32 %v518_v63 }
 0x4ff   :  { %v1010_v1 = vpop.eup %1009 }
 0x500   :  { %v521_v7 = vmul.f32 %v1010_v1, %v512_v0  ;;  %v524_v11 = vsub.f32 1.0, %v1010_v1  ;;  %v530_v13 = vmul.f32 %v1010_v1, %v437_v46 }
 0x502   :  { %v522_v8 = vadd.f32 %v521_v7, %v203_v2 }
 0x504   :  { %1011 = vtanh.f32 %v522_v8 }
 0x50e   :  { %v1012_v10 = vpop.eup %1011 }
 0x50f   :  { %526 = vrot.lane.b32.xlu0 %v1012_v10, %s1033_s11 }
 0x581   :  { %v527_v12 = vpop.permute.xlu0 %526 }
 0x582   :  { %v529_v14 = vmul.f32 %v527_v12, %v524_v11 }
 0x584   :  { %v531_v15 = vadd.f32 %v530_v13, %v529_v14 }
 0x586   :  { %533 = vrot.lane.b32.xlu1 %v531_v15, %s1033_s11 }
 0x5f8   :  { %v534_v18 = vpop.permute.xlu1 %533 }
 0x5f9   :  { %836 = vmatmul.mubr.msk.f32.vlgmr.msra.gmra.mrb[6].mxu1 %vm251_vm4, %v534_v18 }
 0x5fa   :  { %979 = vmatpush1.bf16.msra.mxu1 %v1145_v37  ;;  %789 = vmatprep.mubr.f32.mxu1 %v1031_v3 }
 0x5fb   :  { %981 = vmatprep.subr.bf16.mxu1 %v1158_v42 }
 0x5fe   :  { %983 = vmatpush1.bf16.msra.mxu1 %v1169_v47 }
 0x5ff   :  { %985 = vmatprep.subr.bf16.mxu1 %v1184_v52 }
 0x602   :  { %987 = vmatpush1.bf16.msra.mxu1 %v1193_v56  ;;  %v209_v56 = vadd.f32 %v208_v17, %v1333_v5 }
 0x603   :  { %989 = vmatprep.subr.bf16.mxu1 %v1208_v62 }
 0x606   :  { %991 = vmatpush1.bf16.msra.mxu1 %v1226_v6  ;;  %v29_v6 = vld [vmem:[%s1442_s0 + $0x48] sm:$0xff] }
 0x607   :  { %829 = vmatprep.mubr.msk.f32.mxu0 %vm96_vm0, %v29_v6 }
 0x608   :  { %211 = vmatmul.mubr.f32.gmra.mrb[8].mxu0 %v28_v26 }
 0x609   :  { %830 = vmatprep.mubr.msk.f32.mxu0 %vm96_vm0, %v31_v27 }
 0x60c   :  { %217 = vmatmul.mubr.f32.gmra.mrb[10].mxu0 %v30_v28 }
 0x60d   :  { %695 = vmatprep.mubr.f32.mxu0 %v1031_v3 }
 0x6cc   :  { %v603_v20 = vpop.f32.mrb[6].mxu1 }
 0x6cd   :  { %v604_v21 = vadd.f32 %v603_v20, %v1325_v54  ;;  %v605_v37 = vpop.f32.mrb[7].mxu1 }
 0x6ce   :  { %v606_v47 = vadd.f32 %v605_v37, %v1331_v4 }
 0x6cf   :  { %v608_v22 = vadd.f32 %v604_v21, %v207_v19 }
 0x6d1   :  { %v837_v23 = vmul.f32 -1.442695, %v608_v22 }
 0x6d3   :  { %1013 = vpow2.f32 %v837_v23 }
 0x6db   :  { %v212_v36 = vpop.f32.mrb[8].mxu0 }
 0x6dc   :  { %v214_v38 = vpop.f32.mrb[9].mxu0  ;;  %v213_v3 = vadd.f32 %v212_v36, %v1327_v55 }
 0x6dd   :  { %v1014_v42 = vpop.eup %1013  ;;  %v215_v57 = vadd.f32 %v214_v38, %v1333_v5 }
 0x6de   :  { %v612_v24 = vadd.f32 1.0, %v1014_v42 }
 0x6df   :  { %v218_v39 = vpop.f32.mrb[10].mxu0 }
 0x6e0   :  { %1015 = vrcp.f32 %v612_v24  ;;  %v220_v40 = vpop.f32.mrb[11].mxu0  ;;  %v219_v32 = vadd.f32 %v218_v39, %v1327_v55 }
 0x6e1   :  { %v221_v17 = vadd.f32 %v220_v40, %v1333_v5 }
 0x6ea   :  { %v1016_v52 = vpop.eup %1015 }
 0x6eb   :  { %v615_v62 = vmul.f32 %v1016_v52, %v606_v47  ;;  %v618_v30 = vsub.f32 1.0, %v1016_v52  ;;  %v624_v33 = vmul.f32 %v1016_v52, %v531_v15 }
 0x6ed   :  { %v616_v25 = vadd.f32 %v615_v62, %v209_v56 }
 0x6ef   :  { %1017 = vtanh.f32 %v616_v25 }
 0x6f9   :  { %v1018_v29 = vpop.eup %1017 }
 0x6fa   :  { %620 = vrot.lane.b32.xlu0 %v1018_v29, %s1033_s11 }
 0x76c   :  { %v621_v31 = vpop.permute.xlu0 %620 }
 0x76d   :  { %v623_v34 = vmul.f32 %v621_v31, %v618_v30 }
 0x76f   :  { %v625_v35 = vadd.f32 %v624_v33, %v623_v34 }
 0x771   :  { %627 = vrot.lane.b32.xlu1 %v625_v35, %s1033_s11 }
 0x7e3   :  { %v628_v41 = vpop.permute.xlu1 %627 }
 0x7e4   :  { %838 = vmatmul.mubr.msk.f32.vlgmr.msra.gmra.mrb[12].mxu0 %vm251_vm4, %v628_v41 }
 0x8b7   :  { %v697_v43 = vpop.f32.mrb[12].mxu0 }
 0x8b8   :  { %v698_v44 = vadd.f32 %v697_v43, %v1325_v54  ;;  %v699_v45 = vpop.f32.mrb[13].mxu0 }
 0x8b9   :  { %v700_v51 = vadd.f32 %v699_v45, %v1331_v4 }
 0x8ba   :  { %v702_v46 = vadd.f32 %v698_v44, %v213_v3 }
 0x8bc   :  { %v839_v48 = vmul.f32 -1.442695, %v702_v46 }
 0x8be   :  { %1019 = vpow2.f32 %v839_v48 }
 0x8c8   :  { %v1020_v49 = vpop.eup %1019 }
 0x8c9   :  { %v706_v50 = vadd.f32 1.0, %v1020_v49 }
 0x8cb   :  { %1021 = vrcp.f32 %v706_v50 }
 0x8d5   :  { %v1022_v53 = vpop.eup %1021 }
 0x8d6   :  { %v709_v58 = vmul.f32 %v1022_v53, %v700_v51  ;;  %v712_v61 = vsub.f32 1.0, %v1022_v53  ;;  %v718_v0 = vmul.f32 %v1022_v53, %v625_v35 }
 0x8d8   :  { %v710_v59 = vadd.f32 %v709_v58, %v215_v57 }
 0x8da   :  { %1023 = vtanh.f32 %v710_v59 }
 0x8e4   :  { %v1024_v60 = vpop.eup %1023 }
 0x8e5   :  { %714 = vrot.lane.b32.xlu0 %v1024_v60, %s1033_s11 }
 0x957   :  { %v715_v63 = vpop.permute.xlu0 %714 }
 0x958   :  { %v717_v1 = vmul.f32 %v715_v63, %v712_v61 }
 0x95a   :  { %v719_v2 = vadd.f32 %v718_v0, %v717_v1 }
 0x95c   :  { %721 = vrot.lane.b32.xlu1 %v719_v2, %s1033_s11 }
 0x9ce   :  { %v722_v7 = vpop.permute.xlu1 %721 }
 0x9cf   :  { %840 = vmatmul.mubr.msk.f32.vlgmr.msra.gmra.mrb[8].mxu1 %vm251_vm4, %v722_v7 }
 0xaa2   :  { %v791_v8 = vpop.f32.mrb[8].mxu1 }
 0xaa3   :  { %v792_v9 = vadd.f32 %v791_v8, %v1325_v54  ;;  %v793_v10 = vpop.f32.mrb[9].mxu1 }
 0xaa4   :  { %v794_v15 = vadd.f32 %v793_v10, %v1331_v4 }
 0xaa5   :  { %v796_v11 = vadd.f32 %v792_v9, %v219_v32 }
 0xaa7   :  { %v841_v12 = vmul.f32 -1.442695, %v796_v11 }
 0xaa9   :  { %1025 = vpow2.f32 %v841_v12 }
 0xab3   :  { %v1026_v13 = vpop.eup %1025 }
 0xab4   :  { %v800_v14 = vadd.f32 1.0, %v1026_v13 }
 0xab6   :  { %1027 = vrcp.f32 %v800_v14 }
 0xac0   :  { %v1028_v16 = vpop.eup %1027 }
 0xac1   :  { %v803_v18 = vmul.f32 %v1028_v16, %v794_v15  ;;  %v806_v55 = vsub.f32 1.0, %v1028_v16  ;;  %v812_v21 = vmul.f32 %v1028_v16, %v719_v2 }
 0xac3   :  { %v804_v19 = vadd.f32 %v803_v18, %v221_v17 }
 0xac5   :  { %1029 = vtanh.f32 %v804_v19 }
 0xacf   :  { %v1030_v20 = vpop.eup %1029 }
 0xad0   :  { %808 = vrot.lane.b32.xlu0 %v1030_v20, %s1033_s11 }
 0xb42   :  { %v809_v54 = vpop.permute.xlu0 %808 }
 0xb43   :  { %v811_v37 = vmul.f32 %v809_v54, %v806_v55 }
 0xb45   :  { %v813_v22 = vadd.f32 %v812_v21, %v811_v37 }
 0xb47   :  { %815 = vrot.lane.b32.xlu1 %v813_v22, %s1033_s11 }
 0xbb9   :  { %v816_v23 = vpop.permute.xlu1 %815 }
 0xbba   :  { %818 = vst.msk [vmem:[%s1445_s5] sm:$0xff] %vm251_vm4, %v816_v23 }

// kernel: forward.7
= control target key start
LH: loop header
LB: loop body
LE: loop exit
PB: predicated region body
PF: predicated region fallthrough
CT: control target
= control target key end

     0   :  { %vm35_vm0 = vcmask 400384   ;;  %vm220_vm1 = vcmask 596992   ;;  %vm42_vm2 = vcmask 1040384   ;;  %vm460_vm3 = vmmov 1   ;;  %s628_s3 = inlined_call_operand.vmem [shape: f32[49,128], index: 3, kind: input, shape index: {}]   ;;  %s629_s5 = inlined_call_operand.vmem [shape: f32[73,128], index: 5, kind: input, shape index: {}]   ;;  %s630_s0 = inlined_call_operand.vmem [shape: f32[16,49], index: 0, kind: input, shape index: {}]   ;;  %s631_s2 = inlined_call_operand.vmem [shape: f32[16,73], index: 2, kind: input, shape index: {}]   ;;  %s632_s4 = inlined_call_operand.vmem [shape: f32[49,128], index: 4, kind: input, shape index: {}]   ;;  %s633_s1 = inlined_call_operand.vmem [shape: f32[2,49], index: 1, kind: input, shape index: {}]   ;;  %s634_s6 = inlined_call_operand.vmem [shape: f32[16,128], index: 6, kind: output, shape index: {0}]   ;;  %s635_s8 = inlined_call_operand.vmem [shape: f32[16,128], index: 8, kind: output, shape index: {2}]   ;;  %s636_s7 = inlined_call_operand.vmem [shape: f32[2,128], index: 7, kind: output, shape index: {1}]  }
   0x1   :  { %v28_v0 = vld [vmem:[%s628_s3] sm:$0xff]  ;;  %v29_v1 = vld [vmem:[%s628_s3 + $0x8] sm:$0xff]  ;;  %v30_v2 = vld [vmem:[%s628_s3 + $0x10] sm:$0xff]  ;;  %v461_v34 = vmov 0.0|0.0   ;;  %vm462_vm5 = vmmov 0   ;;  %v463_v38 = vmov 0.0  }
   0x2   :  { %v413_v3 = vpack.c.bf16 %v29_v1, %v28_v0  ;;  %v31_v4 = vld [vmem:[%s628_s3 + $0x18] sm:$0xff]  ;;  %v210_v5 = vld [vmem:[%s629_s5] sm:$0xff]  ;;  %v211_v6 = vld [vmem:[%s629_s5 + $0x8] sm:$0xff] }
   0x3   :  { %v417_v7 = vpack.c.bf16 %v31_v4, %v30_v2  ;;  %v434_v8 = vpack.c.bf16 %v211_v6, %v210_v5  ;;  %v32_v9 = vld [vmem:[%s628_s3 + $0x20] sm:$0xff]  ;;  %v33_v10 = vld [vmem:[%s628_s3 + $0x28] sm:$0xff]  ;;  %v212_v11 = vld [vmem:[%s629_s5 + $0x10] sm:$0xff] }
   0x4   :  { %414 = vmatprep.subr.bf16.mxu1 %v413_v3  ;;  %v213_v12 = vld [vmem:[%s629_s5 + $0x18] sm:$0xff]  ;;  %v26_v13 = vld [vmem:[%s630_s0] sm:$0xff]  ;;  %v215_v16 = vld [vmem:[%s629_s5 + $0x28] sm:$0xff]  ;;  %v421_v17 = vpack.c.bf16 %v33_v10, %v32_v9 }
   0x5   :  { %416 = vmatpush3.bf16.msra.mxu1 %v413_v3  ;;  %435 = vmatprep.subr.bf16.mxu0 %v434_v8  ;;  %v438_v14 = vpack.c.bf16 %v213_v12, %v212_v11  ;;  %v214_v15 = vld [vmem:[%s629_s5 + $0x20] sm:$0xff]  ;;  %v216_v19 = vld [vmem:[%s629_s5 + $0x30] sm:$0xff]  ;;  %v217_v20 = vld [vmem:[%s629_s5 + $0x38] sm:$0xff] }
   0x6   :  { %418 = vmatprep.subr.bf16.mxu1 %v417_v7  ;;  %437 = vmatpush3.bf16.msra.mxu0 %v434_v8  ;;  %v442_v18 = vpack.c.bf16 %v215_v16, %v214_v15  ;;  %v208_v21 = vld [vmem:[%s631_s2] sm:$0xff]  ;;  %v34_v22 = vld [vmem:[%s628_s3 + $0x30] sm:$0x1]  ;;  %v446_v23 = vpack.c.bf16 %v217_v20, %v216_v19  ;;  %v125_v25 = vld [vmem:[%s632_s4 + $0x8] sm:$0xff] }
   0x7   :  { %439 = vmatprep.subr.bf16.mxu0 %v438_v14  ;;  %370 = vmatprep.mubr.msk.f32.mxu1 %vm35_vm0, %v26_v13  ;;  %v124_v24 = vld [vmem:[%s632_s4] sm:$0xff]  ;;  %v219_v27 = vld [vmem:[%s629_s5 + $0x48] sm:$0x1]  ;;  %v126_v30 = vld [vmem:[%s632_s4 + $0x10] sm:$0xff] }
   0x8   :  { %410 = vmatprep.mubr.msk.f32.mxu0 %vm220_vm1, %v208_v21  ;;  %v218_v26 = vld [vmem:[%s629_s5 + $0x40] sm:$0xff]  ;;  %v27_v28 = vld [vmem:[%s630_s0 + $0x8] sm:$0xff]  ;;  %v426_v29 = vpack.c.bf16 %v125_v25, %v124_v24  ;;  %v127_v31 = vld [vmem:[%s632_s4 + $0x18] sm:$0xff] }
   0x9   :  { %420 = vmatpush3.bf16.msra.mxu1 %v417_v7  ;;  %v450_v32 = vpack.c.bf16 %v219_v27, %v218_v26  ;;  %vm586_vm4 = vmpackc.low %vm42_vm2, %vm460_vm3  ;;  %v429_v35 = vpack.c.bf16 %v127_v31, %v126_v30  ;;  %v128_v36 = vld [vmem:[%s632_s4 + $0x20] sm:$0xff]  ;;  %v129_v37 = vld [vmem:[%s632_s4 + $0x28] sm:$0xff] }
   0xa   :  { %422 = vmatprep.subr.bf16.mxu1 %v421_v17  ;;  %441 = vmatpush3.bf16.msra.mxu0 %v438_v14  ;;  %v432_v39 = vpack.c.bf16 %v129_v37, %v128_v36  ;;  %v209_v40 = vld [vmem:[%s631_s2 + $0x8] sm:$0xff]  ;;  %v130_v41 = vld [vmem:[%s632_s4 + $0x30] sm:$0x1]  ;;  %v123_v42 = vld [vmem:[%s633_s1] sm:$0x3] }
   0xb   :  { %443 = vmatprep.subr.bf16.mxu0 %v442_v18 }
   0xd   :  { %424 = vmatpush3.bf16.msra.mxu1 %v421_v17 }
   0xe   :  { %368 = vmatprep.subr.msk.mxu1 %vm42_vm2, %v34_v22  ;;  %445 = vmatpush3.bf16.msra.mxu0 %v442_v18 }
   0xf   :  { %447 = vmatprep.subr.bf16.mxu0 %v446_v23 }
  0x11   :  { %369 = vmatpush3.msk.msra.mxu1 %vm42_vm2, %v34_v22 }
  0x12   :  { %371 = vmatmul.mubr.msk.f32.vlgmr.msra.gmra.mrb[0].mxu1 %vm35_vm0, %v27_v28  ;;  %425 = vmatprep.subr.bf16.mxu1 %v461_v34 }
  0x13   :  { %427 = vmatpush3.bf16.msra.mxu1 %v426_v29  ;;  %449 = vmatpush3.bf16.msra.mxu0 %v446_v23 }
  0x14   :  { %428 = vmatprep.subr.bf16.mxu1 %v461_v34  ;;  %452 = vmatprep.subr.msk.bf16.mxu0 %vm586_vm4, %v450_v32 }
  0x15   :  { %387 = vmatprep.mubr.msk.f32.mxu1 %vm462_vm5, %v463_v38 }
  0x17   :  { %430 = vmatpush3.bf16.msra.mxu1 %v429_v35  ;;  %455 = vmatpush3.bf16.msk.msra.mxu0 %vm586_vm4, %v450_v32 }
  0x18   :  { %431 = vmatprep.subr.bf16.mxu1 %v461_v34 }
  0x1a   :  { %411 = vmatmul.mubr.msk.f32.vlgmr.msra.gmra.mrb[0].mxu0 %vm220_vm1, %v209_v40 }
  0x1b   :  { %433 = vmatpush3.bf16.msra.mxu1 %v432_v39 }
  0x1c   :  { %385 = vmatprep.subr.mxu1 %v463_v38 }
  0x1f   :  { %386 = vmatpush3.msk.msra.mxu1 %vm42_vm2, %v130_v41 }
  0x20   :  { %388 = vmatmul.mubr.msk.f32.vlgmr.msra.gmra.mrb[2].mxu1 %vm35_vm0, %v123_v42 }
  0xe5   :  { %v372_v43 = vpop.f32.mrb[0].mxu1 }
  0xe6   :  { %122 = vst [vmem:[%s634_s6 + $0x8] sm:$0xff] %v372_v43  ;;  %v112_v44 = vpop.f32.mrb[1].mxu1 }
  0xe7   :  { %121 = vst [vmem:[%s634_s6] sm:$0xff] %v112_v44 }
  0xed   :  { %v412_v45 = vpop.f32.mrb[0].mxu0 }
  0xee   :  { %306 = vst [vmem:[%s635_s8 + $0x8] sm:$0xff] %v412_v45  ;;  %v296_v46 = vpop.f32.mrb[1].mxu0 }
  0xef   :  { %305 = vst [vmem:[%s635_s8] sm:$0xff] %v296_v46 }
  0xf3   :  { %v203_v47 = vpop.f32.mrb[2].mxu1 }
  0xf4   :  { %207 = vst [vmem:[%s636_s7] sm:$0x3] %v203_v47  ;;  %v389_v48 = vpop.f32.mrb[3].mxu1 }

// kernel: forward.8
= control target key start
LH: loop header
LB: loop body
LE: loop exit
PB: predicated region body
PF: predicated region fallthrough
CT: control target
= control target key end

     0   :  { %v37_v0 = vlaneseq  ;;  %v539_v1 = vmov 1966171168   ;;  %s540_s23 = smov 64   ;;  %s541_s24 = smov 96   ;;  %vm60_vm0 = vcmask 261120   ;;  %vm82_vm1 = vcmask 1041409   ;;  %s705_s1 = inlined_call_operand.vmem [shape: f32[2,128], index: 1, kind: input, shape index: {}]   ;;  %s706_s0 = inlined_call_operand.vmem [shape: f32[2,8,128], index: 0, kind: input, shape index: {}]   ;;  %s707_s2 = inlined_call_operand.vmem [shape: f32[2,8,128], index: 2, kind: input, shape index: {}]   ;;  %s708_s3 = inlined_call_operand.vmem [shape: f32[1,128], index: 3, kind: input, shape index: {}]   ;;  %s709_s4 = inlined_call_operand.vmem [shape: f32[1,128], index: 4, kind: input, shape index: {}]   ;;  %s710_s5 = inlined_call_operand.vmem [shape: f32[2,8,128], index: 5, kind: output, shape index: {}]  }
   0x1   :  { %v35_v2 = vunpack.c.l.s4 %v539_v1  ;;  %v493_v3 = vld.sshfl [vmem:[%s705_s1] sm:$0x11 pattern:$0x75316420]  ;;  %v21_v16 = vld [vmem:[%s706_s0 + $0x8] sm:$0xff]  ;;  %s542_s25 = smov 32  }
   0x2   :  { %v577_v4 = vshrl.u32 %v37_v0, 7  ;;  %v73_v5 = vand.u32 127, %v37_v0  ;;  %v33_v7 = vcombine.high %v493_v3, %v493_v3  ;;  %v20_v13 = vld [vmem:[%s706_s0] sm:$0xff]  ;;  %vm85_vm2 = vcmask 58368  }
   0x3   :  { %v36_v6 = vunpack.c.0.s8 %v35_v2  ;;  %v543_v41 = vmov 0   ;;  %vm440_vm3 = vcmask 523264   ;;  %vm443_vm4 = vcmask 785408  }
   0x4   :  { %v580_v8 = vsub.s32 %v73_v5, %v577_v4  ;;  %v584_v10 = vsub.s32 0, %v577_v4  ;;  %502 = vset.pattern.permute.xlu0 %v543_v41  ;;  %501 = vset.pattern.permute.xlu1 %v543_v41  ;;  %v619_v2 = vsub.s32 1, %v577_v4 }
   0x5   :  { %v39_v9 = vsub.s32 %v36_v6, %v577_v4 }
   0x7   :  { %v40_v11 = vrot.slane %v493_v3, %v39_v9  ;;  %v47_v12 = vrot.slane %v33_v7, %v39_v9 }
   0x9   :  { %v51_v14 = vrot.slane %v40_v11, %v584_v10  ;;  %v55_v15 = vrot.slane %v47_v12, %v584_v10 }
   0xb   :  { %v58_v17 = vmul.f32 %v51_v14, %v20_v13  ;;  %v59_v18 = vmul.f32 %v55_v15, %v21_v16 }
   0xd   :  { %250 = vrot.lane.b32.xlu1 %v58_v17, %s540_s23  ;;  %156 = vrot.lane.b32.xlu0 %v58_v17, %s541_s24  ;;  %v61_v19 = vsel %vm60_vm0, %v58_v17, 0.0  ;;  %v64_v20 = vsel %vm60_vm0, %v59_v18, 0.0 }
  0x11   :  { %252 = vrot.lane.b32.xlu1 %v59_v18, %s540_s23  ;;  %158 = vrot.lane.b32.xlu0 %v59_v18, %s541_s24 }
  0x15   :  { %346 = vrot.lane.b32.xlu1 %v59_v18, %s542_s25  ;;  %344 = vrot.lane.b32.xlu0 %v58_v17, %s542_s25 }
  0x34   :  { %62 = vadd.xlane.f32.xlu0 %v61_v19 }
  0x39   :  { %65 = vadd.xlane.f32.xlu1 %v64_v20 }
  0x7f   :  { %v157_v21 = vpop.permute.xlu0 %156  ;;  %v251_v22 = vpop.permute.xlu1 %250 }
  0x80   :  { %v162_v23 = vsel %vm60_vm0, %v157_v21, 0.0  ;;  %v256_v24 = vsel %vm60_vm0, %v251_v22, 0.0 }
  0x81   :  { %163 = vadd.xlane.f32.xlu0 %v162_v23  ;;  %257 = vadd.xlane.f32.xlu1 %v256_v24 }
  0x83   :  { %v159_v25 = vpop.permute.xlu0 %158  ;;  %v253_v26 = vpop.permute.xlu1 %252 }
  0x84   :  { %v165_v27 = vsel %vm60_vm0, %v159_v25, 0.0  ;;  %v259_v28 = vsel %vm60_vm0, %v253_v26, 0.0 }
  0x85   :  { %166 = vadd.xlane.f32.xlu0 %v165_v27 }
  0x87   :  { %v347_v29 = vpop.permute.xlu1 %346  ;;  %v345_v30 = vpop.permute.xlu0 %344 }
  0x88   :  { %v350_v31 = vsel %vm60_vm0, %v345_v30, 0.0  ;;  %v353_v32 = vsel %vm60_vm0, %v347_v29, 0.0 }
  0x89   :  { %260 = vadd.xlane.f32.xlu0 %v259_v28  ;;  %351 = vadd.xlane.f32.xlu1 %v350_v31 }
  0x8d   :  { %354 = vadd.xlane.f32.xlu0 %v353_v32 }
  0xc1   :  { %v63_v33 = vpop.xlane.xlu0 %62 }
  0xc2   :  { %v68_v34 = vmul.f32 0.17677669, %v63_v33 }
  0xc4   :  { %v77_v37 = vrot.slane %v68_v34, %v580_v8 }
  0xc6   :  { %v66_v35 = vpop.xlane.xlu1 %65 }
  0xc7   :  { %v69_v36 = vmul.f32 0.17677669, %v66_v35 }
  0xc9   :  { %v81_v38 = vrot.slane %v69_v36, %v580_v8 }
  0xcb   :  { %v83_v39 = vsel %vm82_vm1, %v81_v38, %v77_v37 }
  0xcc   :  { %v86_v40 = vsel %vm85_vm2, %v83_v39, -inf }
  0xcd   :  { %87 = vmax.xlane.f32.xlu1 %v86_v40 }
 0x10e   :  { %v164_v42 = vpop.xlane.xlu0 %163  ;;  %v258_v43 = vpop.xlane.xlu1 %257 }
 0x10f   :  { %v168_v44 = vmul.f32 0.17677669, %v164_v42  ;;  %v262_v47 = vmul.f32 0.17677669, %v258_v43 }
 0x111   :  { %v175_v48 = vrot.slane %v168_v44, %v580_v8  ;;  %v269_v52 = vrot.slane %v262_v47, %v580_v8 }
 0x112   :  { %v167_v45 = vpop.xlane.xlu0 %166 }
 0x113   :  { %v169_v46 = vmul.f32 0.17677669, %v167_v45 }
 0x115   :  { %v179_v49 = vrot.slane %v169_v46, %v580_v8 }
 0x116   :  { %v261_v50 = vpop.xlane.xlu0 %260  ;;  %v352_v51 = vpop.xlane.xlu1 %351 }
 0x117   :  { %v263_v53 = vmul.f32 0.17677669, %v261_v50  ;;  %v180_v54 = vsel %vm82_vm1, %v179_v49, %v175_v48  ;;  %v356_v55 = vmul.f32 0.17677669, %v352_v51 }
 0x118   :  { %v182_v56 = vsel %vm85_vm2, %v180_v54, -inf }
 0x119   :  { %v273_v57 = vrot.slane %v263_v53, %v580_v8  ;;  %183 = vmax.xlane.f32.xlu0 %v182_v56  ;;  %v363_v59 = vrot.slane %v356_v55, %v580_v8 }
 0x11a   :  { %v355_v58 = vpop.xlane.xlu0 %354 }
 0x11b   :  { %v357_v60 = vmul.f32 0.17677669, %v355_v58  ;;  %v274_v61 = vsel %vm82_vm1, %v273_v57, %v269_v52 }
 0x11c   :  { %v276_v62 = vsel %vm85_vm2, %v274_v61, -inf }
 0x11d   :  { %v367_v63 = vrot.slane %v357_v60, %v580_v8  ;;  %277 = vmax.xlane.f32.xlu1 %v276_v62 }
 0x11f   :  { %v368_v0 = vsel %vm82_vm1, %v367_v63, %v363_v59 }
 0x120   :  { %v370_v1 = vsel %vm85_vm2, %v368_v0, -inf }
 0x121   :  { %371 = vmax.xlane.f32.xlu0 %v370_v1 }
 0x15a   :  { %v88_v3 = vpop.xlane.xlu1 %87 }
 0x15b   :  { %v93_v5 = vrot.slane %v88_v3, %v584_v10  ;;  %v97_v6 = vrot.slane %v88_v3, %v619_v2 }
 0x15d   :  { %v100_v7 = vsub.f32 %v68_v34, %v93_v5  ;;  %v101_v9 = vsub.f32 %v69_v36, %v97_v6 }
 0x15f   :  { %v102_v11 = vmul.f32 1.442695, %v100_v7  ;;  %v104_v12 = vmul.f32 1.442695, %v101_v9 }
 0x161   :  { %503 = vpow2.f32 %v102_v11 }
 0x162   :  { %505 = vpow2.f32 %v104_v12 }
 0x16b   :  { %v623_v13 = vpop.eup %503 }
 0x16c   :  { %v625_v14 = vpop.eup %505  ;;  %109 = vperm.xlu1 %501, %v623_v13  }
 0x16d   :  { %112 = vperm.xlu0 %502, %v625_v14  }
 0x1a6   :  { %v184_v4 = vpop.xlane.xlu0 %183 }
 0x1a7   :  { %v189_v15 = vrot.slane %v184_v4, %v584_v10  ;;  %v193_v16 = vrot.slane %v184_v4, %v619_v2 }
 0x1a9   :  { %v196_v17 = vsub.f32 %v168_v44, %v189_v15  ;;  %v197_v18 = vsub.f32 %v169_v46, %v193_v16 }
 0x1aa   :  { %v278_v19 = vpop.xlane.xlu1 %277 }
 0x1ab   :  { %v198_v20 = vmul.f32 1.442695, %v196_v17  ;;  %v283_v21 = vrot.slane %v278_v19, %v584_v10  ;;  %v200_v22 = vmul.f32 1.442695, %v197_v18  ;;  %v287_v23 = vrot.slane %v278_v19, %v619_v2 }
 0x1ad   :  { %507 = vpow2.f32 %v198_v20  ;;  %v290_v24 = vsub.f32 %v262_v47, %v283_v21  ;;  %v291_v26 = vsub.f32 %v263_v53, %v287_v23 }
 0x1ae   :  { %v372_v25 = vpop.xlane.xlu0 %371  ;;  %509 = vpow2.f32 %v200_v22 }
 0x1af   :  { %v292_v27 = vmul.f32 1.442695, %v290_v24  ;;  %v377_v28 = vrot.slane %v372_v25, %v584_v10  ;;  %v294_v29 = vmul.f32 1.442695, %v291_v26  ;;  %v381_v30 = vrot.slane %v372_v25, %v619_v2 }
 0x1b1   :  { %511 = vpow2.f32 %v292_v27  ;;  %v384_v31 = vsub.f32 %v356_v55, %v377_v28  ;;  %v385_v33 = vsub.f32 %v357_v60, %v381_v30 }
 0x1b2   :  { %513 = vpow2.f32 %v294_v29 }
 0x1b3   :  { %v386_v34 = vmul.f32 1.442695, %v384_v31  ;;  %v388_v36 = vmul.f32 1.442695, %v385_v33 }
 0x1b5   :  { %515 = vpow2.f32 %v386_v34  ;;  %v23_v34 = vld [vmem:[%s707_s2] sm:$0xff] }
 0x1b6   :  { %517 = vpow2.f32 %v388_v36  ;;  %v24_v36 = vld [vmem:[%s707_s2 + $0x8] sm:$0xff] }
 0x1b7   :  { %v635_v32 = vpop.eup %507 }
 0x1b8   :  { %205 = vperm.xlu1 %501, %v635_v32   ;;  %v638_v35 = vpop.eup %509 }
 0x1bb   :  { %v641_v37 = vpop.eup %511 }
 0x1bc   :  { %208 = vperm.xlu1 %501, %v638_v35   ;;  %v644_v38 = vpop.eup %513 }
 0x1bf   :  { %v647_v39 = vpop.eup %515 }
 0x1c0   :  { %299 = vperm.xlu1 %501, %v641_v37   ;;  %v650_v40 = vpop.eup %517 }
 0x1c4   :  { %302 = vperm.xlu1 %501, %v644_v38  }
 0x1c8   :  { %393 = vperm.xlu1 %501, %v647_v39  }
 0x1cc   :  { %396 = vperm.xlu1 %501, %v650_v40  }
 0x1eb   :  { %v110_v41 = vpop.permute.xlu1 %109 }
 0x1ec   :  { %v117_v42 = vrot.slane %v110_v41, %v580_v8  ;;  %v113_v43 = vpop.permute.xlu0 %112 }
 0x1ed   :  { %v121_v44 = vrot.slane %v113_v43, %v580_v8 }
 0x1ef   :  { %v122_v45 = vsel %vm82_vm1, %v121_v44, %v117_v42 }
 0x1f0   :  { %v124_v46 = vsel %vm85_vm2, %v122_v45, 0.0 }
 0x1f1   :  { %125 = vadd.xlane.f32.xlu1 %v124_v46 }
 0x237   :  { %v206_v47 = vpop.permute.xlu1 %205 }
 0x238   :  { %v213_v49 = vrot.slane %v206_v47, %v580_v8 }
 0x23b   :  { %v209_v48 = vpop.permute.xlu1 %208 }
 0x23c   :  { %v217_v50 = vrot.slane %v209_v48, %v580_v8 }
 0x23e   :  { %v218_v51 = vsel %vm82_vm1, %v217_v50, %v213_v49 }
 0x23f   :  { %v300_v52 = vpop.permute.xlu1 %299  ;;  %v220_v53 = vsel %vm85_vm2, %v218_v51, 0.0 }
 0x240   :  { %221 = vadd.xlane.f32.xlu0 %v220_v53  ;;  %v307_v55 = vrot.slane %v300_v52, %v580_v8 }
 0x243   :  { %v303_v54 = vpop.permute.xlu1 %302 }
 0x244   :  { %v311_v56 = vrot.slane %v303_v54, %v580_v8 }
 0x246   :  { %v312_v57 = vsel %vm82_vm1, %v311_v56, %v307_v55 }
 0x247   :  { %v394_v58 = vpop.permute.xlu1 %393  ;;  %v314_v59 = vsel %vm85_vm2, %v312_v57, 0.0 }
 0x248   :  { %315 = vadd.xlane.f32.xlu1 %v314_v59  ;;  %v401_v61 = vrot.slane %v394_v58, %v580_v8 }
 0x24b   :  { %v397_v60 = vpop.permute.xlu1 %396 }
 0x24c   :  { %v405_v62 = vrot.slane %v397_v60, %v580_v8 }
 0x24e   :  { %v406_v63 = vsel %vm82_vm1, %v405_v62, %v401_v61 }
 0x24f   :  { %v408_v0 = vsel %vm85_vm2, %v406_v63, 0.0 }
 0x250   :  { %409 = vadd.xlane.f32.xlu0 %v408_v0 }
 0x27e   :  { %v126_v1 = vpop.xlane.xlu1 %125 }
 0x27f   :  { %v131_v3 = vrot.slane %v126_v1, %v584_v10  ;;  %v135_v5 = vrot.slane %v126_v1, %v619_v2 }
 0x281   :  { %519 = vrcp.f32 %v131_v3 }
 0x282   :  { %521 = vrcp.f32 %v135_v5 }
 0x28b   :  { %v520_v6 = vpop.eup %519 }
 0x28c   :  { %v522_v7 = vpop.eup %521  ;;  %v139_v9 = vmul.f32 %v520_v6, %v623_v13  ;;  %v494_v6 = vld [vmem:[%s708_s3] ss:$0 sm:$0xff] }
 0x28d   :  { %v141_v11 = vmul.f32 %v522_v7, %v625_v14 }
 0x28e   :  { %144 = vperm.xlu1 %501, %v139_v9   ;;  %v495_v9 = vld [vmem:[%s709_s4] ss:$0 sm:$0xff] }
 0x28f   :  { %149 = vperm.xlu0 %502, %v141_v11  }
 0x2cd   :  { %v222_v8 = vpop.xlane.xlu0 %221 }
 0x2ce   :  { %v227_v12 = vrot.slane %v222_v8, %v584_v10  ;;  %v231_v4 = vrot.slane %v222_v8, %v619_v2 }
 0x2d0   :  { %523 = vrcp.f32 %v227_v12 }
 0x2d1   :  { %525 = vrcp.f32 %v231_v4 }
 0x2d5   :  { %v316_v15 = vpop.xlane.xlu1 %315 }
 0x2d6   :  { %v321_v16 = vrot.slane %v316_v15, %v584_v10  ;;  %v325_v17 = vrot.slane %v316_v15, %v619_v2 }
 0x2d8   :  { %527 = vrcp.f32 %v321_v16 }
 0x2d9   :  { %529 = vrcp.f32 %v325_v17 }
 0x2da   :  { %v524_v18 = vpop.eup %523 }
 0x2db   :  { %v235_v13 = vmul.f32 %v524_v18, %v635_v32  ;;  %v526_v14 = vpop.eup %525 }
 0x2dc   :  { %v237_v22 = vmul.f32 %v526_v14, %v638_v35 }
 0x2dd   :  { %240 = vperm.xlu1 %501, %v235_v13   ;;  %v410_v19 = vpop.xlane.xlu0 %409 }
 0x2de   :  { %v415_v20 = vrot.slane %v410_v19, %v584_v10  ;;  %v419_v21 = vrot.slane %v410_v19, %v619_v2 }
 0x2e0   :  { %531 = vrcp.f32 %v415_v20 }
 0x2e1   :  { %533 = vrcp.f32 %v419_v21  ;;  %245 = vperm.xlu1 %501, %v237_v22  }
 0x2e2   :  { %v528_v23 = vpop.eup %527 }
 0x2e3   :  { %v530_v24 = vpop.eup %529  ;;  %v329_v25 = vmul.f32 %v528_v23, %v641_v37 }
 0x2e4   :  { %v331_v26 = vmul.f32 %v530_v24, %v644_v38 }
 0x2e5   :  { %334 = vperm.xlu0 %502, %v329_v25  }
 0x2e6   :  { %339 = vperm.xlu1 %501, %v331_v26  }
 0x2ea   :  { %v532_v27 = vpop.eup %531 }
 0x2eb   :  { %v534_v28 = vpop.eup %533  ;;  %v423_v29 = vmul.f32 %v532_v27, %v647_v39 }
 0x2ec   :  { %v425_v10 = vmul.f32 %v534_v28, %v650_v40 }
 0x2ed   :  { %428 = vperm.xlu0 %502, %v423_v29  }
 0x2ee   :  { %433 = vperm.xlu1 %501, %v425_v10  }
 0x30d   :  { %v145_v2 = vpop.permute.xlu1 %144 }
 0x30e   :  { %v150_v32 = vpop.permute.xlu0 %149  ;;  %v152_v40 = vmul.f32 %v145_v2, %v23_v34 }
 0x30f   :  { %v153_v42 = vmul.f32 %v150_v32, %v24_v36 }
 0x35c   :  { %v241_v30 = vpop.permute.xlu1 %240 }
 0x35d   :  { %v248_v37 = vmul.f32 %v241_v30, %v23_v34 }
 0x35f   :  { %v438_v46 = vsel %vm60_vm0, %v152_v40, %v248_v37 }
 0x360   :  { %v246_v31 = vpop.permute.xlu1 %245 }
 0x361   :  { %v249_v38 = vmul.f32 %v246_v31, %v24_v36 }
 0x363   :  { %v439_v48 = vsel %vm60_vm0, %v153_v42, %v249_v38 }
 0x364   :  { %v335_v33 = vpop.permute.xlu0 %334 }
 0x365   :  { %v340_v35 = vpop.permute.xlu1 %339  ;;  %v342_v39 = vmul.f32 %v335_v33, %v23_v34 }
 0x366   :  { %v343_v41 = vmul.f32 %v340_v35, %v24_v36 }
 0x367   :  { %v441_v49 = vsel %vm440_vm3, %v438_v46, %v342_v39 }
 0x368   :  { %v442_v50 = vsel %vm440_vm3, %v439_v48, %v343_v41 }
 0x36c   :  { %v429_v43 = vpop.permute.xlu0 %428 }
 0x36d   :  { %v434_v44 = vpop.permute.xlu1 %433  ;;  %v436_v45 = vmul.f32 %v429_v43, %v23_v34 }
 0x36e   :  { %v437_v47 = vmul.f32 %v434_v44, %v24_v36 }
 0x36f   :  { %v444_v51 = vsel %vm443_vm4, %v441_v49, %v436_v45 }
 0x370   :  { %v445_v52 = vsel %vm443_vm4, %v442_v50, %v437_v47  ;;  %446 = vadd.xlane.f32.xlu0 %v444_v51 }
 0x371   :  { %448 = vadd.xlane.f32.xlu1 %v445_v52 }
 0x3fd   :  { %v447_v53 = vpop.xlane.xlu0 %446 }
 0x3fe   :  { %v449_v54 = vpop.xlane.xlu1 %448  ;;  %v451_v55 = vmul.f32 0.0078125, %v447_v53 }
 0x3ff   :  { %v452_v56 = vmul.f32 0.0078125, %v449_v54 }
 0x400   :  { %v453_v57 = vsub.f32 %v444_v51, %v451_v55 }
 0x401   :  { %v454_v58 = vsub.f32 %v445_v52, %v452_v56 }
 0x402   :  { %v455_v59 = vmul.f32 %v453_v57, %v453_v57 }
 0x403   :  { %v456_v60 = vmul.f32 %v454_v58, %v454_v58 }
 0x404   :  { %457 = vadd.xlane.f32.xlu0 %v455_v59 }
 0x408   :  { %459 = vadd.xlane.f32.xlu0 %v456_v60 }
 0x491   :  { %v458_v61 = vpop.xlane.xlu0 %457 }
 0x492   :  { %v461_v62 = vmul.f32 0.0078125, %v458_v61 }
 0x494   :  { %v463_v63 = vadd.f32 1e-05, %v461_v62 }
 0x495   :  { %v460_v0 = vpop.xlane.xlu0 %459 }
 0x496   :  { %535 = vrsqrt.f32 %v463_v63  ;;  %v462_v1 = vmul.f32 0.0078125, %v460_v0 }
 0x498   :  { %v464_v3 = vadd.f32 1e-05, %v462_v1 }
 0x49a   :  { %537 = vrsqrt.f32 %v464_v3 }
 0x4a0   :  { %v536_v5 = vpop.eup %535 }
 0x4a1   :  { %v467_v7 = vmul.f32 %v536_v5, %v453_v57 }
 0x4a3   :  { %v476_v11 = vmul.f32 %v494_v6, %v467_v7 }
 0x4a4   :  { %v538_v8 = vpop.eup %537 }
 0x4a5   :  { %v485_v12 = vadd.f32 %v495_v9, %v476_v11  ;;  %v468_v4 = vmul.f32 %v538_v8, %v454_v58 }
 0x4a7   :  { %487 = vst [vmem:[%s710_s5] sm:$0xff] %v485_v12  ;;  %v477_v15 = vmul.f32 %v494_v6, %v468_v4 }
 0x4a9   :  { %v486_v16 = vadd.f32 %v495_v9, %v477_v15 }
 0x4ab   :  { %488 = vst [vmem:[%s710_s5 + $0x8] sm:$0xff] %v486_v16 }

// kernel: forward.11
= control target key start
LH: loop header
LB: loop body
LE: loop exit
PB: predicated region body
PF: predicated region fallthrough
CT: control target
= control target key end

     0   :  { %v1291_v3 = vmov 0.0   ;;  %vm100_vm0 = vcmask 596992   ;;  %vm125_vm1 = vcmask 1040384   ;;  %vm1292_vm2 = vmmov 1   ;;  %s1293_s11 = smov 64   ;;  %s1752_s1 = inlined_call_operand.vmem [shape: f32[201,192], index: 1, kind: input, shape index: {}]   ;;  %s1753_s2 = inlined_call_operand.vmem [shape: f32[64,192], index: 2, kind: input, shape index: {}]   ;;  %s1754_s0 = inlined_call_operand.vmem [shape: f32[64,201], index: 0, kind: input, shape index: {}]   ;;  %s1755_s4 = inlined_call_operand.vmem [shape: f32[1,192], index: 4, kind: input, shape index: {}]   ;;  %s1756_s3 = inlined_call_operand.vmem [shape: f32[1,192], index: 3, kind: input, shape index: {}]   ;;  %s1757_s5 = inlined_call_operand.vmem [shape: f32[8,64], index: 5, kind: output, shape index: {}]  }
   0x1   :  { %v37_v0 = vld [vmem:[%s1752_s1 + $0x8] sm:$0xff]  ;;  %v39_v1 = vld [vmem:[%s1752_s1 + $0x18] sm:$0xff]  ;;  %v36_v2 = vld [vmem:[%s1752_s1] sm:$0xff]  ;;  %341 = vmatprep.mubr.f32.mxu1 %v1291_v3  ;;  %vm273_vm4 = vcmask 523264  }
   0x2   :  { %v1058_v4 = vpack.c.bf16 %v39_v1, %v37_v0  ;;  %v38_v5 = vld [vmem:[%s1752_s1 + $0x10] sm:$0xff]  ;;  %v41_v6 = vld [vmem:[%s1752_s1 + $0x28] sm:$0xff]  ;;  %v43_v7 = vld [vmem:[%s1752_s1 + $0x38] sm:$0xff] }
   0x3   :  { %v1060_v8 = vpack.c.bf16 %v38_v5, %v36_v2  ;;  %v1062_v9 = vpack.c.bf16 %v43_v7, %v41_v6  ;;  %v40_v10 = vld [vmem:[%s1752_s1 + $0x20] sm:$0xff]  ;;  %v42_v11 = vld [vmem:[%s1752_s1 + $0x30] sm:$0xff]  ;;  %v45_v12 = vld [vmem:[%s1752_s1 + $0x48] sm:$0xff] }
   0x4   :  { %1059 = vmatprep.subr.bf16.mxu0 %v1058_v4  ;;  %v47_v13 = vld [vmem:[%s1752_s1 + $0x58] sm:$0xff]  ;;  %v1064_v14 = vpack.c.bf16 %v42_v11, %v40_v10  ;;  %v44_v16 = vld [vmem:[%s1752_s1 + $0x40] sm:$0xff]  ;;  %v46_v17 = vld [vmem:[%s1752_s1 + $0x50] sm:$0xff] }
   0x5   :  { %1061 = vmatpush1.bf16.msra.mxu0 %v1060_v8  ;;  %v1066_v15 = vpack.c.bf16 %v47_v13, %v45_v12  ;;  %v49_v18 = vld [vmem:[%s1752_s1 + $0x68] sm:$0xff]  ;;  %v51_v19 = vld [vmem:[%s1752_s1 + $0x78] sm:$0xff]  ;;  %v1068_v20 = vpack.c.bf16 %v46_v17, %v44_v16  ;;  %v48_v22 = vld [vmem:[%s1752_s1 + $0x60] sm:$0xff] }
   0x6   :  { %1063 = vmatprep.subr.bf16.mxu0 %v1062_v9  ;;  %v1070_v21 = vpack.c.bf16 %v51_v19, %v49_v18  ;;  %v50_v23 = vld [vmem:[%s1752_s1 + $0x70] sm:$0xff]  ;;  %v53_v24 = vld [vmem:[%s1752_s1 + $0x88] sm:$0xff]  ;;  %v55_v25 = vld [vmem:[%s1752_s1 + $0x98] sm:$0xff] }
   0x7   :  { %v1072_v26 = vpack.c.bf16 %v50_v23, %v48_v22  ;;  %v52_v27 = vld [vmem:[%s1752_s1 + $0x80] sm:$0xff]  ;;  %v246_v28 = vld [vmem:[%s1753_s2 + $0x8] sm:$0xff]  ;;  %v248_v29 = vld [vmem:[%s1753_s2 + $0x18] sm:$0xff]  ;;  %v1074_v30 = vpack.c.bf16 %v55_v25, %v53_v24 }
   0x8   :  { %v54_v31 = vld [vmem:[%s1752_s1 + $0x90] sm:$0xff]  ;;  %v1391_v32 = vpack.c.bf16 %v248_v29, %v246_v28  ;;  %v245_v33 = vld [vmem:[%s1753_s2] sm:$0xff]  ;;  %v57_v35 = vld [vmem:[%s1752_s1 + $0xa8] sm:$0xff] }
   0x9   :  { %1065 = vmatpush1.bf16.msra.mxu0 %v1064_v14  ;;  %v247_v34 = vld [vmem:[%s1753_s2 + $0x10] sm:$0xff]  ;;  %v59_v36 = vld [vmem:[%s1752_s1 + $0xb8] sm:$0xff]  ;;  %v250_v38 = vld [vmem:[%s1753_s2 + $0x28] sm:$0xff]  ;;  %v1076_v40 = vpack.c.bf16 %v54_v31, %v52_v27 }
   0xa   :  { %1067 = vmatprep.subr.bf16.mxu0 %v1066_v15  ;;  %v1405_v37 = vpack.c.bf16 %v247_v34, %v245_v33  ;;  %1113 = vmatprep.subr.bf16.mxu1 %v1391_v32  ;;  %v252_v39 = vld [vmem:[%s1753_s2 + $0x38] sm:$0xff]  ;;  %v56_v41 = vld [vmem:[%s1752_s1 + $0xa0] sm:$0xff]  ;;  %v251_v44 = vld [vmem:[%s1753_s2 + $0x30] sm:$0xff]  ;;  %v1078_v45 = vpack.c.bf16 %v59_v36, %v57_v35 }
   0xb   :  { %v1418_v42 = vpack.c.bf16 %v252_v39, %v250_v38  ;;  %v249_v43 = vld [vmem:[%s1753_s2 + $0x20] sm:$0xff]  ;;  %v58_v46 = vld [vmem:[%s1752_s1 + $0xb0] sm:$0xff]  ;;  %v254_v48 = vld [vmem:[%s1753_s2 + $0x48] sm:$0xff] }
   0xc   :  { %1115 = vmatpush1.bf16.msra.mxu1 %v1405_v37  ;;  %v1429_v47 = vpack.c.bf16 %v251_v44, %v249_v43  ;;  %v256_v49 = vld [vmem:[%s1753_s2 + $0x58] sm:$0xff]  ;;  %v61_v50 = vld [vmem:[%s1752_s1 + $0xc8] sm:$0xff]  ;;  %v253_v53 = vld [vmem:[%s1753_s2 + $0x40] sm:$0xff]  ;;  %v1080_v55 = vpack.c.bf16 %v58_v46, %v56_v41 }
   0xd   :  { %1069 = vmatpush1.bf16.msra.mxu0 %v1068_v20  ;;  %v63_v51 = vld [vmem:[%s1752_s1 + $0xd8] sm:$0xff]  ;;  %1117 = vmatprep.subr.bf16.mxu1 %v1418_v42  ;;  %v1444_v52 = vpack.c.bf16 %v256_v49, %v254_v48  ;;  %v255_v54 = vld [vmem:[%s1753_s2 + $0x50] sm:$0xff]  ;;  %v258_v57 = vld [vmem:[%s1753_s2 + $0x68] sm:$0xff]  ;;  %v90_v48 = vlaneseq }
   0xe   :  { %1071 = vmatprep.subr.bf16.mxu0 %v1070_v21  ;;  %v1453_v56 = vpack.c.bf16 %v255_v54, %v253_v53  ;;  %v260_v58 = vld [vmem:[%s1753_s2 + $0x78] sm:$0xff]  ;;  %v1082_v59 = vpack.c.bf16 %v63_v51, %v61_v50  ;;  %v60_v60 = vld [vmem:[%s1752_s1 + $0xc0] sm:$0xff]  ;;  %v62_v61 = vld [vmem:[%s1752_s1 + $0xd0] sm:$0xff] }
   0xf   :  { %v1468_v62 = vpack.c.bf16 %v260_v58, %v258_v57  ;;  %v257_v63 = vld [vmem:[%s1753_s2 + $0x60] sm:$0xff]  ;;  %v65_v0 = vld [vmem:[%s1752_s1 + $0xe8] sm:$0xff]  ;;  %v67_v1 = vld [vmem:[%s1752_s1 + $0xf8] sm:$0xff]  ;;  %v1084_v5 = vpack.c.bf16 %v62_v61, %v60_v60  ;;  %v91_v49 = vshrl.u32 %v90_v48, 7 }
  0x10   :  { %1119 = vmatpush1.bf16.msra.mxu1 %v1429_v47  ;;  %v259_v2 = vld [vmem:[%s1753_s2 + $0x70] sm:$0xff]  ;;  %v21_v4 = vld [vmem:[%s1754_s0 + $0x8] sm:$0xff]  ;;  %v1086_v7 = vpack.c.bf16 %v67_v1, %v65_v0  ;;  %v64_v8 = vld [vmem:[%s1752_s1 + $0xe0] sm:$0xff] }
  0x11   :  { %1073 = vmatpush1.bf16.msra.mxu0 %v1072_v26  ;;  %1121 = vmatprep.subr.bf16.mxu1 %v1444_v52  ;;  %v1486_v6 = vpack.c.bf16 %v259_v2, %v257_v63  ;;  %v66_v9 = vld [vmem:[%s1752_s1 + $0xf0] sm:$0xff]  ;;  %v69_v10 = vld [vmem:[%s1752_s1 + $0x108] sm:$0xff]  ;;  %v71_v11 = vld [vmem:[%s1752_s1 + $0x118] sm:$0xff]  ;;  %v92_v50 = vsub.s32 0, %v91_v49  ;;  %v96_v2 = vsub.s32 1, %v91_v49 }
  0x12   :  { %1075 = vmatprep.subr.bf16.mxu0 %v1074_v30  ;;  %1035 = vmatprep.mubr.msk.f32.mxu0 %vm100_vm0, %v21_v4  ;;  %v1088_v12 = vpack.c.bf16 %v66_v9, %v64_v8  ;;  %v1090_v13 = vpack.c.bf16 %v71_v11, %v69_v10  ;;  %v68_v14 = vld [vmem:[%s1752_s1 + $0x100] sm:$0xff]  ;;  %v70_v15 = vld [vmem:[%s1752_s1 + $0x110] sm:$0xff]  ;;  %v73_v16 = vld [vmem:[%s1752_s1 + $0x128] sm:$0xff] }
  0x13   :  { %v75_v17 = vld [vmem:[%s1752_s1 + $0x138] sm:$0xff]  ;;  %v1092_v18 = vpack.c.bf16 %v70_v15, %v68_v14  ;;  %v72_v20 = vld [vmem:[%s1752_s1 + $0x120] sm:$0xff]  ;;  %v74_v21 = vld [vmem:[%s1752_s1 + $0x130] sm:$0xff] }
  0x14   :  { %1123 = vmatpush1.bf16.msra.mxu1 %v1453_v56  ;;  %v1094_v19 = vpack.c.bf16 %v75_v17, %v73_v16  ;;  %v77_v22 = vld [vmem:[%s1752_s1 + $0x148] sm:$0xff]  ;;  %v79_v23 = vld [vmem:[%s1752_s1 + $0x158] sm:$0xff]  ;;  %v1096_v24 = vpack.c.bf16 %v74_v21, %v72_v20  ;;  %v76_v26 = vld [vmem:[%s1752_s1 + $0x140] sm:$0xff] }
  0x15   :  { %1077 = vmatpush1.bf16.msra.mxu0 %v1076_v40  ;;  %1125 = vmatprep.subr.bf16.mxu1 %v1468_v62  ;;  %v1098_v25 = vpack.c.bf16 %v79_v23, %v77_v22  ;;  %v78_v27 = vld [vmem:[%s1752_s1 + $0x150] sm:$0xff]  ;;  %v81_v28 = vld [vmem:[%s1752_s1 + $0x168] sm:$0xff]  ;;  %v83_v29 = vld [vmem:[%s1752_s1 + $0x178] sm:$0xff] }
  0x16   :  { %1079 = vmatprep.subr.bf16.mxu0 %v1078_v45  ;;  %v1100_v30 = vpack.c.bf16 %v78_v27, %v76_v26  ;;  %v1102_v31 = vpack.c.bf16 %v83_v29, %v81_v28  ;;  %v80_v33 = vld [vmem:[%s1752_s1 + $0x160] sm:$0xff]  ;;  %v82_v34 = vld [vmem:[%s1752_s1 + $0x170] sm:$0xff]  ;;  %v85_v35 = vld [vmem:[%s1752_s1 + $0x188] sm:$0xff] }
  0x17   :  { %v87_v36 = vld [vmem:[%s1752_s1 + $0x198] sm:$0x1]  ;;  %v1104_v38 = vpack.c.bf16 %v82_v34, %v80_v33  ;;  %v84_v40 = vld [vmem:[%s1752_s1 + $0x180] sm:$0xff]  ;;  %v86_v41 = vld [vmem:[%s1752_s1 + $0x190] sm:$0x1] }
  0x18   :  { %1127 = vmatpush1.bf16.msra.mxu1 %v1486_v6  ;;  %v1106_v39 = vpack.c.bf16 %v87_v36, %v85_v35  ;;  %vm1107_vm3 = vmpackc.low %vm125_vm1, %vm1292_vm2  ;;  %v1109_v43 = vpack.c.bf16 %v86_v41, %v84_v40  ;;  %v20_v44 = vld [vmem:[%s1754_s0] sm:$0xff] }
  0x19   :  { %1081 = vmatpush1.bf16.msra.mxu0 %v1080_v55  ;;  %1129 = vmatprep.subr.bf16.mxu1 %v1391_v32  ;;  %v261_v51 = vld [vmem:[%s1755_s4] sm:$0x3] }
  0x1a   :  { %1083 = vmatprep.subr.bf16.mxu0 %v1082_v59  ;;  %v88_v53 = vld [vmem:[%s1756_s3] sm:$0x3]  ;;  %v1586_v54 = vrot.slane %v261_v51, %v92_v50  ;;  %v1592_v4 = vrot.slane %v261_v51, %v96_v2 }
  0x1b   :  { %342 = vmatmul.mubr.f32.vlgmr.msra.gmra.mrb[0].mxu1 %v1291_v3  ;;  %v1588_v55 = vrot.slane %v88_v53, %v92_v50 }
  0x1c   :  { %1131 = vmatpush1.bf16.msra.mxu1 %v1405_v37  ;;  %435 = vmatprep.mubr.f32.mxu1 %v1291_v3 }
  0x1d   :  { %1085 = vmatpush1.bf16.msra.mxu0 %v1084_v5  ;;  %1133 = vmatprep.subr.bf16.mxu1 %v1418_v42  ;;  %v1594_v5 = vrot.slane %v88_v53, %v96_v2 }
  0x1e   :  { %1087 = vmatprep.subr.bf16.mxu0 %v1086_v7 }
  0x20   :  { %1135 = vmatpush1.bf16.msra.mxu1 %v1429_v47 }
  0x21   :  { %1089 = vmatpush1.bf16.msra.mxu0 %v1088_v12  ;;  %1137 = vmatprep.subr.bf16.mxu1 %v1444_v52  ;;  %v23_v12 = vld [vmem:[%s1754_s0 + $0x18] sm:$0xff] }
  0x22   :  { %1091 = vmatprep.subr.bf16.mxu0 %v1090_v13  ;;  %v22_v13 = vld [vmem:[%s1754_s0 + $0x10] sm:$0xff] }
  0x24   :  { %1139 = vmatpush1.bf16.msra.mxu1 %v1453_v56 }
  0x25   :  { %1093 = vmatpush1.bf16.msra.mxu0 %v1092_v18  ;;  %1141 = vmatprep.subr.bf16.mxu1 %v1468_v62 }
  0x26   :  { %1095 = vmatprep.subr.bf16.mxu0 %v1094_v19 }
  0x28   :  { %1143 = vmatpush1.bf16.msra.mxu1 %v1486_v6 }
  0x29   :  { %1097 = vmatpush1.bf16.msra.mxu0 %v1096_v24  ;;  %1145 = vmatprep.subr.bf16.mxu1 %v1391_v32 }
  0x2a   :  { %1099 = vmatprep.subr.bf16.mxu0 %v1098_v25 }
  0x2d   :  { %1101 = vmatpush1.bf16.msra.mxu0 %v1100_v30 }
  0x2e   :  { %1103 = vmatprep.subr.bf16.mxu0 %v1102_v31 }
  0x31   :  { %1105 = vmatpush1.bf16.msra.mxu0 %v1104_v38  ;;  %v25_v38 = vld [vmem:[%s1754_s0 + $0x28] sm:$0xff] }
  0x32   :  { %1108 = vmatprep.subr.msk.bf16.mxu0 %vm1107_vm3, %v1106_v39  ;;  %v24_v39 = vld [vmem:[%s1754_s0 + $0x20] sm:$0xff] }
  0x35   :  { %1111 = vmatpush1.bf16.msk.msra.mxu0 %vm1107_vm3, %v1109_v43 }
  0x36   :  { %1193 = vmatprep.subr.bf16.mxu0 %v1391_v32 }
  0x38   :  { %197 = vmatmul.mubr.f32.vlgmr.msra.gmra.mrb[0].mxu0 %v20_v44 }
  0x39   :  { %1195 = vmatpush1.bf16.msra.mxu0 %v1405_v37  ;;  %1036 = vmatprep.mubr.msk.f32.mxu0 %vm100_vm0, %v23_v12 }
  0x3a   :  { %1197 = vmatprep.subr.bf16.mxu0 %v1418_v42 }
  0x3c   :  { %203 = vmatmul.mubr.f32.gmra.mrb[2].mxu0 %v22_v13 }
  0x3d   :  { %1199 = vmatpush1.bf16.msra.mxu0 %v1429_v47  ;;  %1037 = vmatprep.mubr.msk.f32.mxu0 %vm100_vm0, %v25_v38 }
  0x3e   :  { %1201 = vmatprep.subr.bf16.mxu0 %v1444_v52 }
  0x40   :  { %209 = vmatmul.mubr.f32.gmra.mrb[4].mxu0 %v24_v39 }
  0x41   :  { %1203 = vmatpush1.bf16.msra.mxu0 %v1453_v56 }
  0x42   :  { %1205 = vmatprep.subr.bf16.mxu0 %v1468_v62 }
  0x45   :  { %1207 = vmatpush1.bf16.msra.mxu0 %v1486_v6 }
  0x46   :  { %1225 = vmatprep.subr.bf16.mxu0 %v1391_v32 }
  0xee   :  { %v343_v45 = vpop.f32.mrb[0].mxu1 }
  0xef   :  { %v345_v46 = vpop.f32.mrb[1].mxu1  ;;  %v344_v57 = vadd.f32 %v343_v45, %v1586_v54 }
  0xf0   :  { %v346_v7 = vadd.f32 %v345_v46, %v1592_v4 }
 0x10b   :  { %v198_v58 = vpop.f32.mrb[0].mxu0 }
 0x10c   :  { %v199_v59 = vadd.f32 %v198_v58, %v1588_v55  ;;  %v200_v60 = vpop.f32.mrb[1].mxu0 }
 0x10d   :  { %v201_v10 = vadd.f32 %v200_v60, %v1594_v5 }
 0x10e   :  { %v348_v61 = vadd.f32 %v344_v57, %v199_v59 }
 0x10f   :  { %v204_v20 = vpop.f32.mrb[2].mxu0 }
 0x110   :  { %v1043_v63 = vmul.f32 -1.442695, %v348_v61  ;;  %v206_v21 = vpop.f32.mrb[3].mxu0  ;;  %v205_v23 = vadd.f32 %v204_v20, %v1588_v55 }
 0x111   :  { %v207_v34 = vadd.f32 %v206_v21, %v1594_v5 }
 0x112   :  { %1243 = vpow2.f32 %v1043_v63 }
 0x113   :  { %v210_v48 = vpop.f32.mrb[4].mxu0 }
 0x114   :  { %v212_v49 = vpop.f32.mrb[5].mxu0  ;;  %v211_v51 = vadd.f32 %v210_v48, %v1588_v55 }
 0x115   :  { %v213_v2 = vadd.f32 %v212_v49, %v1594_v5 }
 0x11c   :  { %v1244_v0 = vpop.eup %1243 }
 0x11d   :  { %v352_v1 = vadd.f32 1.0, %v1244_v0 }
 0x11f   :  { %1245 = vrcp.f32 %v352_v1 }
 0x129   :  { %v1246_v8 = vpop.eup %1245 }
 0x12a   :  { %v355_v9 = vmul.f32 %v1246_v8, %v346_v7  ;;  %v358_v15 = vsub.f32 1.0, %v1246_v8  ;;  %v364_v17 = vmul.f32 0.0, %v1246_v8 }
 0x12c   :  { %v356_v11 = vadd.f32 %v355_v9, %v201_v10  ;;  %v27_v9 = vld [vmem:[%s1754_s0 + $0x38] sm:$0xff]  ;;  %v26_v10 = vld [vmem:[%s1754_s0 + $0x30] sm:$0xff] }
 0x12d   :  { %1038 = vmatprep.mubr.msk.f32.mxu0 %vm100_vm0, %v27_v9  ;;  %v35_v9 = vld [vmem:[%s1754_s0 + $0x78] sm:$0xff] }
 0x12e   :  { %1247 = vtanh.f32 %v356_v11  ;;  %215 = vmatmul.mubr.f32.gmra.mrb[6].mxu0 %v26_v10  ;;  %v34_v10 = vld [vmem:[%s1754_s0 + $0x70] sm:$0xff] }
 0x138   :  { %v1248_v14 = vpop.eup %1247 }
 0x139   :  { %360 = vrot.lane.b32.xlu0 %v1248_v14, %s1293_s11 }
 0x1ab   :  { %v361_v16 = vpop.permute.xlu0 %360 }
 0x1ac   :  { %v363_v18 = vmul.f32 %v361_v16, %v358_v15 }
 0x1ae   :  { %v365_v19 = vadd.f32 %v364_v17, %v363_v18 }
 0x1b0   :  { %367 = vrot.lane.b32.xlu0 %v365_v19, %s1293_s11 }
 0x201   :  { %v216_v17 = vpop.f32.mrb[6].mxu0 }
 0x202   :  { %v218_v18 = vpop.f32.mrb[7].mxu0  ;;  %v217_v20 = vadd.f32 %v216_v17, %v1588_v55 }
 0x222   :  { %v368_v22 = vpop.permute.xlu0 %367 }
 0x223   :  { %1044 = vmatmul.mubr.msk.f32.vlgmr.msra.gmra.mrb[2].mxu1 %vm273_vm4, %v368_v22 }
 0x224   :  { %1147 = vmatpush1.bf16.msra.mxu1 %v1405_v37  ;;  %529 = vmatprep.mubr.f32.mxu1 %v1291_v3 }
 0x225   :  { %1149 = vmatprep.subr.bf16.mxu1 %v1418_v42 }
 0x228   :  { %1151 = vmatpush1.bf16.msra.mxu1 %v1429_v47 }
 0x229   :  { %1153 = vmatprep.subr.bf16.mxu1 %v1444_v52 }
 0x22c   :  { %1155 = vmatpush1.bf16.msra.mxu1 %v1453_v56 }
 0x22d   :  { %1157 = vmatprep.subr.bf16.mxu1 %v1468_v62 }
 0x230   :  { %1159 = vmatpush1.bf16.msra.mxu1 %v1486_v6 }
 0x231   :  { %1161 = vmatprep.subr.bf16.mxu1 %v1391_v32 }
 0x2f6   :  { %v437_v24 = vpop.f32.mrb[2].mxu1 }
 0x2f7   :  { %v438_v25 = vadd.f32 %v437_v24, %v1586_v54  ;;  %v439_v26 = vpop.f32.mrb[3].mxu1 }
 0x2f8   :  { %v440_v31 = vadd.f32 %v439_v26, %v1592_v4 }
 0x2f9   :  { %v442_v27 = vadd.f32 %v438_v25, %v205_v23 }
 0x2fb   :  { %v1045_v28 = vmul.f32 -1.442695, %v442_v27 }
 0x2fd   :  { %1249 = vpow2.f32 %v1045_v28 }
 0x307   :  { %v1250_v29 = vpop.eup %1249 }
 0x308   :  { %v446_v30 = vadd.f32 1.0, %v1250_v29 }
 0x30a   :  { %1251 = vrcp.f32 %v446_v30  ;;  %v219_v30 = vadd.f32 %v218_v18, %v1594_v5 }
 0x314   :  { %v1252_v33 = vpop.eup %1251 }
 0x315   :  { %v449_v35 = vmul.f32 %v1252_v33, %v440_v31  ;;  %v452_v41 = vsub.f32 1.0, %v1252_v33  ;;  %v458_v44 = vmul.f32 %v1252_v33, %v365_v19 }
 0x317   :  { %v450_v36 = vadd.f32 %v449_v35, %v207_v34  ;;  %v28_v34 = vld [vmem:[%s1754_s0 + $0x40] sm:$0xff] }
 0x319   :  { %1253 = vtanh.f32 %v450_v36 }
 0x323   :  { %v1254_v40 = vpop.eup %1253 }
 0x324   :  { %454 = vrot.lane.b32.xlu1 %v1254_v40, %s1293_s11 }
 0x396   :  { %v455_v43 = vpop.permute.xlu1 %454 }
 0x397   :  { %v457_v45 = vmul.f32 %v455_v43, %v452_v41 }
 0x399   :  { %v459_v46 = vadd.f32 %v458_v44, %v457_v45 }
 0x39b   :  { %461 = vrot.lane.b32.xlu1 %v459_v46, %s1293_s11 }
 0x40d   :  { %v462_v50 = vpop.permute.xlu1 %461 }
 0x40e   :  { %1046 = vmatmul.mubr.msk.f32.vlgmr.msra.gmra.mrb[4].mxu1 %vm273_vm4, %v462_v50 }
 0x40f   :  { %1163 = vmatpush1.bf16.msra.mxu1 %v1405_v37  ;;  %623 = vmatprep.mubr.f32.mxu1 %v1291_v3 }
 0x410   :  { %1165 = vmatprep.subr.bf16.mxu1 %v1418_v42 }
 0x413   :  { %1167 = vmatpush1.bf16.msra.mxu1 %v1429_v47 }
 0x414   :  { %1169 = vmatprep.subr.bf16.mxu1 %v1444_v52 }
 0x417   :  { %1171 = vmatpush1.bf16.msra.mxu1 %v1453_v56 }
 0x418   :  { %1173 = vmatprep.subr.bf16.mxu1 %v1468_v62 }
 0x41b   :  { %1175 = vmatpush1.bf16.msra.mxu1 %v1486_v6 }
 0x41c   :  { %1177 = vmatprep.subr.bf16.mxu1 %v1391_v32 }
 0x4e1   :  { %v531_v53 = vpop.f32.mrb[4].mxu1 }
 0x4e2   :  { %v532_v57 = vadd.f32 %v531_v53, %v1586_v54  ;;  %v533_v58 = vpop.f32.mrb[5].mxu1 }
 0x4e3   :  { %v534_v0 = vadd.f32 %v533_v58, %v1592_v4 }
 0x4e4   :  { %v536_v59 = vadd.f32 %v532_v57, %v211_v51 }
 0x4e6   :  { %v1047_v60 = vmul.f32 -1.442695, %v536_v59 }
 0x4e8   :  { %1255 = vpow2.f32 %v1047_v60 }
 0x4f2   :  { %v1256_v61 = vpop.eup %1255 }
 0x4f3   :  { %v540_v63 = vadd.f32 1.0, %v1256_v61 }
 0x4f5   :  { %1257 = vrcp.f32 %v540_v63 }
 0x4ff   :  { %v1258_v1 = vpop.eup %1257 }
 0x500   :  { %v543_v7 = vmul.f32 %v1258_v1, %v534_v0  ;;  %v546_v12 = vsub.f32 1.0, %v1258_v1  ;;  %v552_v14 = vmul.f32 %v1258_v1, %v459_v46  ;;  %v31_v1 = vld [vmem:[%s1754_s0 + $0x58] sm:$0xff] }
 0x502   :  { %v544_v8 = vadd.f32 %v543_v7, %v213_v2  ;;  %v30_v2 = vld [vmem:[%s1754_s0 + $0x50] sm:$0xff]  ;;  %v33_v7 = vld [vmem:[%s1754_s0 + $0x68] sm:$0xff] }
 0x504   :  { %1259 = vtanh.f32 %v544_v8  ;;  %v32_v8 = vld [vmem:[%s1754_s0 + $0x60] sm:$0xff] }
 0x50e   :  { %v1260_v11 = vpop.eup %1259 }
 0x50f   :  { %548 = vrot.lane.b32.xlu0 %v1260_v11, %s1293_s11 }
 0x581   :  { %v549_v13 = vpop.permute.xlu0 %548 }
 0x582   :  { %v551_v15 = vmul.f32 %v549_v13, %v546_v12 }
 0x584   :  { %v553_v16 = vadd.f32 %v552_v14, %v551_v15 }
 0x586   :  { %555 = vrot.lane.b32.xlu1 %v553_v16, %s1293_s11 }
 0x5f8   :  { %v556_v19 = vpop.permute.xlu1 %555 }
 0x5f9   :  { %1048 = vmatmul.mubr.msk.f32.vlgmr.msra.gmra.mrb[6].mxu1 %vm273_vm4, %v556_v19 }
 0x5fa   :  { %1179 = vmatpush1.bf16.msra.mxu1 %v1405_v37  ;;  %717 = vmatprep.mubr.f32.mxu1 %v1291_v3 }
 0x5fb   :  { %1181 = vmatprep.subr.bf16.mxu1 %v1418_v42 }
 0x5fe   :  { %1183 = vmatpush1.bf16.msra.mxu1 %v1429_v47 }
 0x5ff   :  { %1185 = vmatprep.subr.bf16.mxu1 %v1444_v52 }
 0x602   :  { %1187 = vmatpush1.bf16.msra.mxu1 %v1453_v56 }
 0x603   :  { %1189 = vmatprep.subr.bf16.mxu1 %v1468_v62 }
 0x606   :  { %1191 = vmatpush1.bf16.msra.mxu1 %v1486_v6 }
 0x607   :  { %1209 = vmatprep.subr.bf16.mxu1 %v1391_v32  ;;  %v29_v32 = vld [vmem:[%s1754_s0 + $0x48] sm:$0xff] }
 0x608   :  { %1039 = vmatprep.mubr.msk.f32.mxu0 %vm100_vm0, %v29_v32 }
 0x609   :  { %221 = vmatmul.mubr.f32.gmra.mrb[8].mxu0 %v28_v34 }
 0x60a   :  { %1040 = vmatprep.mubr.msk.f32.mxu0 %vm100_vm0, %v31_v1 }
 0x60d   :  { %227 = vmatmul.mubr.f32.gmra.mrb[10].mxu0 %v30_v2 }
 0x60e   :  { %1041 = vmatprep.mubr.msk.f32.mxu0 %vm100_vm0, %v33_v7 }
 0x611   :  { %233 = vmatmul.mubr.f32.gmra.mrb[12].mxu0 %v32_v8 }
 0x612   :  { %1042 = vmatprep.mubr.msk.f32.mxu0 %vm100_vm0, %v35_v9 }
 0x615   :  { %239 = vmatmul.mubr.f32.gmra.mrb[14].mxu0 %v34_v10 }
 0x616   :  { %811 = vmatprep.mubr.f32.mxu0 %v1291_v3 }
 0x6cc   :  { %v625_v21 = vpop.f32.mrb[6].mxu1 }
 0x6cd   :  { %v626_v22 = vadd.f32 %v625_v21, %v1586_v54  ;;  %v627_v23 = vpop.f32.mrb[7].mxu1 }
 0x6ce   :  { %v628_v28 = vadd.f32 %v627_v23, %v1592_v4 }
 0x6cf   :  { %v630_v24 = vadd.f32 %v626_v22, %v217_v20 }
 0x6d1   :  { %v1049_v25 = vmul.f32 -1.442695, %v630_v24 }
 0x6d3   :  { %1261 = vpow2.f32 %v1049_v25 }
 0x6dc   :  { %v222_v43 = vpop.f32.mrb[8].mxu0 }
 0x6dd   :  { %v1262_v26 = vpop.eup %1261  ;;  %v224_v44 = vpop.f32.mrb[9].mxu0  ;;  %v223_v46 = vadd.f32 %v222_v43, %v1588_v55 }
 0x6de   :  { %v634_v27 = vadd.f32 1.0, %v1262_v26  ;;  %v225_v61 = vadd.f32 %v224_v44, %v1594_v5 }
 0x6e0   :  { %1263 = vrcp.f32 %v634_v27  ;;  %v228_v17 = vpop.f32.mrb[10].mxu0 }
 0x6e1   :  { %v230_v18 = vpop.f32.mrb[11].mxu0  ;;  %v229_v25 = vadd.f32 %v228_v17, %v1588_v55 }
 0x6e4   :  { %v234_v19 = vpop.f32.mrb[12].mxu0 }
 0x6e5   :  { %v236_v20 = vpop.f32.mrb[13].mxu0 }
 0x6e8   :  { %v1713_v21 = vpop.f32.mrb[14].mxu0 }
 0x6e9   :  { %v1715_v22 = vpop.f32.mrb[15].mxu0  ;;  %v241_v1 = vadd.f32 %v1713_v21, %v1588_v55 }
 0x6ea   :  { %v1264_v29 = vpop.eup %1263 }
 0x6eb   :  { %v637_v31 = vmul.f32 %v1264_v29, %v628_v28  ;;  %v640_v36 = vsub.f32 1.0, %v1264_v29  ;;  %v646_v39 = vmul.f32 %v1264_v29, %v553_v16 }
 0x6ed   :  { %v638_v33 = vadd.f32 %v637_v31, %v219_v30 }
 0x6ef   :  { %1265 = vtanh.f32 %v638_v33 }
 0x6f9   :  { %v1266_v35 = vpop.eup %1265 }
 0x6fa   :  { %642 = vrot.lane.b32.xlu0 %v1266_v35, %s1293_s11 }
 0x76c   :  { %v643_v38 = vpop.permute.xlu0 %642 }
 0x76d   :  { %v645_v40 = vmul.f32 %v643_v38, %v640_v36  ;;  %v235_v38 = vadd.f32 %v234_v19, %v1588_v55 }
 0x76f   :  { %v647_v41 = vadd.f32 %v646_v39, %v645_v40 }
 0x771   :  { %649 = vrot.lane.b32.xlu1 %v647_v41, %s1293_s11 }
 0x7e3   :  { %v650_v45 = vpop.permute.xlu1 %649 }
 0x7e4   :  { %1050 = vmatmul.mubr.msk.f32.vlgmr.msra.gmra.mrb[8].mxu1 %vm273_vm4, %v650_v45 }
 0x7e5   :  { %1211 = vmatpush1.bf16.msra.mxu1 %v1405_v37  ;;  %905 = vmatprep.mubr.f32.mxu1 %v1291_v3 }
 0x7e6   :  { %1213 = vmatprep.subr.bf16.mxu1 %v1418_v42 }
 0x7e9   :  { %1215 = vmatpush1.bf16.msra.mxu1 %v1429_v47 }
 0x7ea   :  { %1217 = vmatprep.subr.bf16.mxu1 %v1444_v52 }
 0x7ed   :  { %1219 = vmatpush1.bf16.msra.mxu1 %v1453_v56 }
 0x7ee   :  { %1221 = vmatprep.subr.bf16.mxu1 %v1468_v62 }
 0x7f1   :  { %1223 = vmatpush1.bf16.msra.mxu1 %v1486_v6 }
 0x8b7   :  { %v719_v48 = vpop.f32.mrb[8].mxu1 }
 0x8b8   :  { %v720_v49 = vadd.f32 %v719_v48, %v1586_v54  ;;  %v721_v50 = vpop.f32.mrb[9].mxu1 }
 0x8b9   :  { %v722_v59 = vadd.f32 %v721_v50, %v1592_v4 }
 0x8ba   :  { %v724_v51 = vadd.f32 %v720_v49, %v223_v46  ;;  %v237_v49 = vadd.f32 %v236_v20, %v1594_v5 }
 0x8bc   :  { %v1051_v53 = vmul.f32 -1.442695, %v724_v51 }
 0x8be   :  { %1267 = vpow2.f32 %v1051_v53 }
 0x8c8   :  { %v1268_v57 = vpop.eup %1267 }
 0x8c9   :  { %v728_v58 = vadd.f32 1.0, %v1268_v57 }
 0x8cb   :  { %1269 = vrcp.f32 %v728_v58 }
 0x8d5   :  { %v1270_v60 = vpop.eup %1269 }
 0x8d6   :  { %v731_v63 = vmul.f32 %v1270_v60, %v722_v59  ;;  %v734_v12 = vsub.f32 1.0, %v1270_v60  ;;  %v740_v14 = vmul.f32 %v1270_v60, %v647_v41 }
 0x8d8   :  { %v732_v0 = vadd.f32 %v731_v63, %v225_v61 }
 0x8da   :  { %1271 = vtanh.f32 %v732_v0 }
 0x8e4   :  { %v1272_v11 = vpop.eup %1271 }
 0x8e5   :  { %736 = vrot.lane.b32.xlu0 %v1272_v11, %s1293_s11 }
 0x957   :  { %v737_v13 = vpop.permute.xlu0 %736 }
 0x958   :  { %v739_v15 = vmul.f32 %v737_v13, %v734_v12 }
 0x95a   :  { %v741_v16 = vadd.f32 %v740_v14, %v739_v15  ;;  %v243_v14 = vadd.f32 %v1715_v22, %v1594_v5 }
 0x95c   :  { %743 = vrot.lane.b32.xlu1 %v741_v16, %s1293_s11 }
 0x9ce   :  { %v744_v23 = vpop.permute.xlu1 %743 }
 0x9cf   :  { %1052 = vmatmul.mubr.msk.f32.vlgmr.msra.gmra.mrb[16].mxu0 %vm273_vm4, %v744_v23 }
 0x9d0   :  { %1227 = vmatpush1.bf16.msra.mxu0 %v1405_v37  ;;  %999 = vmatprep.mubr.f32.mxu0 %v1291_v3 }
 0x9d1   :  { %1229 = vmatprep.subr.bf16.mxu0 %v1418_v42 }
 0x9d4   :  { %1231 = vmatpush1.bf16.msra.mxu0 %v1429_v47 }
 0x9d5   :  { %1233 = vmatprep.subr.bf16.mxu0 %v1444_v52 }
 0x9d8   :  { %1235 = vmatpush1.bf16.msra.mxu0 %v1453_v56  ;;  %v231_v56 = vadd.f32 %v230_v18, %v1594_v5 }
 0x9d9   :  { %1237 = vmatprep.subr.bf16.mxu0 %v1468_v62 }
 0x9dc   :  { %1239 = vmatpush1.bf16.msra.mxu0 %v1486_v6 }
 0xaa2   :  { %v813_v24 = vpop.f32.mrb[16].mxu0 }
 0xaa3   :  { %v814_v26 = vadd.f32 %v813_v24, %v1586_v54  ;;  %v815_v37 = vpop.f32.mrb[17].mxu0 }
 0xaa4   :  { %v816_v47 = vadd.f32 %v815_v37, %v1592_v4 }
 0xaa5   :  { %v818_v27 = vadd.f32 %v814_v26, %v229_v25 }
 0xaa7   :  { %v1053_v3 = vmul.f32 -1.442695, %v818_v27 }
 0xaa9   :  { %1273 = vpow2.f32 %v1053_v3 }
 0xab3   :  { %v1274_v42 = vpop.eup %1273 }
 0xab4   :  { %v822_v28 = vadd.f32 1.0, %v1274_v42 }
 0xab6   :  { %1275 = vrcp.f32 %v822_v28 }
 0xac0   :  { %v1276_v52 = vpop.eup %1275 }
 0xac1   :  { %v825_v62 = vmul.f32 %v1276_v52, %v816_v47  ;;  %v828_v30 = vsub.f32 1.0, %v1276_v52  ;;  %v834_v33 = vmul.f32 %v1276_v52, %v741_v16 }
 0xac3   :  { %v826_v29 = vadd.f32 %v825_v62, %v231_v56 }
 0xac5   :  { %1277 = vtanh.f32 %v826_v29 }
 0xacf   :  { %v1278_v6 = vpop.eup %1277 }
 0xad0   :  { %830 = vrot.lane.b32.xlu0 %v1278_v6, %s1293_s11 }
 0xb42   :  { %v831_v31 = vpop.permute.xlu0 %830 }
 0xb43   :  { %v833_v32 = vmul.f32 %v831_v31, %v828_v30 }
 0xb45   :  { %v835_v34 = vadd.f32 %v834_v33, %v833_v32 }
 0xb47   :  { %837 = vrot.lane.b32.xlu1 %v835_v34, %s1293_s11 }
 0xbb9   :  { %v838_v35 = vpop.permute.xlu1 %837 }
 0xbba   :  { %1054 = vmatmul.mubr.msk.f32.vlgmr.msra.gmra.mrb[10].mxu1 %vm273_vm4, %v838_v35 }
 0xc8d   :  { %v907_v36 = vpop.f32.mrb[10].mxu1 }
 0xc8e   :  { %v908_v39 = vadd.f32 %v907_v36, %v1586_v54  ;;  %v909_v40 = vpop.f32.mrb[11].mxu1 }
 0xc8f   :  { %v910_v46 = vadd.f32 %v909_v40, %v1592_v4 }
 0xc90   :  { %v912_v41 = vadd.f32 %v908_v39, %v235_v38 }
 0xc92   :  { %v1055_v43 = vmul.f32 -1.442695, %v912_v41 }
 0xc94   :  { %1279 = vpow2.f32 %v1055_v43 }
 0xc9e   :  { %v1280_v44 = vpop.eup %1279 }
 0xc9f   :  { %v916_v45 = vadd.f32 1.0, %v1280_v44 }
 0xca1   :  { %1281 = vrcp.f32 %v916_v45 }
 0xcab   :  { %v1282_v48 = vpop.eup %1281 }
 0xcac   :  { %v919_v50 = vmul.f32 %v1282_v48, %v910_v46  ;;  %v922_v57 = vsub.f32 1.0, %v1282_v48  ;;  %v928_v59 = vmul.f32 %v1282_v48, %v835_v34 }
 0xcae   :  { %v920_v51 = vadd.f32 %v919_v50, %v237_v49 }
 0xcb0   :  { %1283 = vtanh.f32 %v920_v51 }
 0xcba   :  { %v1284_v53 = vpop.eup %1283 }
 0xcbb   :  { %924 = vrot.lane.b32.xlu0 %v1284_v53, %s1293_s11 }
 0xd2d   :  { %v925_v58 = vpop.permute.xlu0 %924 }
 0xd2e   :  { %v927_v60 = vmul.f32 %v925_v58, %v922_v57 }
 0xd30   :  { %v929_v61 = vadd.f32 %v928_v59, %v927_v60 }
 0xd32   :  { %931 = vrot.lane.b32.xlu1 %v929_v61, %s1293_s11 }
 0xda4   :  { %v932_v63 = vpop.permute.xlu1 %931 }
 0xda5   :  { %1056 = vmatmul.mubr.msk.f32.vlgmr.msra.gmra.mrb[18].mxu0 %vm273_vm4, %v932_v63 }
 0xe78   :  { %v1001_v0 = vpop.f32.mrb[18].mxu0 }
 0xe79   :  { %v1002_v2 = vadd.f32 %v1001_v0, %v1586_v54  ;;  %v1003_v7 = vpop.f32.mrb[19].mxu0 }
 0xe7a   :  { %v1004_v12 = vadd.f32 %v1003_v7, %v1592_v4 }
 0xe7b   :  { %v1006_v8 = vadd.f32 %v1002_v2, %v241_v1 }
 0xe7d   :  { %v1057_v9 = vmul.f32 -1.442695, %v1006_v8 }
 0xe7f   :  { %1285 = vpow2.f32 %v1057_v9 }
 0xe89   :  { %v1286_v10 = vpop.eup %1285 }
 0xe8a   :  { %v1010_v11 = vadd.f32 1.0, %v1286_v10 }
 0xe8c   :  { %1287 = vrcp.f32 %v1010_v11 }
 0xe96   :  { %v1288_v13 = vpop.eup %1287 }
 0xe97   :  { %v1013_v15 = vmul.f32 %v1288_v13, %v1004_v12  ;;  %v1016_v54 = vsub.f32 1.0, %v1288_v13  ;;  %v1022_v18 = vmul.f32 %v1288_v13, %v929_v61 }
 0xe99   :  { %v1014_v16 = vadd.f32 %v1013_v15, %v243_v14 }
 0xe9b   :  { %1289 = vtanh.f32 %v1014_v16 }
 0xea5   :  { %v1290_v17 = vpop.eup %1289 }
 0xea6   :  { %1018 = vrot.lane.b32.xlu0 %v1290_v17, %s1293_s11 }
 0xf18   :  { %v1019_v55 = vpop.permute.xlu0 %1018 }
 0xf19   :  { %v1021_v19 = vmul.f32 %v1019_v55, %v1016_v54 }
 0xf1b   :  { %v1023_v20 = vadd.f32 %v1022_v18, %v1021_v19 }
 0xf1d   :  { %1025 = vrot.lane.b32.xlu1 %v1023_v20, %s1293_s11 }
 0xf8f   :  { %v1026_v21 = vpop.permute.xlu1 %1025 }
 0xf90   :  { %1028 = vst.msk [vmem:[%s1757_s5] sm:$0xff] %vm273_vm4, %v1026_v21 }

// kernel: forward.13
= control target key start
LH: loop header
LB: loop body
LE: loop exit
PB: predicated region body
PF: predicated region fallthrough
CT: control target
= control target key end

     0   :  { %v173_v25 = vlaneseq  ;;  %v1503_v26 = vmov 1983009808   ;;  %vm204_vm0 = vcmask 711680   ;;  %vm207_vm1 = vcmask 1046528   ;;  %s2466_s1 = inlined_call_operand.vmem [shape: f32[471,256], index: 1, kind: input, shape index: {}]   ;;  %s2467_s0 = inlined_call_operand.vmem [shape: f32[2,471], index: 0, kind: input, shape index: {}]   ;;  %s2468_s3 = inlined_call_operand.vmem [shape: f32[256,256], index: 3, kind: input, shape index: {}]   ;;  %s2469_s5 = inlined_call_operand.vmem [shape: f32[256,128], index: 5, kind: input, shape index: {}]   ;;  %s2470_s2 = inlined_call_operand.vmem [shape: f32[1,256], index: 2, kind: input, shape index: {}]   ;;  %s2471_s4 = inlined_call_operand.vmem [shape: f32[1,256], index: 4, kind: input, shape index: {}]   ;;  %s2472_s7 = inlined_call_operand.vmem [shape: f32[128,128], index: 7, kind: input, shape index: {}]   ;;  %s2473_s9 = inlined_call_operand.vmem [shape: f32[128,64], index: 9, kind: input, shape index: {}]   ;;  %s2474_s6 = inlined_call_operand.vmem [shape: f32[1,128], index: 6, kind: input, shape index: {}]   ;;  %s2475_s11 = inlined_call_operand.vmem [shape: f32[64,64], index: 11, kind: input, shape index: {}]   ;;  %s2476_s8 = inlined_call_operand.vmem [shape: f32[1,128], index: 8, kind: input, shape index: {}]   ;;  %s2477_s10 = inlined_call_operand.vmem [shape: f32[1,64], index: 10, kind: input, shape index: {}]   ;;  %s2478_s13 = inlined_call_operand.vmem [shape: f32[64,1], index: 13, kind: input, shape index: {}]   ;;  %s2479_s14 = inlined_call_operand.<no memory space> [shape: f32[1,1], index: 14, kind: input, shape index: {}]   ;;  %s2480_s12 = inlined_call_operand.vmem [shape: f32[1,64], index: 12, kind: input, shape index: {}]   ;;  %s2481_s15 = inlined_call_operand.vmem [shape: f32[2,1], index: 15, kind: output, shape index: {}]  }
   0x1   :  { %v54_v0 = vld [vmem:[%s2466_s1 + $0x8] sm:$0xff]  ;;  %v56_v1 = vld [vmem:[%s2466_s1 + $0x18] sm:$0xff]  ;;  %v53_v2 = vld [vmem:[%s2466_s1] sm:$0xff]  ;;  %v186_v27 = vunpack.c.l.s4 %v1503_v26  ;;  %vm1505_vm2 = vmmov 0   ;;  %vm820_vm3 = vcmask 523264   ;;  %vm983_vm4 = vcmask 1024  }
   0x2   :  { %v1194_v3 = vpack.c.bf16 %v56_v1, %v54_v0  ;;  %v55_v4 = vld [vmem:[%s2466_s1 + $0x10] sm:$0xff]  ;;  %v58_v5 = vld [vmem:[%s2466_s1 + $0x28] sm:$0xff]  ;;  %v60_v6 = vld [vmem:[%s2466_s1 + $0x38] sm:$0xff]  ;;  %v1653_v34 = vshrl.u32 %v173_v25, 7 }
   0x3   :  { %v1196_v7 = vpack.c.bf16 %v55_v4, %v53_v2  ;;  %v1198_v8 = vpack.c.bf16 %v60_v6, %v58_v5  ;;  %v57_v9 = vld [vmem:[%s2466_s1 + $0x20] sm:$0xff]  ;;  %v59_v10 = vld [vmem:[%s2466_s1 + $0x30] sm:$0xff]  ;;  %v62_v11 = vld [vmem:[%s2466_s1 + $0x48] sm:$0xff]  ;;  %v187_v35 = vunpack.c.0.s8 %v186_v27 }
   0x4   :  { %1195 = vmatprep.subr.bf16.mxu0 %v1194_v3  ;;  %v64_v12 = vld [vmem:[%s2466_s1 + $0x58] sm:$0xff]  ;;  %v1200_v13 = vpack.c.bf16 %v59_v10, %v57_v9  ;;  %v61_v15 = vld [vmem:[%s2466_s1 + $0x40] sm:$0xff]  ;;  %v63_v16 = vld [vmem:[%s2466_s1 + $0x50] sm:$0xff] }
   0x5   :  { %1197 = vmatpush1.bf16.msra.mxu0 %v1196_v7  ;;  %v1202_v14 = vpack.c.bf16 %v64_v12, %v62_v11  ;;  %v66_v17 = vld [vmem:[%s2466_s1 + $0x68] sm:$0xff]  ;;  %v68_v18 = vld [vmem:[%s2466_s1 + $0x78] sm:$0xff]  ;;  %v1204_v19 = vpack.c.bf16 %v63_v16, %v61_v15  ;;  %v65_v21 = vld [vmem:[%s2466_s1 + $0x60] sm:$0xff]  ;;  %v1668_v42 = vsub.s32 %v187_v35, %v1653_v34 }
   0x6   :  { %1199 = vmatprep.subr.bf16.mxu0 %v1198_v8  ;;  %v1206_v20 = vpack.c.bf16 %v68_v18, %v66_v17  ;;  %v67_v22 = vld [vmem:[%s2466_s1 + $0x70] sm:$0xff]  ;;  %v70_v23 = vld [vmem:[%s2466_s1 + $0x88] sm:$0xff]  ;;  %v72_v24 = vld [vmem:[%s2466_s1 + $0x98] sm:$0xff] }
   0x7   :  { %v1208_v28 = vpack.c.bf16 %v67_v22, %v65_v21  ;;  %v1210_v29 = vpack.c.bf16 %v72_v24, %v70_v23  ;;  %v69_v30 = vld [vmem:[%s2466_s1 + $0x80] sm:$0xff]  ;;  %v71_v31 = vld [vmem:[%s2466_s1 + $0x90] sm:$0xff]  ;;  %v74_v32 = vld [vmem:[%s2466_s1 + $0xa8] sm:$0xff] }
   0x8   :  { %v76_v33 = vld [vmem:[%s2466_s1 + $0xb8] sm:$0xff]  ;;  %v1212_v36 = vpack.c.bf16 %v71_v31, %v69_v30  ;;  %v73_v38 = vld [vmem:[%s2466_s1 + $0xa0] sm:$0xff]  ;;  %v75_v39 = vld [vmem:[%s2466_s1 + $0xb0] sm:$0xff] }
   0x9   :  { %1201 = vmatpush1.bf16.msra.mxu0 %v1200_v13  ;;  %v1214_v37 = vpack.c.bf16 %v76_v33, %v74_v32  ;;  %v78_v40 = vld [vmem:[%s2466_s1 + $0xc8] sm:$0xff]  ;;  %v80_v41 = vld [vmem:[%s2466_s1 + $0xd8] sm:$0xff]  ;;  %v1216_v43 = vpack.c.bf16 %v75_v39, %v73_v38  ;;  %v77_v45 = vld [vmem:[%s2466_s1 + $0xc0] sm:$0xff] }
   0xa   :  { %1203 = vmatprep.subr.bf16.mxu0 %v1202_v14  ;;  %v1218_v44 = vpack.c.bf16 %v80_v41, %v78_v40  ;;  %v79_v46 = vld [vmem:[%s2466_s1 + $0xd0] sm:$0xff]  ;;  %v1679_v47 = vld [vmem:[%s2467_s0] sm:$0xff]  ;;  %v82_v48 = vld [vmem:[%s2466_s1 + $0xe8] sm:$0xff] }
   0xb   :  { %v84_v49 = vld [vmem:[%s2466_s1 + $0xf8] sm:$0xff]  ;;  %v1689_v50 = vrot.slane %v1679_v47, %v1668_v42  ;;  %v1220_v51 = vpack.c.bf16 %v79_v46, %v77_v45  ;;  %v81_v54 = vld [vmem:[%s2466_s1 + $0xe0] sm:$0xff]  ;;  %v83_v55 = vld [vmem:[%s2466_s1 + $0xf0] sm:$0xff] }
   0xc   :  { %v1222_v53 = vpack.c.bf16 %v84_v49, %v82_v48  ;;  %v86_v56 = vld [vmem:[%s2466_s1 + $0x108] sm:$0xff]  ;;  %v88_v57 = vld [vmem:[%s2466_s1 + $0x118] sm:$0xff]  ;;  %v1224_v58 = vpack.c.bf16 %v83_v55, %v81_v54  ;;  %v85_v60 = vld [vmem:[%s2466_s1 + $0x100] sm:$0xff] }
   0xd   :  { %1205 = vmatpush1.bf16.msra.mxu0 %v1204_v19  ;;  %v199_v52 = vcombine.high %v1689_v50, %v1689_v50  ;;  %v1226_v59 = vpack.c.bf16 %v88_v57, %v86_v56  ;;  %v87_v61 = vld [vmem:[%s2466_s1 + $0x110] sm:$0xff]  ;;  %v90_v62 = vld [vmem:[%s2466_s1 + $0x128] sm:$0xff]  ;;  %v92_v63 = vld [vmem:[%s2466_s1 + $0x138] sm:$0xff] }
   0xe   :  { %1207 = vmatprep.subr.bf16.mxu0 %v1206_v20  ;;  %v1228_v0 = vpack.c.bf16 %v87_v61, %v85_v60  ;;  %v1230_v1 = vpack.c.bf16 %v92_v63, %v90_v62  ;;  %v89_v2 = vld [vmem:[%s2466_s1 + $0x120] sm:$0xff]  ;;  %v91_v3 = vld [vmem:[%s2466_s1 + $0x130] sm:$0xff]  ;;  %v94_v4 = vld [vmem:[%s2466_s1 + $0x148] sm:$0xff] }
   0xf   :  { %278 = vmatprep.mubr.f32.mxu0 %v199_v52  ;;  %v96_v5 = vld [vmem:[%s2466_s1 + $0x158] sm:$0xff]  ;;  %v1232_v6 = vpack.c.bf16 %v91_v3, %v89_v2  ;;  %v93_v8 = vld [vmem:[%s2466_s1 + $0x140] sm:$0xff]  ;;  %v95_v9 = vld [vmem:[%s2466_s1 + $0x150] sm:$0xff] }
  0x10   :  { %v1234_v7 = vpack.c.bf16 %v96_v5, %v94_v4  ;;  %v98_v10 = vld [vmem:[%s2466_s1 + $0x168] sm:$0xff]  ;;  %v100_v11 = vld [vmem:[%s2466_s1 + $0x178] sm:$0xff]  ;;  %v97_v12 = vld [vmem:[%s2466_s1 + $0x160] sm:$0xff]  ;;  %v1236_v15 = vpack.c.bf16 %v95_v9, %v93_v8 }
  0x11   :  { %1209 = vmatpush1.bf16.msra.mxu0 %v1208_v28  ;;  %v99_v13 = vld [vmem:[%s2466_s1 + $0x170] sm:$0xff]  ;;  %v359_v14 = vld [vmem:[%s2468_s3 + $0x8] sm:$0xff]  ;;  %v104_v17 = vld [vmem:[%s2466_s1 + $0x198] sm:$0xff]  ;;  %v1238_v21 = vpack.c.bf16 %v100_v11, %v98_v10  ;;  %v184_v10 = vcombine.high %v1679_v47, %v1679_v47 }
  0x12   :  { %1211 = vmatprep.subr.bf16.mxu0 %v1210_v29  ;;  %v102_v16 = vld [vmem:[%s2466_s1 + $0x188] sm:$0xff]  ;;  %v361_v18 = vld [vmem:[%s2468_s3 + $0x18] sm:$0xff]  ;;  %v358_v19 = vld [vmem:[%s2468_s3] sm:$0xff]  ;;  %v1240_v31 = vpack.c.bf16 %v99_v13, %v97_v12 }
  0x13   :  { %v360_v20 = vld [vmem:[%s2468_s3 + $0x10] sm:$0xff]  ;;  %v1310_v22 = vpack.c.bf16 %v361_v18, %v359_v14  ;;  %v363_v24 = vld [vmem:[%s2468_s3 + $0x28] sm:$0xff]  ;;  %v365_v25 = vld [vmem:[%s2468_s3 + $0x38] sm:$0xff] }
  0x14   :  { %v1312_v23 = vpack.c.bf16 %v360_v20, %v358_v19  ;;  %v362_v26 = vld [vmem:[%s2468_s3 + $0x20] sm:$0xff]  ;;  %v1314_v27 = vpack.c.bf16 %v365_v25, %v363_v24  ;;  %v364_v28 = vld [vmem:[%s2468_s3 + $0x30] sm:$0xff]  ;;  %v367_v29 = vld [vmem:[%s2468_s3 + $0x48] sm:$0xff]  ;;  %v1882_v20 = vrot.slane %v184_v10, %v1668_v42 }
  0x15   :  { %1213 = vmatpush1.bf16.msra.mxu0 %v1212_v36  ;;  %v369_v30 = vld [vmem:[%s2468_s3 + $0x58] sm:$0xff]  ;;  %1311 = vmatprep.subr.bf16.mxu1 %v1310_v22  ;;  %v101_v32 = vld [vmem:[%s2466_s1 + $0x180] sm:$0xff]  ;;  %v103_v33 = vld [vmem:[%s2466_s1 + $0x190] sm:$0xff]  ;;  %v1316_v35 = vpack.c.bf16 %v364_v28, %v362_v26  ;;  %v1242_v36 = vpack.c.bf16 %v104_v17, %v102_v16 }
  0x16   :  { %1215 = vmatprep.subr.bf16.mxu0 %v1214_v37  ;;  %1313 = vmatpush1.bf16.msra.mxu1 %v1312_v23  ;;  %v106_v37 = vld [vmem:[%s2466_s1 + $0x1a8] sm:$0xff]  ;;  %v1318_v38 = vpack.c.bf16 %v369_v30, %v367_v29  ;;  %v366_v39 = vld [vmem:[%s2468_s3 + $0x40] sm:$0xff]  ;;  %v368_v40 = vld [vmem:[%s2468_s3 + $0x50] sm:$0xff]  ;;  %v1244_v45 = vpack.c.bf16 %v103_v33, %v101_v32  ;;  %v200_v32 = vcombine.high %v1882_v20, %v1882_v20 }
  0x17   :  { %1315 = vmatprep.subr.bf16.mxu1 %v1314_v27  ;;  %v108_v41 = vld [vmem:[%s2466_s1 + $0x1b8] sm:$0xff]  ;;  %v105_v46 = vld [vmem:[%s2466_s1 + $0x1a0] sm:$0xff]  ;;  %v107_v48 = vld [vmem:[%s2466_s1 + $0x1b0] sm:$0xff]  ;;  %v1320_v49 = vpack.c.bf16 %v368_v40, %v366_v39 }
  0x18   :  { %v110_v52 = vld [vmem:[%s2466_s1 + $0x1c8] sm:$0xff]  ;;  %v370_v54 = vld [vmem:[%s2468_s3 + $0x60] sm:$0xff]  ;;  %v372_v55 = vld [vmem:[%s2468_s3 + $0x70] sm:$0xff] }
  0x19   :  { %1217 = vmatpush1.bf16.msra.mxu0 %v1216_v43  ;;  %v371_v43 = vld [vmem:[%s2468_s3 + $0x68] sm:$0xff]  ;;  %v112_v56 = vld [vmem:[%s2466_s1 + $0x1d8] sm:$0xff]  ;;  %v109_v60 = vld [vmem:[%s2466_s1 + $0x1c0] sm:$0xff]  ;;  %v1324_v62 = vpack.c.bf16 %v372_v55, %v370_v54 }
  0x1a   :  { %1219 = vmatprep.subr.bf16.mxu0 %v1218_v44  ;;  %v373_v44 = vld [vmem:[%s2468_s3 + $0x78] sm:$0xff]  ;;  %1317 = vmatpush1.bf16.msra.mxu1 %v1316_v35  ;;  %v375_v57 = vld [vmem:[%s2468_s3 + $0x88] sm:$0xff]  ;;  %v111_v61 = vld [vmem:[%s2466_s1 + $0x1d0] sm:$0xff]  ;;  %v1250_v63 = vpack.c.bf16 %v112_v56, %v110_v52 }
  0x1b   :  { %1319 = vmatprep.subr.bf16.mxu1 %v1318_v38  ;;  %v374_v2 = vld [vmem:[%s2468_s3 + $0x80] sm:$0xff]  ;;  %v376_v3 = vld [vmem:[%s2468_s3 + $0x90] sm:$0xff]  ;;  %v116_v4 = vld [vmem:[%s2466_s1 + $0x1f8] sm:$0xff] }
  0x1c   :  { %v379_v5 = vld [vmem:[%s2468_s3 + $0xa8] sm:$0xff]  ;;  %v113_v8 = vld [vmem:[%s2466_s1 + $0x1e0] sm:$0xff]  ;;  %v115_v9 = vld [vmem:[%s2466_s1 + $0x1f0] sm:$0xff]  ;;  %v1328_v11 = vpack.c.bf16 %v376_v3, %v374_v2 }
  0x1d   :  { %1221 = vmatpush1.bf16.msra.mxu0 %v1220_v51  ;;  %v1246_v51 = vpack.c.bf16 %v108_v41, %v106_v37  ;;  %v118_v13 = vld [vmem:[%s2466_s1 + $0x208] sm:$0xff]  ;;  %v380_v16 = vld [vmem:[%s2468_s3 + $0xb0] sm:$0xff]  ;;  %v120_v47 = vld [vmem:[%s2466_s1 + $0x218] sm:$0xff]  ;;  %v1256_v19 = vpack.c.bf16 %v115_v9, %v113_v8 }
  0x1e   :  { %1223 = vmatprep.subr.bf16.mxu0 %v1222_v53  ;;  %v1322_v53 = vpack.c.bf16 %v373_v44, %v371_v43  ;;  %1321 = vmatpush1.bf16.msra.mxu1 %v1320_v49  ;;  %v383_v17 = vld [vmem:[%s2468_s3 + $0xc8] sm:$0xff]  ;;  %v385_v18 = vld [vmem:[%s2468_s3 + $0xd8] sm:$0xff]  ;;  %v1258_v22 = vpack.c.bf16 %v120_v47, %v118_v13  ;;  %v117_v23 = vld [vmem:[%s2466_s1 + $0x200] sm:$0xff] }
  0x1f   :  { %v119_v24 = vld [vmem:[%s2466_s1 + $0x210] sm:$0xff]  ;;  %v122_v25 = vld [vmem:[%s2466_s1 + $0x228] sm:$0xff]  ;;  %v1334_v26 = vpack.c.bf16 %v385_v18, %v383_v17  ;;  %v124_v42 = vld [vmem:[%s2466_s1 + $0x238] sm:$0xff] }
  0x20   :  { %1323 = vmatprep.subr.bf16.mxu1 %v1322_v53  ;;  %v382_v27 = vld [vmem:[%s2468_s3 + $0xc0] sm:$0xff]  ;;  %v384_v28 = vld [vmem:[%s2468_s3 + $0xd0] sm:$0xff]  ;;  %v387_v29 = vld [vmem:[%s2468_s3 + $0xe8] sm:$0xff]  ;;  %v1262_v33 = vpack.c.bf16 %v124_v42, %v122_v25 }
  0x21   :  { %1225 = vmatpush1.bf16.msra.mxu0 %v1224_v58  ;;  %v377_v58 = vld [vmem:[%s2468_s3 + $0x98] sm:$0xff]  ;;  %v121_v35 = vld [vmem:[%s2466_s1 + $0x220] sm:$0xff]  ;;  %v126_v37 = vld [vmem:[%s2466_s1 + $0x248] sm:$0xff]  ;;  %v1336_v38 = vpack.c.bf16 %v384_v28, %v382_v27 }
  0x22   :  { %1227 = vmatprep.subr.bf16.mxu0 %v1226_v59  ;;  %v1248_v59 = vpack.c.bf16 %v107_v48, %v105_v46  ;;  %1325 = vmatpush1.bf16.msra.mxu1 %v1324_v62  ;;  %v389_v30 = vld [vmem:[%s2468_s3 + $0xf8] sm:$0xff]  ;;  %v386_v41 = vld [vmem:[%s2468_s3 + $0xe0] sm:$0xff]  ;;  %v388_v43 = vld [vmem:[%s2468_s3 + $0xf0] sm:$0xff] }
  0x23   :  { %v128_v39 = vld [vmem:[%s2466_s1 + $0x258] sm:$0xff]  ;;  %v1338_v40 = vpack.c.bf16 %v389_v30, %v387_v29  ;;  %v391_v44 = vld [vmem:[%s2468_s3 + $0x108] sm:$0xff]  ;;  %v125_v49 = vld [vmem:[%s2466_s1 + $0x240] sm:$0xff]  ;;  %v1340_v52 = vpack.c.bf16 %v388_v43, %v386_v41 }
  0x24   :  { %v1266_v48 = vpack.c.bf16 %v128_v39, %v126_v37  ;;  %v132_v53 = vld [vmem:[%s2466_s1 + $0x278] sm:$0xff]  ;;  %v390_v55 = vld [vmem:[%s2468_s3 + $0x100] sm:$0xff]  ;;  %v392_v56 = vld [vmem:[%s2468_s3 + $0x110] sm:$0xff] }
  0x25   :  { %1229 = vmatpush1.bf16.msra.mxu0 %v1228_v0  ;;  %v114_v0 = vld [vmem:[%s2466_s1 + $0x1e8] sm:$0xff]  ;;  %v131_v62 = vld [vmem:[%s2466_s1 + $0x270] sm:$0xff]  ;;  %v394_v3 = vld [vmem:[%s2468_s3 + $0x120] sm:$0xff] }
  0x26   :  { %1231 = vmatprep.subr.bf16.mxu0 %v1230_v1  ;;  %v1326_v1 = vpack.c.bf16 %v377_v58, %v375_v57  ;;  %v1254_v12 = vpack.c.bf16 %v116_v4, %v114_v0  ;;  %v395_v57 = vld [vmem:[%s2468_s3 + $0x128] sm:$0xff]  ;;  %v397_v58 = vld [vmem:[%s2468_s3 + $0x138] sm:$0xff]  ;;  %v1344_v0 = vpack.c.bf16 %v392_v56, %v390_v55  ;;  %v396_v4 = vld [vmem:[%s2468_s3 + $0x130] sm:$0xff] }
  0x27   :  { %v1346_v2 = vpack.c.bf16 %v397_v58, %v395_v57  ;;  %v133_v9 = vld [vmem:[%s2466_s1 + $0x280] sm:$0xff]  ;;  %v135_v10 = vld [vmem:[%s2466_s1 + $0x290] sm:$0xff]  ;;  %v140_v13 = vld [vmem:[%s2466_s1 + $0x2b8] sm:$0xff] }
  0x28   :  { %1327 = vmatprep.subr.bf16.mxu1 %v1326_v1  ;;  %v136_v1 = vld [vmem:[%s2466_s1 + $0x298] sm:$0xff]  ;;  %v403_v47 = vld [vmem:[%s2468_s3 + $0x168] sm:$0xff]  ;;  %v1276_v18 = vpack.c.bf16 %v135_v10, %v133_v9  ;;  %v402_v42 = vld [vmem:[%s2468_s3 + $0x160] sm:$0xff] }
  0x29   :  { %1233 = vmatpush1.bf16.msra.mxu0 %v1232_v6  ;;  %v381_v6 = vld [vmem:[%s2468_s3 + $0xb8] sm:$0xff]  ;;  %1329 = vmatpush1.bf16.msra.mxu1 %v1328_v11  ;;  %v138_v11 = vld [vmem:[%s2466_s1 + $0x2a8] sm:$0xff]  ;;  %v404_v27 = vld [vmem:[%s2468_s3 + $0x170] sm:$0xff] }
  0x2a   :  { %1235 = vmatprep.subr.bf16.mxu0 %v1234_v7  ;;  %v1252_v7 = vpack.c.bf16 %v111_v61, %v109_v60  ;;  %v1330_v14 = vpack.c.bf16 %v381_v6, %v379_v5  ;;  %v129_v61 = vld [vmem:[%s2466_s1 + $0x260] sm:$0xff]  ;;  %v399_v5 = vld [vmem:[%s2468_s3 + $0x148] sm:$0xff]  ;;  %v401_v6 = vld [vmem:[%s2468_s3 + $0x158] sm:$0xff] }
  0x2b   :  { %v405_v17 = vld [vmem:[%s2468_s3 + $0x178] sm:$0xff]  ;;  %v141_v30 = vld [vmem:[%s2466_s1 + $0x2c0] sm:$0xff]  ;;  %v147_v39 = vld [vmem:[%s2466_s1 + $0x2f0] sm:$0xff] }
  0x2c   :  { %1331 = vmatprep.subr.bf16.mxu1 %v1330_v14  ;;  %v1350_v14 = vpack.c.bf16 %v401_v6, %v399_v5  ;;  %v144_v25 = vld [vmem:[%s2466_s1 + $0x2d8] sm:$0xff]  ;;  %v157_v58 = vld [vmem:[%s2466_s1 + $0x340] sm:$0xff]  ;;  %v170_v9 = vld [vmem:[%s2466_s1 + $0x3a8] sm:$0x7f] }
  0x2d   :  { %1237 = vmatpush1.bf16.msra.mxu0 %v1236_v15  ;;  %v378_v15 = vld [vmem:[%s2468_s3 + $0xa0] sm:$0xff]  ;;  %v152_v41 = vld [vmem:[%s2466_s1 + $0x318] sm:$0xff] }
  0x2e   :  { %1239 = vmatprep.subr.bf16.mxu0 %v1238_v21  ;;  %v1332_v21 = vpack.c.bf16 %v380_v16, %v378_v15  ;;  %v398_v15 = vld [vmem:[%s2468_s3 + $0x140] sm:$0xff]  ;;  %v400_v16 = vld [vmem:[%s2468_s3 + $0x150] sm:$0xff]  ;;  %v160_v55 = vld [vmem:[%s2466_s1 + $0x358] sm:$0xff] }
  0x2f   :  { %v165_v6 = vld [vmem:[%s2466_s1 + $0x380] sm:$0xff] }
  0x30   :  { %1333 = vmatpush1.bf16.msra.mxu1 %v1332_v21  ;;  %v137_v21 = vld [vmem:[%s2466_s1 + $0x2a0] sm:$0xff] }
  0x31   :  { %1241 = vmatpush1.bf16.msra.mxu0 %v1240_v31  ;;  %v1260_v31 = vpack.c.bf16 %v119_v24, %v117_v23  ;;  %1335 = vmatprep.subr.bf16.mxu1 %v1334_v26  ;;  %v142_v23 = vld [vmem:[%s2466_s1 + $0x2c8] sm:$0xff]  ;;  %v1352_v24 = vpack.c.bf16 %v400_v16, %v398_v15  ;;  %v1354_v26 = vpack.c.bf16 %v405_v17, %v403_v47  ;;  %v169_v10 = vld [vmem:[%s2466_s1 + $0x3a0] sm:$0x7f]  ;;  %v408_v15 = vld [vmem:[%s2468_s3 + $0x190] sm:$0xff] }
  0x32   :  { %1243 = vmatprep.subr.bf16.mxu0 %v1242_v36  ;;  %v123_v36 = vld [vmem:[%s2466_s1 + $0x230] sm:$0xff]  ;;  %v1282_v29 = vpack.c.bf16 %v144_v25, %v142_v23  ;;  %v413_v47 = vld [vmem:[%s2468_s3 + $0x1b8] sm:$0xff] }
  0x33   :  { %v1264_v46 = vpack.c.bf16 %v123_v36, %v121_v35  ;;  %v148_v35 = vld [vmem:[%s2466_s1 + $0x2f8] sm:$0xff] }
  0x34   :  { %1337 = vmatpush1.bf16.msra.mxu1 %v1336_v38  ;;  %v145_v38 = vld [vmem:[%s2466_s1 + $0x2e0] sm:$0xff]  ;;  %v417_v23 = vld [vmem:[%s2468_s3 + $0x1d8] sm:$0xff] }
  0x35   :  { %1245 = vmatpush1.bf16.msra.mxu0 %v1244_v45  ;;  %v393_v45 = vld [vmem:[%s2468_s3 + $0x118] sm:$0xff]  ;;  %1339 = vmatprep.subr.bf16.mxu1 %v1338_v40  ;;  %v150_v40 = vld [vmem:[%s2466_s1 + $0x308] sm:$0xff]  ;;  %v1288_v43 = vpack.c.bf16 %v147_v39, %v145_v38  ;;  %v171_v38 = vld [vmem:[%s2470_s2] sm:$0x3]  ;;  %v179_v39 = vsub.s32 1, %v1653_v34 }
  0x36   :  { %1247 = vmatprep.subr.bf16.mxu0 %v1246_v51  ;;  %v130_v51 = vld [vmem:[%s2466_s1 + $0x268] sm:$0xff]  ;;  %v1342_v54 = vpack.c.bf16 %v393_v45, %v391_v44  ;;  %v1290_v44 = vpack.c.bf16 %v152_v41, %v150_v40  ;;  %v149_v45 = vld [vmem:[%s2466_s1 + $0x300] sm:$0xff] }
  0x37   :  { %v1270_v60 = vpack.c.bf16 %v132_v53, %v130_v51  ;;  %v155_v53 = vld [vmem:[%s2466_s1 + $0x330] sm:$0xff]  ;;  %v180_v41 = vrot.slane %v171_v38, %v179_v39 }
  0x38   :  { %1341 = vmatpush1.bf16.msra.mxu1 %v1340_v52  ;;  %v153_v52 = vld [vmem:[%s2466_s1 + $0x320] sm:$0xff] }
  0x39   :  { %1249 = vmatpush1.bf16.msra.mxu0 %v1248_v59  ;;  %1343 = vmatprep.subr.bf16.mxu1 %v1342_v54  ;;  %v158_v54 = vld [vmem:[%s2466_s1 + $0x348] sm:$0xff]  ;;  %v1296_v56 = vpack.c.bf16 %v155_v53, %v153_v52 }
  0x3a   :  { %1251 = vmatprep.subr.bf16.mxu0 %v1250_v63  ;;  %v134_v63 = vld [vmem:[%s2466_s1 + $0x288] sm:$0xff]  ;;  %v1298_v57 = vpack.c.bf16 %v160_v55, %v158_v54  ;;  %v509_v55 = vld [vmem:[%s2469_s5 + $0x10] sm:$0xff] }
  0x3b   :  { %v1274_v8 = vpack.c.bf16 %v136_v1, %v134_v63  ;;  %v163_v1 = vld [vmem:[%s2466_s1 + $0x370] sm:$0xff] }
  0x3c   :  { %1345 = vmatpush1.bf16.msra.mxu1 %v1344_v0  ;;  %v161_v0 = vld [vmem:[%s2466_s1 + $0x360] sm:$0xff] }
  0x3d   :  { %1253 = vmatpush1.bf16.msra.mxu0 %v1252_v7  ;;  %v1272_v7 = vpack.c.bf16 %v131_v62, %v129_v61  ;;  %1347 = vmatprep.subr.bf16.mxu1 %v1346_v2  ;;  %v164_v61 = vld [vmem:[%s2466_s1 + $0x378] sm:$0xff]  ;;  %v166_v2 = vld [vmem:[%s2466_s1 + $0x388] sm:$0xff] }
  0x3e   :  { %1255 = vmatprep.subr.bf16.mxu0 %v1254_v12  ;;  %v1348_v12 = vpack.c.bf16 %v396_v4, %v394_v3  ;;  %v168_v3 = vld [vmem:[%s2466_s1 + $0x398] sm:$0xff]  ;;  %v1304_v4 = vpack.c.bf16 %v163_v1, %v161_v0  ;;  %v529_v0 = vld [vmem:[%s2469_s5 + $0xb0] sm:$0xff] }
  0x3f   :  { %v1306_v5 = vpack.c.bf16 %v168_v3, %v166_v2  ;;  %v530_v1 = vld [vmem:[%s2469_s5 + $0xb8] sm:$0xff] }
  0x40   :  { %1349 = vmatpush1.bf16.msra.mxu1 %v1348_v12  ;;  %v409_v12 = vld [vmem:[%s2468_s3 + $0x198] sm:$0xff]  ;;  %v1386_v3 = vpack.c.bf16 %v530_v1, %v529_v0  ;;  %v1506_v0 = vmov 0.0  }
  0x41   :  { %1257 = vmatpush1.bf16.msra.mxu0 %v1256_v19  ;;  %v1278_v19 = vpack.c.bf16 %v140_v13, %v138_v11  ;;  %1351 = vmatprep.subr.bf16.mxu1 %v1350_v14  ;;  %v407_v11 = vld [vmem:[%s2468_s3 + $0x188] sm:$0xff]  ;;  %v406_v14 = vld [vmem:[%s2468_s3 + $0x180] sm:$0xff] }
  0x42   :  { %1259 = vmatprep.subr.bf16.mxu0 %v1258_v22  ;;  %v139_v22 = vld [vmem:[%s2466_s1 + $0x2b0] sm:$0xff]  ;;  %v1358_v13 = vpack.c.bf16 %v409_v12, %v407_v11  ;;  %v1360_v16 = vpack.c.bf16 %v408_v15, %v406_v14  ;;  %v516_v11 = vld [vmem:[%s2469_s5 + $0x48] sm:$0xff]  ;;  %v534_v14 = vld [vmem:[%s2469_s5 + $0xd8] sm:$0xff] }
  0x43   :  { %v1280_v28 = vpack.c.bf16 %v139_v22, %v137_v21  ;;  %v415_v22 = vld [vmem:[%s2468_s3 + $0x1c8] sm:$0xff] }
  0x44   :  { %279 = vmatmul.mubr.f32.vlgmr.msra.gmra.mrb[0].mxu0 %v1689_v50  ;;  %v127_v50 = vld [vmem:[%s2466_s1 + $0x250] sm:$0xff]  ;;  %1353 = vmatpush1.bf16.msra.mxu1 %v1352_v24  ;;  %v414_v24 = vld [vmem:[%s2468_s3 + $0x1c0] sm:$0xff]  ;;  %v1366_v25 = vpack.c.bf16 %v417_v23, %v415_v22  ;;  %v520_v22 = vld [vmem:[%s2469_s5 + $0x68] sm:$0xff] }
  0x45   :  { %1261 = vmatpush1.bf16.msra.mxu0 %v1260_v31  ;;  %991 = vmatprep.mubr.msk.f32.mxu0 %vm204_vm0, %v200_v32  ;;  %v1268_v59 = vpack.c.bf16 %v127_v50, %v125_v49  ;;  %v143_v31 = vld [vmem:[%s2466_s1 + $0x2d0] sm:$0xff]  ;;  %v1356_v32 = vpack.c.bf16 %v404_v27, %v402_v42  ;;  %v156_v49 = vld [vmem:[%s2466_s1 + $0x338] sm:$0xff]  ;;  %v419_v42 = vld [vmem:[%s2468_s3 + $0x1e8] sm:$0xff] }
  0x46   :  { %1263 = vmatprep.subr.bf16.mxu0 %v1262_v33  ;;  %v146_v33 = vld [vmem:[%s2466_s1 + $0x2e8] sm:$0xff]  ;;  %1355 = vmatprep.subr.bf16.mxu1 %v1354_v26  ;;  %v1284_v36 = vpack.c.bf16 %v143_v31, %v141_v30  ;;  %v416_v26 = vld [vmem:[%s2468_s3 + $0x1d0] sm:$0xff]  ;;  %v421_v27 = vld [vmem:[%s2468_s3 + $0x1f8] sm:$0xff] }
  0x47   :  { %v1286_v37 = vpack.c.bf16 %v148_v35, %v146_v33  ;;  %v418_v30 = vld [vmem:[%s2468_s3 + $0x1e0] sm:$0xff]  ;;  %v420_v31 = vld [vmem:[%s2468_s3 + $0x1f0] sm:$0xff]  ;;  %v524_v35 = vld [vmem:[%s2469_s5 + $0x88] sm:$0xff] }
  0x48   :  { %1357 = vmatpush1.bf16.msra.mxu1 %v1356_v32  ;;  %v1372_v32 = vpack.c.bf16 %v420_v31, %v418_v30  ;;  %v523_v33 = vld [vmem:[%s2469_s5 + $0x80] sm:$0xff]  ;;  %v537_v23 = vld [vmem:[%s2469_s5 + $0xf0] sm:$0xff] }
  0x49   :  { %1265 = vmatpush1.bf16.msra.mxu0 %v1264_v46  ;;  %v151_v46 = vld [vmem:[%s2466_s1 + $0x310] sm:$0xff]  ;;  %1359 = vmatprep.subr.bf16.mxu1 %v1358_v13  ;;  %v422_v30 = vld [vmem:[%s2471_s4] sm:$0x3] }
  0x4a   :  { %1267 = vmatprep.subr.bf16.mxu0 %v1266_v48  ;;  %v154_v48 = vld [vmem:[%s2466_s1 + $0x328] sm:$0xff]  ;;  %v1292_v50 = vpack.c.bf16 %v151_v46, %v149_v45  ;;  %v533_v13 = vld [vmem:[%s2469_s5 + $0xd0] sm:$0xff] }
  0x4b   :  { %v1294_v51 = vpack.c.bf16 %v156_v49, %v154_v48  ;;  %v507_v48 = vld [vmem:[%s2469_s5] sm:$0xff]  ;;  %v508_v49 = vld [vmem:[%s2469_s5 + $0x8] sm:$0xff]  ;;  %v1394_v15 = vpack.c.bf16 %v534_v14, %v533_v13 }
  0x4c   :  { %1361 = vmatpush1.bf16.msra.mxu1 %v1360_v16  ;;  %v1376_v52 = vpack.c.bf16 %v508_v49, %v507_v48  ;;  %v517_v16 = vld [vmem:[%s2469_s5 + $0x50] sm:$0xff]  ;;  %v622_v48 = vld [vmem:[%s2472_s7 + $0x28] sm:$0xff]  ;;  %v719_v14 = vld [vmem:[%s2473_s9 + $0x40] sm:$0xff] }
  0x4d   :  { %1269 = vmatpush1.bf16.msra.mxu0 %v1268_v59  ;;  %v159_v59 = vld [vmem:[%s2466_s1 + $0x350] sm:$0xff] }
  0x4e   :  { %1271 = vmatprep.subr.bf16.mxu0 %v1270_v60  ;;  %v162_v60 = vld [vmem:[%s2466_s1 + $0x368] sm:$0xff]  ;;  %v1300_v62 = vpack.c.bf16 %v159_v59, %v157_v58  ;;  %v527_v58 = vld [vmem:[%s2469_s5 + $0xa0] sm:$0xff] }
  0x4f   :  { %v1302_v63 = vpack.c.bf16 %v164_v61, %v162_v60  ;;  %v528_v59 = vld [vmem:[%s2469_s5 + $0xa8] sm:$0xff] }
  0x50   :  { %v1382_v61 = vpack.c.bf16 %v528_v59, %v527_v58  ;;  %v629_v59 = vld [vmem:[%s2472_s7 + $0x60] sm:$0xff] }
  0x51   :  { %1273 = vmatpush1.bf16.msra.mxu0 %v1272_v7  ;;  %v167_v7 = vld [vmem:[%s2466_s1 + $0x390] sm:$0xff] }
  0x52   :  { %1275 = vmatprep.subr.bf16.mxu0 %v1274_v8  ;;  %v1308_v8 = vpack.c.bf16 %v167_v7, %v165_v6  ;;  %v531_v7 = vld [vmem:[%s2469_s5 + $0xc0] sm:$0xff] }
  0x55   :  { %1277 = vmatpush1.bf16.msra.mxu0 %v1276_v18  ;;  %v410_v18 = vld [vmem:[%s2468_s3 + $0x1a0] sm:$0xff] }
  0x56   :  { %1279 = vmatprep.subr.bf16.mxu0 %v1278_v19  ;;  %v412_v19 = vld [vmem:[%s2468_s3 + $0x1b0] sm:$0xff] }
  0x57   :  { %v1364_v21 = vpack.c.bf16 %v412_v19, %v410_v18  ;;  %v536_v18 = vld [vmem:[%s2469_s5 + $0xe8] sm:$0xff]  ;;  %v519_v19 = vld [vmem:[%s2469_s5 + $0x60] sm:$0xff] }
  0x59   :  { %1281 = vmatpush1.bf16.msra.mxu0 %v1280_v28  ;;  %v1368_v28 = vpack.c.bf16 %v416_v26, %v414_v24  ;;  %v538_v24 = vld [vmem:[%s2469_s5 + $0xf8] sm:$0xff] }
  0x5a   :  { %1283 = vmatprep.subr.bf16.mxu0 %v1282_v29  ;;  %v1370_v29 = vpack.c.bf16 %v421_v27, %v419_v42  ;;  %v1402_v26 = vpack.c.bf16 %v538_v24, %v537_v23  ;;  %v521_v42 = vld [vmem:[%s2469_s5 + $0x70] sm:$0xff]  ;;  %v522_v27 = vld [vmem:[%s2469_s5 + $0x78] sm:$0xff] }
  0x5b   :  { %v722_v23 = vld [vmem:[%s2473_s9 + $0x58] sm:$0xff] }
  0x5d   :  { %1285 = vmatpush1.bf16.msra.mxu0 %v1284_v36  ;;  %v1374_v36 = vpack.c.bf16 %v524_v35, %v523_v33 }
  0x5e   :  { %1287 = vmatprep.subr.bf16.mxu0 %v1286_v37  ;;  %v175_v37 = vsub.s32 0, %v1653_v34  ;;  %v619_v34 = vld [vmem:[%s2472_s7 + $0x10] sm:$0xff] }
  0x60   :  { %v176_v40 = vrot.slane %v171_v38, %v175_v37  ;;  %v427_v31 = vrot.slane %v422_v30, %v175_v37  ;;  %v620_v37 = vld [vmem:[%s2472_s7 + $0x18] sm:$0xff] }
  0x61   :  { %1289 = vmatpush1.bf16.msra.mxu0 %v1288_v43 }
  0x62   :  { %1291 = vmatprep.subr.bf16.mxu0 %v1290_v44 }
  0x65   :  { %1293 = vmatpush1.bf16.msra.mxu0 %v1292_v50  ;;  %v525_v50 = vld [vmem:[%s2469_s5 + $0x90] sm:$0xff] }
  0x66   :  { %1295 = vmatprep.subr.bf16.mxu0 %v1294_v51  ;;  %v526_v51 = vld [vmem:[%s2469_s5 + $0x98] sm:$0xff] }
  0x67   :  { %v1378_v54 = vpack.c.bf16 %v526_v51, %v525_v50  ;;  %v623_v50 = vld [vmem:[%s2472_s7 + $0x30] sm:$0xff]  ;;  %v624_v51 = vld [vmem:[%s2472_s7 + $0x38] sm:$0xff] }
  0x69   :  { %1297 = vmatpush1.bf16.msra.mxu0 %v1296_v56  ;;  %v510_v56 = vld [vmem:[%s2469_s5 + $0x18] sm:$0xff] }
  0x6a   :  { %1299 = vmatprep.subr.bf16.mxu0 %v1298_v57  ;;  %v1380_v60 = vpack.c.bf16 %v510_v56, %v509_v55  ;;  %v627_v56 = vld [vmem:[%s2472_s7 + $0x50] sm:$0xff] }
  0x6d   :  { %1301 = vmatpush1.bf16.msra.mxu0 %v1300_v62  ;;  %v511_v62 = vld [vmem:[%s2469_s5 + $0x20] sm:$0xff] }
  0x6e   :  { %1303 = vmatprep.subr.bf16.mxu0 %v1302_v63  ;;  %v512_v63 = vld [vmem:[%s2469_s5 + $0x28] sm:$0xff] }
  0x6f   :  { %v1384_v2 = vpack.c.bf16 %v512_v63, %v511_v62  ;;  %v631_v62 = vld [vmem:[%s2472_s7 + $0x70] sm:$0xff]  ;;  %v632_v63 = vld [vmem:[%s2472_s7 + $0x78] sm:$0xff] }
  0x70   :  { %v1428_v1 = vpack.c.bf16 %v632_v63, %v631_v62  ;;  %v900_v62 = vld [vmem:[%s2478_s13 + $0x28] sm:$0xff] }
  0x71   :  { %1305 = vmatpush1.bf16.msra.mxu0 %v1304_v4  ;;  %v513_v4 = vld [vmem:[%s2469_s5 + $0x30] sm:$0xff] }
  0x72   :  { %1307 = vmatprep.subr.bf16.mxu0 %v1306_v5  ;;  %v514_v5 = vld [vmem:[%s2469_s5 + $0x38] sm:$0xff] }
  0x73   :  { %v1388_v6 = vpack.c.bf16 %v514_v5, %v513_v4  ;;  %v713_v4 = vld [vmem:[%s2473_s9 + $0x10] sm:$0xff] }
  0x75   :  { %1309 = vmatpush1.bf16.msra.mxu0 %v1308_v8  ;;  %v532_v8 = vld [vmem:[%s2469_s5 + $0xc8] sm:$0xff] }
  0x76   :  { %989 = vmatprep.subr.msk.mxu0 %vm207_vm1, %v170_v9  ;;  %v1390_v9 = vpack.c.bf16 %v532_v8, %v531_v7  ;;  %v715_v8 = vld [vmem:[%s2473_s9 + $0x20] sm:$0xff] }
  0x79   :  { %990 = vmatpush1.msk.msra.mxu0 %vm207_vm1, %v169_v10  ;;  %v515_v10 = vld [vmem:[%s2469_s5 + $0x40] sm:$0xff] }
  0x7a   :  { %350 = vmatmul.mubr.f32.vlgmr.msra.gmra.mrb[0].mxu0 %v1882_v20  ;;  %v411_v20 = vld [vmem:[%s2468_s3 + $0x1a8] sm:$0xff]  ;;  %v1392_v12 = vpack.c.bf16 %v516_v11, %v515_v10  ;;  %v717_v11 = vld [vmem:[%s2473_s9 + $0x30] sm:$0xff] }
  0x7b   :  { %v1362_v17 = vpack.c.bf16 %v413_v47, %v411_v20  ;;  %v518_v20 = vld [vmem:[%s2469_s5 + $0x58] sm:$0xff]  ;;  %1153 = vmatprep.mubr.msk.f32.mxu0 %vm1505_vm2, %v1506_v0 }
  0x7c   :  { %v1396_v47 = vpack.c.bf16 %v518_v20, %v517_v16 }
  0x7d   :  { %1363 = vmatprep.subr.bf16.mxu1 %v1362_v17  ;;  %v535_v17 = vld [vmem:[%s2469_s5 + $0xe0] sm:$0xff] }
  0x7e   :  { %1365 = vmatpush1.bf16.msra.mxu1 %v1364_v21  ;;  %v1398_v21 = vpack.c.bf16 %v536_v18, %v535_v17 }
  0x7f   :  { %1367 = vmatprep.subr.bf16.mxu1 %v1366_v25  ;;  %v1400_v25 = vpack.c.bf16 %v520_v22, %v519_v19  ;;  %v721_v22 = vld [vmem:[%s2473_s9 + $0x50] sm:$0xff] }
  0x80   :  { %v1446_v24 = vpack.c.bf16 %v722_v23, %v721_v22 }
  0x82   :  { %1369 = vmatpush1.bf16.msra.mxu1 %v1368_v28  ;;  %v1404_v28 = vpack.c.bf16 %v522_v27, %v521_v42  ;;  %v725_v27 = vld [vmem:[%s2473_s9 + $0x70] sm:$0xff] }
  0x83   :  { %1371 = vmatprep.subr.bf16.mxu1 %v1370_v29  ;;  %v1504_v29 = vmov 0.0|0.0  }
  0x84   :  { %1430 = vmatprep.subr.bf16.mxu0 %v1504_v29 }
  0x86   :  { %1373 = vmatpush1.bf16.msra.mxu1 %v1372_v32  ;;  %v431_v32 = vrot.slane %v422_v30, %v179_v39 }
  0x87   :  { %1375 = vmatprep.subr.bf16.mxu1 %v1374_v36 }
 0x14d   :  { %v351_v43 = vpop.f32.mrb[0].mxu0 }
 0x14e   :  { %v1478_v44 = vadd.f32 %v351_v43, %v176_v40  ;;  %v353_v45 = vpop.f32.mrb[1].mxu0  ;;  %v617_v40 = vld [vmem:[%s2472_s7] sm:$0xff] }
 0x14f   :  { %v1479_v46 = vadd.f32 %v353_v45, %v180_v41  ;;  %v618_v41 = vld [vmem:[%s2472_s7 + $0x8] sm:$0xff]  ;;  %v1410_v45 = vpack.c.bf16 %v620_v37, %v619_v34  ;;  %v809_v37 = vld [vmem:[%s2475_s11 + $0x20] sm:$0xff] }
 0x150   :  { %v1407_v43 = vpack.c.bf16 %v618_v41, %v617_v40 }
 0x151   :  { %1487 = vtanh.f32 %v1479_v46  ;;  %v621_v46 = vld [vmem:[%s2472_s7 + $0x20] sm:$0xff] }
 0x152   :  { %1489 = vtanh.f32 %v1478_v44  ;;  %v1413_v49 = vpack.c.bf16 %v622_v48, %v621_v46  ;;  %v811_v46 = vld [vmem:[%s2475_s11 + $0x30] sm:$0xff]  ;;  %v812_v48 = vld [vmem:[%s2475_s11 + $0x38] sm:$0xff] }
 0x15b   :  { %v1488_v53 = vpop.eup %1487 }
 0x15c   :  { %v1490_v57 = vpop.eup %1489  ;;  %498 = vmatprep.mubr.f32.mxu1 %v1488_v53  ;;  %v625_v53 = vld [vmem:[%s2472_s7 + $0x40] sm:$0xff] }
 0x15d   :  { %499 = vmatmul.mubr.f32.vlgmr.msra.gmra.mrb[0].mxu1 %v1490_v57  ;;  %v628_v57 = vld [vmem:[%s2472_s7 + $0x58] sm:$0xff] }
 0x15e   :  { %1377 = vmatpush3.bf16.msra.mxu1 %v1376_v52  ;;  %v1416_v52 = vpack.c.bf16 %v624_v51, %v623_v50  ;;  %v1422_v58 = vpack.c.bf16 %v628_v57, %v627_v56  ;;  %v994_v50 = vld [vmem:[%s2477_s10] ss:$0 sm:$0xff] }
 0x15f   :  { %1379 = vmatprep.subr.bf16.mxu1 %v1378_v54  ;;  %v626_v54 = vld [vmem:[%s2472_s7 + $0x48] sm:$0xff] }
 0x160   :  { %v1419_v55 = vpack.c.bf16 %v626_v54, %v625_v53  ;;  %v895_v54 = vld [vmem:[%s2478_s13] sm:$0xff] }
 0x162   :  { %1381 = vmatpush3.bf16.msra.mxu1 %v1380_v60  ;;  %v630_v60 = vld [vmem:[%s2472_s7 + $0x68] sm:$0xff] }
 0x163   :  { %1383 = vmatprep.subr.bf16.mxu1 %v1382_v61  ;;  %v1425_v61 = vpack.c.bf16 %v630_v60, %v629_v59  ;;  %v898_v59 = vld [vmem:[%s2478_s13 + $0x18] sm:$0xff] }
 0x166   :  { %1385 = vmatpush3.bf16.msra.mxu1 %v1384_v2  ;;  %v711_v2 = vld [vmem:[%s2473_s9] sm:$0xff] }
 0x167   :  { %1387 = vmatprep.subr.bf16.mxu1 %v1386_v3  ;;  %v712_v3 = vld [vmem:[%s2473_s9 + $0x8] sm:$0xff] }
 0x168   :  { %v1431_v5 = vpack.c.bf16 %v712_v3, %v711_v2  ;;  %v20_v3 = vstv %s2479_s14 }
 0x169   :  { %21 = vst [vmem:[#allocation2] sm:$0x1] %v20_v3 }
 0x16a   :  { %1389 = vmatpush3.bf16.msra.mxu1 %v1388_v6  ;;  %v714_v6 = vld [vmem:[%s2473_s9 + $0x18] sm:$0xff]  ;;  %1432 = vmatpush3.bf16.msra.mxu0 %v1431_v5 }
 0x16b   :  { %1391 = vmatprep.subr.bf16.mxu1 %v1390_v9  ;;  %v1434_v7 = vpack.c.bf16 %v714_v6, %v713_v4  ;;  %1433 = vmatprep.subr.bf16.mxu0 %v1504_v29  ;;  %v716_v9 = vld [vmem:[%s2473_s9 + $0x28] sm:$0xff]  ;;  %v995_v4 = vld [vmem:[%s2480_s12] ss:$0 sm:$0xff] }
 0x16c   :  { %v1437_v10 = vpack.c.bf16 %v716_v9, %v715_v8 }
 0x16e   :  { %1393 = vmatpush3.bf16.msra.mxu1 %v1392_v12  ;;  %1435 = vmatpush3.bf16.msra.mxu0 %v1434_v7  ;;  %v718_v12 = vld [vmem:[%s2473_s9 + $0x38] sm:$0xff] }
 0x16f   :  { %1395 = vmatprep.subr.bf16.mxu1 %v1394_v15  ;;  %1436 = vmatprep.subr.bf16.mxu0 %v1504_v29  ;;  %v1440_v13 = vpack.c.bf16 %v718_v12, %v717_v11  ;;  %v720_v15 = vld [vmem:[%s2473_s9 + $0x48] sm:$0xff] }
 0x170   :  { %v1443_v16 = vpack.c.bf16 %v720_v15, %v719_v14  ;;  %v997_v9 = vld [vmem:[#allocation2] ss:$0 sm:$0xff] }
 0x172   :  { %1397 = vmatpush3.bf16.msra.mxu1 %v1396_v47  ;;  %1438 = vmatpush3.bf16.msra.mxu0 %v1437_v10  ;;  %v992_v47 = vld [vmem:[%s2474_s6] ss:$0 sm:$0xff] }
 0x173   :  { %1399 = vmatprep.subr.bf16.mxu1 %v1398_v21  ;;  %1439 = vmatprep.subr.bf16.mxu0 %v1504_v29 }
 0x176   :  { %1401 = vmatpush3.bf16.msra.mxu1 %v1400_v25  ;;  %1441 = vmatpush3.bf16.msra.mxu0 %v1440_v13  ;;  %v723_v25 = vld [vmem:[%s2473_s9 + $0x60] sm:$0xff] }
 0x177   :  { %1403 = vmatprep.subr.bf16.mxu1 %v1402_v26  ;;  %1442 = vmatprep.subr.bf16.mxu0 %v1504_v29  ;;  %v724_v26 = vld [vmem:[%s2473_s9 + $0x68] sm:$0xff] }
 0x178   :  { %v1449_v42 = vpack.c.bf16 %v724_v26, %v723_v25 }
 0x17a   :  { %1405 = vmatpush3.bf16.msra.mxu1 %v1404_v28  ;;  %1444 = vmatpush3.bf16.msra.mxu0 %v1443_v16  ;;  %v726_v28 = vld [vmem:[%s2473_s9 + $0x78] sm:$0xff] }
 0x17b   :  { %1406 = vmatprep.subr.bf16.mxu1 %v1504_v29  ;;  %1445 = vmatprep.subr.bf16.mxu0 %v1504_v29  ;;  %v1452_v30 = vpack.c.bf16 %v726_v28, %v725_v27 }
 0x17e   :  { %1447 = vmatpush3.bf16.msra.mxu0 %v1446_v24 }
 0x17f   :  { %1448 = vmatprep.subr.bf16.mxu0 %v1504_v29 }
 0x182   :  { %1450 = vmatpush3.bf16.msra.mxu0 %v1449_v42 }
 0x183   :  { %1451 = vmatprep.subr.bf16.mxu0 %v1504_v29 }
 0x186   :  { %1453 = vmatpush3.bf16.msra.mxu0 %v1452_v30 }
 0x230   :  { %v500_v33 = vpop.f32.mrb[0].mxu1 }
 0x231   :  { %v501_v35 = vadd.f32 %v500_v33, %v427_v31  ;;  %v502_v36 = vpop.f32.mrb[1].mxu1  ;;  %v805_v31 = vld [vmem:[%s2475_s11] sm:$0xff] }
 0x232   :  { %v503_v38 = vadd.f32 %v502_v36, %v431_v32  ;;  %v806_v32 = vld [vmem:[%s2475_s11 + $0x8] sm:$0xff] }
 0x233   :  { %v1455_v33 = vpack.c.bf16 %v806_v32, %v805_v31 }
 0x234   :  { %1491 = vtanh.f32 %v503_v38 }
 0x235   :  { %1493 = vtanh.f32 %v501_v35  ;;  %v993_v35 = vld [vmem:[%s2476_s8] ss:$0 sm:$0xff] }
 0x23e   :  { %v1492_v44 = vpop.eup %1491 }
 0x23f   :  { %v1494_v39 = vpop.eup %1493  ;;  %610 = vmatprep.mubr.f32.mxu1 %v1492_v44  ;;  %v808_v44 = vld [vmem:[%s2475_s11 + $0x18] sm:$0xff] }
 0x240   :  { %611 = vmatmul.mubr.f32.vlgmr.msra.gmra.mrb[2].mxu1 %v1494_v39  ;;  %v810_v39 = vld [vmem:[%s2475_s11 + $0x28] sm:$0xff] }
 0x241   :  { %1408 = vmatpush3.bf16.msra.mxu1 %v1407_v43  ;;  %1118 = vmatprep.mubr.msk.f32.mxu1 %vm1505_vm2, %v1506_v0  ;;  %v807_v43 = vld [vmem:[%s2475_s11 + $0x10] sm:$0xff] }
 0x242   :  { %1409 = vmatprep.subr.bf16.mxu1 %v1504_v29  ;;  %v1458_v34 = vpack.c.bf16 %v808_v44, %v807_v43 }
 0x245   :  { %1411 = vmatpush3.bf16.msra.mxu1 %v1410_v45  ;;  %v1461_v45 = vpack.c.bf16 %v810_v39, %v809_v37 }
 0x246   :  { %1412 = vmatprep.subr.bf16.mxu1 %v1504_v29 }
 0x249   :  { %1414 = vmatpush3.bf16.msra.mxu1 %v1413_v49  ;;  %v1464_v49 = vpack.c.bf16 %v812_v48, %v811_v46 }
 0x24a   :  { %1415 = vmatprep.subr.bf16.mxu1 %v1504_v29 }
 0x24d   :  { %1417 = vmatpush3.bf16.msra.mxu1 %v1416_v52 }
 0x24e   :  { %1418 = vmatprep.subr.bf16.mxu1 %v1504_v29 }
 0x251   :  { %1420 = vmatpush3.bf16.msra.mxu1 %v1419_v55  ;;  %v896_v55 = vld [vmem:[%s2478_s13 + $0x8] sm:$0xff] }
 0x252   :  { %1421 = vmatprep.subr.bf16.mxu1 %v1504_v29  ;;  %v1467_v56 = vpack.c.bf16 %v896_v55, %v895_v54 }
 0x255   :  { %1423 = vmatpush3.bf16.msra.mxu1 %v1422_v58  ;;  %v897_v58 = vld [vmem:[%s2478_s13 + $0x10] sm:$0xff] }
 0x256   :  { %1424 = vmatprep.subr.bf16.mxu1 %v1504_v29  ;;  %v1470_v60 = vpack.c.bf16 %v898_v59, %v897_v58 }
 0x259   :  { %1426 = vmatpush3.bf16.msra.mxu1 %v1425_v61  ;;  %v899_v61 = vld [vmem:[%s2478_s13 + $0x20] sm:$0xff] }
 0x25a   :  { %1427 = vmatprep.subr.bf16.mxu1 %v1504_v29  ;;  %v1473_v63 = vpack.c.bf16 %v900_v62, %v899_v61 }
 0x25d   :  { %1429 = vmatpush3.bf16.msra.mxu1 %v1428_v1  ;;  %v902_v1 = vld [vmem:[%s2478_s13 + $0x38] sm:$0xff] }
 0x25e   :  { %1454 = vmatprep.subr.bf16.mxu1 %v1504_v29 }
 0x313   :  { %v1031_v20 = vpop.f32.mrb[2].mxu1 }
 0x314   :  { %v1032_v17 = vpop.f32.mrb[3].mxu1 }
 0x315   :  { %v1033_v18 = vadd.f32 %v1032_v17, %v1031_v20 }
 0x317   :  { %v613_v19 = vadd.f32 %v1033_v18, %v992_v47 }
 0x319   :  { %1495 = vtanh.f32 %v613_v19 }
 0x323   :  { %v1496_v21 = vpop.eup %1495 }
 0x324   :  { %1119 = vmatmul.mubr.f32.vlgmr.msra.gmra.mrb[4].mxu1 %v1496_v21 }
 0x325   :  { %1172 = vmatprep.mubr.msk.f32.mxu1 %vm1505_vm2, %v1506_v0  ;;  %1456 = vmatpush3.bf16.msra.mxu1 %v1455_v33 }
 0x326   :  { %1457 = vmatprep.subr.bf16.mxu1 %v1504_v29 }
 0x329   :  { %1459 = vmatpush3.bf16.msra.mxu1 %v1458_v34 }
 0x32a   :  { %1460 = vmatprep.subr.bf16.mxu1 %v1504_v29 }
 0x32d   :  { %1462 = vmatpush3.bf16.msra.mxu1 %v1461_v45 }
 0x32e   :  { %1463 = vmatprep.subr.bf16.mxu1 %v1504_v29 }
 0x331   :  { %1465 = vmatpush3.bf16.msra.mxu1 %v1464_v49 }
 0x332   :  { %1466 = vmatprep.subr.bf16.mxu1 %v1504_v29 }
 0x3f7   :  { %v706_v36 = vpop.f32.mrb[4].mxu1 }
 0x3f8   :  { %v707_v38 = vadd.f32 %v993_v35, %v706_v36  ;;  %v1120_v40 = vpop.f32.mrb[5].mxu1 }
 0x3fa   :  { %1497 = vtanh.f32 %v707_v38 }
 0x404   :  { %v1498_v41 = vpop.eup %1497 }
 0x405   :  { %1154 = vmatmul.mubr.f32.vlgmr.msra.gmra.mrb[2].mxu0 %v1498_v41 }
 0x4d8   :  { %v800_v51 = vpop.f32.mrb[2].mxu0 }
 0x4d9   :  { %v801_v52 = vadd.f32 %v994_v50, %v800_v51  ;;  %v1155_v53 = vpop.f32.mrb[3].mxu0 }
 0x4db   :  { %1499 = vtanh.f32 %v801_v52 }
 0x4e5   :  { %v1500_v57 = vpop.eup %1499 }
 0x4e6   :  { %1173 = vmatmul.mubr.msk.f32.vlgmr.msra.gmra.mrb[6].mxu1 %vm820_vm3, %v1500_v57 }
 0x4e7   :  { %1468 = vmatpush3.bf16.msra.mxu1 %v1467_v56  ;;  %1191 = vmatprep.mubr.msk.f32.mxu1 %vm1505_vm2, %v1506_v0  ;;  %v901_v0 = vld [vmem:[%s2478_s13 + $0x30] sm:$0xff] }
 0x4e8   :  { %1469 = vmatprep.subr.bf16.mxu1 %v1504_v29  ;;  %v1476_v2 = vpack.c.bf16 %v902_v1, %v901_v0 }
 0x4eb   :  { %1471 = vmatpush3.bf16.msra.mxu1 %v1470_v60 }
 0x4ec   :  { %1472 = vmatprep.subr.bf16.mxu1 %v1504_v29 }
 0x4ef   :  { %1474 = vmatpush3.bf16.msra.mxu1 %v1473_v63 }
 0x4f0   :  { %1475 = vmatprep.subr.bf16.mxu1 %v1504_v29 }
 0x4f3   :  { %1477 = vmatpush3.bf16.msra.mxu1 %v1476_v2 }
 0x5b9   :  { %v890_v5 = vpop.f32.mrb[6].mxu1 }
 0x5ba   :  { %v891_v6 = vadd.f32 %v995_v4, %v890_v5  ;;  %v1174_v7 = vpop.f32.mrb[7].mxu1 }
 0x5bc   :  { %1501 = vtanh.f32 %v891_v6 }
 0x5c6   :  { %v1502_v8 = vpop.eup %1501 }
 0x5c7   :  { %1192 = vmatmul.mubr.msk.f32.vlgmr.msra.gmra.mrb[8].mxu1 %vm820_vm3, %v1502_v8 }
 0x69a   :  { %v979_v10 = vpop.f32.mrb[8].mxu1 }
 0x69b   :  { %v980_v29 = vadd.f32 %v997_v9, %v979_v10  ;;  %v1193_v11 = vpop.f32.mrb[9].mxu1 }
 0x69d   :  { %984 = vst.msk [vmem:[%s2481_s15] sm:$0x3] %vm983_vm4, %v980_v29 }

</bundles_post_ra>
